<compile_context>
chip_gen: v5e
topology: v5e:2x2
jax: 0.10.0
libtpu: 0.0.40
codegen_flags: <defaults>
</compile_context>

<pallas_src>
import functools

import numpy as np
import jax
import jax.numpy as jnp
from jax.experimental import pallas as pl
from jax.experimental.pallas import tpu as pltpu


# ----------------------------------------------------------------------------
# 1x1 conv (channel-first, lane-dense)
# ----------------------------------------------------------------------------
def _conv1x1_cf_kernel(x_ref, w_ref, b_ref, o_ref, *, use_mxu):
    # x: (1, Cin, tile_m), w: (Cout, Cin), b: (Cout, 1) f32 -> o: (1, Cout, tile_m)
    x = x_ref[...].reshape(x_ref.shape[1:])          # (Cin, tile_m)
    w = w_ref[...]                                   # (Cout, Cin)
    b = b_ref[...]                                   # (Cout, 1) f32
    if use_mxu:
        acc = jnp.dot(w, x, preferred_element_type=jnp.float32) + b
    else:
        # Tiny contraction (Cin = 3): VPU broadcast-MAC, channels on sublanes,
        # M on lanes.  Bias broadcast hoisted out of the loop.
        cin, tile_m = x.shape
        cout = w.shape[0]
        acc = jnp.broadcast_to(b, (cout, tile_m)).astype(jnp.float32)
        for c in range(cin):                          # static, tiny
            acc = acc + (w[:, c:c + 1].astype(jnp.float32) *
                         x[c:c + 1, :].astype(jnp.float32))
    o_ref[...] = acc.reshape(o_ref.shape).astype(o_ref.dtype)


def conv1x1_cf(x, w, b, *, out_dtype=jnp.float32, block_bytes=4 * 1024 * 1024):
    """Pointwise conv, channel-first: x (N,Cin,H,W), w (Cout,Cin), b (Cout,)."""
    N, Cin, H, W = x.shape
    Cout = w.shape[0]
    M = H * W
    xf = x.reshape(N, Cin, M)                        # free reshape (contiguous)
    w = w.astype(x.dtype)                            # bf16 operands when x is bf16
    b = b.astype(jnp.float32).reshape(Cout, 1)

    # ~4 MiB in+out per block, multiple of 128 lanes, capped; full-M block if small.
    per_col = Cin * x.dtype.itemsize + Cout * np.dtype(out_dtype).itemsize
    tile_m = (block_bytes // per_col) // 128 * 128
    tile_m = max(128, min(tile_m, 32768))
    if M <= tile_m:
        tile_m = M                                    # full dim -> legal block shape
    grid = (N, pl.cdiv(M, tile_m))                    # ragged last tile masked by Pallas

    kernel = functools.partial(_conv1x1_cf_kernel, use_mxu=(Cin >= 8))
    out = pl.pallas_call(
        kernel,
        out_shape=jax.ShapeDtypeStruct((N, Cout, M), out_dtype),
        grid=grid,
        in_specs=[
            pl.BlockSpec((1, Cin, tile_m), lambda n, i: (n, 0, i)),
            pl.BlockSpec((Cout, Cin), lambda n, i: (0, 0)),
            pl.BlockSpec((Cout, 1), lambda n, i: (0, 0)),
        ],
        out_specs=pl.BlockSpec((1, Cout, tile_m), lambda n, i: (n, 0, i)),
        compiler_params=pltpu.CompilerParams(
            dimension_semantics=("parallel", "parallel")),
    )(xf, w, b)
    return out.reshape(N, Cout, H, W)


# ----------------------------------------------------------------------------
# Bilinear resize helpers (align_corners=True) -- per (batch, channel) 2D matmuls
# ----------------------------------------------------------------------------
def _interp_matrix(out_size, in_size):
    """Row-stochastic bilinear interpolation matrix, align_corners=True."""
    m = np.zeros((out_size, in_size), dtype=np.float32)
    if out_size == 1 or in_size == 1:
        m[:, 0] = 1.0
        return m
    scale = (in_size - 1) / (out_size - 1)
    for i in range(out_size):
        src = i * scale
        f = min(int(np.floor(src)), in_size - 1)
        c = min(f + 1, in_size - 1)
        frac = src - f
        m[i, f] += 1.0 - frac
        m[i, c] += frac
    return m


def _resize2d(wh, wwT, img):
    """wh (Ho,Hi) @ img (Hi,Wi) @ wwT (Wi,Wo): two plain 2D MXU matmuls."""
    t = jnp.dot(wh, img, preferred_element_type=jnp.float32)       # (Ho, Wi)
    return jnp.dot(t, wwT, preferred_element_type=jnp.float32)     # (Ho, Wo)


def _resize_rows_kernel(wh_ref, wwT_ref, x_ref, o_ref):
    img = x_ref[...].reshape(x_ref.shape[2:]).astype(jnp.float32)  # (Hin, Win)
    y = _resize2d(wh_ref[...], wwT_ref[...], img)                  # (rb, Wout)
    o_ref[...] = y.reshape(o_ref.shape).astype(o_ref.dtype)


def _resize_add_kernel(wh_ref, wwT_ref, x_ref, add_ref, o_ref):
    img = x_ref[...].reshape(x_ref.shape[2:]).astype(jnp.float32)
    add = add_ref[...].reshape(add_ref.shape[2:]).astype(jnp.float32)
    y = _resize2d(wh_ref[...], wwT_ref[...], img) + add
    o_ref[...] = y.reshape(o_ref.shape).astype(o_ref.dtype)


def _shift_max(y, sm, di, dj):
    """max(sm, y shifted by (di,dj) with -inf out-of-bounds border)."""
    h, w = y.shape
    s = y
    if di == 1:
        s = jnp.concatenate([s[1:, :], jnp.full((1, w), -jnp.inf, y.dtype)], axis=0)
    elif di == -1:
        s = jnp.concatenate([jnp.full((1, w), -jnp.inf, y.dtype), s[:-1, :]], axis=0)
    if dj == 1:
        s = jnp.concatenate([s[:, 1:], jnp.full((h, 1), -jnp.inf, y.dtype)], axis=1)
    elif dj == -1:
        s = jnp.concatenate([jnp.full((h, 1), -jnp.inf, y.dtype), s[:, :-1]], axis=1)
    return jnp.maximum(sm, s)


def _resize_pool_edge_kernel(wh_ref, wwT_ref, x_ref, o_ref, e_ref):
    # Fused per-channel: upsample + MaxPool2d(3,1,1) + edge + o0_e.
    img = x_ref[...].reshape(x_ref.shape[2:]).astype(jnp.float32)
    y = _resize2d(wh_ref[...], wwT_ref[...], img)                  # (Hout, Wout)
    sm = y                                                         # center tap
    for di in (-1, 0, 1):                                          # 8 shifted maxima
        for dj in (-1, 0, 1):
            if di == 0 and dj == 0:
                continue
            sm = _shift_max(y, sm, di, dj)
    edge = jnp.abs(y - sm)
    e_ref[...] = edge.reshape(e_ref.shape).astype(e_ref.dtype)
    o_ref[...] = (y + edge).reshape(o_ref.shape).astype(o_ref.dtype)


_PAR2 = pltpu.CompilerParams(dimension_semantics=("parallel", "parallel"))
_PAR3 = pltpu.CompilerParams(dimension_semantics=("parallel", "parallel", "parallel"))


def resize_rows_nc(x, Hout, Wout, *, channel_offset=0, channels=None,
                   row_block=128, out_dtype=jnp.float32):
    """Bilinear upsample of selected channels, row-strip tiled (grid N*C*strips)."""
    N, C, Hin, Win = x.shape
    if channels is None:
        channels = C
    wh = jnp.asarray(_interp_matrix(Hout, Hin))
    wwT = jnp.asarray(_interp_matrix(Wout, Win).T)
    rb = min(row_block, Hout)
    while Hout % rb != 0:
        rb //= 2
    if rb < 8:
        rb = Hout
    nstrips = Hout // rb
    return pl.pallas_call(
        _resize_rows_kernel,
        out_shape=jax.ShapeDtypeStruct((N, channels, Hout, Wout), out_dtype),
        grid=(N, channels, nstrips),
        in_specs=[
            pl.BlockSpec((rb, Hin), lambda n, c, s: (s, 0)),
            pl.BlockSpec((Win, Wout), lambda n, c, s: (0, 0)),
            pl.BlockSpec((1, 1, Hin, Win),
                         lambda n, c, s: (n, c + channel_offset, 0, 0)),
        ],
        out_specs=pl.BlockSpec((1, 1, rb, Wout), lambda n, c, s: (n, c, s, 0)),
        compiler_params=_PAR3,
    )(wh, wwT, x)


def resize_add_nc(x, add, Hout, Wout, *, channels, out_dtype=jnp.float32):
    """Per-channel bilinear upsample of x[:, :channels] plus `add` (decoder sum)."""
    N, _, Hin, Win = x.shape
    wh = jnp.asarray(_interp_matrix(Hout, Hin))
    wwT = jnp.asarray(_interp_matrix(Wout, Win).T)
    return pl.pallas_call(
        _resize_add_kernel,
        out_shape=jax.ShapeDtypeStruct((N, channels, Hout, Wout), out_dtype),
        grid=(N, channels),
        in_specs=[
            pl.BlockSpec((Hout, Hin), lambda n, c: (0, 0)),
            pl.BlockSpec((Win, Wout), lambda n, c: (0, 0)),
            pl.BlockSpec((1, 1, Hin, Win), lambda n, c: (n, c, 0, 0)),
            pl.BlockSpec((1, 1, Hout, Wout), lambda n, c: (n, c, 0, 0)),
        ],
        out_specs=pl.BlockSpec((1, 1, Hout, Wout), lambda n, c: (n, c, 0, 0)),
        compiler_params=_PAR2,
    )(wh, wwT, x, add)


def resize_pool_edge_nc(x, Hout, Wout):
    """Fused bilinear upsample + MaxPool2d(3,1,1) + edge=|x-pool| + o0_e=x+edge.

    Per-(batch, channel) grid: blocks stay ~1 MB at production resolutions
    (fits v7x's 64 MiB VMEM with double buffering) and grid length is N*C.
    TODO(synk): add halo'd row-strip tiling if single-channel full-res blocks
    ever exceed a few MB.
    """
    N, C, Hin, Win = x.shape
    wh = jnp.asarray(_interp_matrix(Hout, Hin))
    wwT = jnp.asarray(_interp_matrix(Wout, Win).T)
    return pl.pallas_call(
        _resize_pool_edge_kernel,
        out_shape=(
            jax.ShapeDtypeStruct((N, C, Hout, Wout), jnp.float32),
            jax.ShapeDtypeStruct((N, C, Hout, Wout), jnp.float32),
        ),
        grid=(N, C),
        in_specs=[
            pl.BlockSpec((Hout, Hin), lambda n, c: (0, 0)),
            pl.BlockSpec((Win, Wout), lambda n, c: (0, 0)),
            pl.BlockSpec((1, 1, Hin, Win), lambda n, c: (n, c, 0, 0)),
        ],
        out_specs=(
            pl.BlockSpec((1, 1, Hout, Wout), lambda n, c: (n, c, 0, 0)),
            pl.BlockSpec((1, 1, Hout, Wout), lambda n, c: (n, c, 0, 0)),
        ),
        compiler_params=_PAR2,
    )(wh, wwT, x)


# ----------------------------------------------------------------------------
# DeepLab forward (NCHW, like the PyTorch module)
# ----------------------------------------------------------------------------
def _avg_downsample(x, f):
    N, C, H, W = x.shape
    return x.reshape(N, C, H // f, f, W // f, f).mean(axis=(3, 5))


def deeplab_forward(x_in, p):
    N, Cin, H, W = x_in.shape
    H2, W2, H4, W4 = H // 2, W // 2, H // 4, W // 4

    # ---- backbone stand-in (TODO(synk): real ResNet not reimplemented) ------
    x2 = _avg_downsample(x_in, 2)                    # (N, 3, H/2, W/2)
    x4 = _avg_downsample(x_in, 4)                    # (N, 3, H/4, W/4)

    # ---- 8 single-channel heads fused into ONE lane-dense 1x1 conv ----------
    w_heads = jnp.concatenate(
        [p[f"w_pre{i}"] for i in range(1, 5)] + [p[f"w_e{i}"] for i in range(1, 5)],
        axis=0)                                      # (8, 3)
    b_heads = jnp.concatenate(
        [p[f"b_pre{i}"] for i in range(1, 5)] + [p[f"b_e{i}"] for i in range(1, 5)],
        axis=0)                                      # (8,)
    heads = conv1x1_cf(x_in, w_heads, b_heads, out_dtype=jnp.float32)  # (N,8,H,W)
    pres = [heads[:, i:i + 1] for i in range(4)]
    es = [heads[:, 4 + i:5 + i] for i in range(4)]

    # ---- backbone->ASPP stand-in with composed weights (no nonlinearity) ----
    w_ba = p["w_aspp"] @ p["w_back"]                 # (256, 3)
    b_ba = p["w_aspp"] @ p["b_back"] + p["b_aspp"]   # (256,)
    x_aspp = conv1x1_cf(x4, w_ba, b_ba, out_dtype=jnp.bfloat16)        # (N,256,H/4,W/4)

    # ---- layer1 + low_level fused into one conv on x2 -----------------------
    w_ll = jnp.concatenate([p["w_low"], p["w_layer1"]], axis=0)        # (88, 3)
    b_ll = jnp.concatenate([p["b_low"], p["b_layer1"]], axis=0)
    ll = conv1x1_cf(x2, w_ll, b_ll, out_dtype=jnp.bfloat16)            # (N,88,H/2,W/2)

    # ---- decoder stand-in + predict5: w_dec split, dec_cat never built ------
    # 1x1 conv commutes exactly with align_corners bilinear resize (interp rows
    # sum to 1), so the x_aspp block of w_dec and predict5 are applied at H/4.
    w_dec_a = p["w_dec"][:, :256]                    # (21, 256) -> resized x_aspp part
    w_dec_b = p["w_dec"][:, 256:]                    # (21, 88)  -> [low; layer1] part
    w_proj = jnp.concatenate([w_dec_a, p["w_pred5"]], axis=0)          # (22, 256)
    b_proj = jnp.concatenate(
        [jnp.zeros((21,), jnp.float32), p["b_pred5"]], axis=0)
    proj = conv1x1_cf(x_aspp, w_proj, b_proj, out_dtype=jnp.bfloat16)  # (N,22,H/4,W/4)
    ll_proj = conv1x1_cf(ll, w_dec_b, p["b_dec"], out_dtype=jnp.bfloat16)  # (N,21,H/2,W/2)

    # predict5 branch: only the single-channel map is upsampled (row-strip grid).
    pre5 = resize_rows_nc(proj, H, W, channel_offset=21, channels=1,
                          out_dtype=jnp.float32)                       # (N,1,H,W)

    # decoder output: x_dec = resize(w_dec_a @ x_aspp) + (w_dec_b @ ll + b_dec)
    x_dec = resize_add_nc(proj, ll_proj, H2, W2, channels=21,
                          out_dtype=jnp.bfloat16)                      # (N,21,H/2,W/2)

    # ---- final: fused upsample + maxpool(3,1,1) + edge enhancement ----------
    o0_e, edge4 = resize_pool_edge_nc(x_dec, H, W)                     # (N,21,H,W) x2

    return (o0_e, pres[0], pres[1], pres[2], pres[3], pre5, edge4,
            es[0], es[1], es[2], es[3])


# ----------------------------------------------------------------------------
# main
# ----------------------------------------------------------------------------
if __name__ == "__main__":
    key = jax.random.PRNGKey(0)
    N, CIN, H, W = 2, 3, 16, 16
    NUM_CLASSES = 21

    keys = iter(jax.random.split(key, 64))
    x_in = jax.random.normal(next(keys), (N, CIN, H, W), jnp.float32)

    def mk(cin, cout):
        return (0.05 * jax.random.normal(next(keys), (cout, cin), jnp.float32),
                0.05 * jax.random.normal(next(keys), (cout,), jnp.float32))

    params = {}
    params["w_back"], params["b_back"] = mk(CIN, 32)
    params["w_layer1"], params["b_layer1"] = mk(CIN, 64)
    params["w_low"], params["b_low"] = mk(CIN, 24)
    for i in range(1, 5):
        params[f"w_pre{i}"], params[f"b_pre{i}"] = mk(CIN, 1)
        params[f"w_e{i}"], params[f"b_e{i}"] = mk(CIN, 1)
    params["w_aspp"], params["b_aspp"] = mk(32, 256)
    params["w_pred5"], params["b_pred5"] = mk(256, 1)
    params["w_dec"], params["b_dec"] = mk(256 + 24 + 64, NUM_CLASSES)

    fwd = jax.jit(deeplab_forward)
    outs = fwd(x_in, params)
    jax.block_until_ready(outs)

    # sanity on shapes / values of the main outputs (NCHW like the PyTorch module)
    assert outs[0].shape == (N, NUM_CLASSES, H, W)   # o0_e
    assert outs[1].shape == (N, 1, H, W)             # pre1
    assert outs[5].shape == (N, 1, H, W)             # pre5
    assert outs[6].shape == (N, NUM_CLASSES, H, W)   # edge4
    assert outs[10].shape == (N, 1, H, W)            # e4
    assert bool(jnp.isfinite(outs[0]).all())
    assert bool(jnp.isfinite(outs[6]).all())
    print("KERNEL_OK")
</pallas_src>

<mosaic_0001>
module attributes {stable_mosaic.version = 11 : i64} {
  func.func @_conv1x1_cf_kernel(%arg0: i32, %arg1: i32, %arg2: memref<1x3x16xf32, #tpu.memory_space<vmem>>, %arg3: memref<256x3xf32, #tpu.memory_space<vmem>>, %arg4: memref<256x1xf32, #tpu.memory_space<vmem>>, %arg5: memref<1x256x16xbf16, #tpu.memory_space<vmem>>) attributes {dimension_semantics = [#tpu.dimension_semantics<parallel>, #tpu.dimension_semantics<parallel>], iteration_bounds = array<i64: 2, 1>, scalar_prefetch = 0 : i64, scratch_operands = 0 : i64, tpu.core_type = #tpu.core_type<tc>, window_params = [{transform_indices = @transform_0, window_bounds = array<i64: 1, 3, 16>}, {pipeline_mode = #tpu.pipeline_mode<synchronous>, transform_indices = @transform_1, window_bounds = array<i64: 256, 3>}, {pipeline_mode = #tpu.pipeline_mode<synchronous>, transform_indices = @transform_2, window_bounds = array<i64: 256, 1>}, {transform_indices = @transform_3, window_bounds = array<i64: 1, 256, 16>}]} {
    %c0 = arith.constant 0 : index
    %c0_0 = arith.constant 0 : index
    %c0_1 = arith.constant 0 : index
    %0 = vector.load %arg2[%c0, %c0_0, %c0_1] : memref<1x3x16xf32, #tpu.memory_space<vmem>>, vector<1x3x16xf32>
    %1 = vector.shape_cast %0 : vector<1x3x16xf32> to vector<3x16xf32>
    %c0_2 = arith.constant 0 : index
    %c0_3 = arith.constant 0 : index
    %2 = vector.load %arg3[%c0_2, %c0_3] : memref<256x3xf32, #tpu.memory_space<vmem>>, vector<256x3xf32>
    %c0_4 = arith.constant 0 : index
    %c0_5 = arith.constant 0 : index
    %3 = vector.load %arg4[%c0_4, %c0_5] : memref<256x1xf32, #tpu.memory_space<vmem>>, vector<256x1xf32>
    %4 = vector.shape_cast %3 : vector<256x1xf32> to vector<256x1xf32>
    %5 = vector.broadcast %4 : vector<256x1xf32> to vector<256x16xf32>
    %6 = vector.extract_strided_slice %2 {offsets = [0, 0], sizes = [256, 1], strides = [1, 1]} : vector<256x3xf32> to vector<256x1xf32>
    %7 = vector.extract_strided_slice %1 {offsets = [0, 0], sizes = [1, 16], strides = [1, 1]} : vector<3x16xf32> to vector<1x16xf32>
    %8 = vector.broadcast %6 : vector<256x1xf32> to vector<256x16xf32>
    %9 = vector.broadcast %7 : vector<1x16xf32> to vector<256x16xf32>
    %10 = arith.mulf %8, %9 : vector<256x16xf32>
    %11 = arith.addf %5, %10 : vector<256x16xf32>
    %12 = vector.extract_strided_slice %2 {offsets = [0, 1], sizes = [256, 1], strides = [1, 1]} : vector<256x3xf32> to vector<256x1xf32>
    %13 = vector.extract_strided_slice %1 {offsets = [1, 0], sizes = [1, 16], strides = [1, 1]} : vector<3x16xf32> to vector<1x16xf32>
    %14 = vector.broadcast %12 : vector<256x1xf32> to vector<256x16xf32>
    %15 = vector.broadcast %13 : vector<1x16xf32> to vector<256x16xf32>
    %16 = arith.mulf %14, %15 : vector<256x16xf32>
    %17 = arith.addf %11, %16 : vector<256x16xf32>
    %18 = vector.extract_strided_slice %2 {offsets = [0, 2], sizes = [256, 1], strides = [1, 1]} : vector<256x3xf32> to vector<256x1xf32>
    %19 = vector.extract_strided_slice %1 {offsets = [2, 0], sizes = [1, 16], strides = [1, 1]} : vector<3x16xf32> to vector<1x16xf32>
    %20 = vector.broadcast %18 : vector<256x1xf32> to vector<256x16xf32>
    %21 = vector.broadcast %19 : vector<1x16xf32> to vector<256x16xf32>
    %22 = arith.mulf %20, %21 : vector<256x16xf32>
    %23 = arith.addf %17, %22 : vector<256x16xf32>
    %24 = vector.shape_cast %23 : vector<256x16xf32> to vector<1x256x16xf32>
    %25 = arith.truncf %24 : vector<1x256x16xf32> to vector<1x256x16xbf16>
    %c0_6 = arith.constant 0 : index
    %c0_7 = arith.constant 0 : index
    %c0_8 = arith.constant 0 : index
    %26 = vector.load %arg5[%c0_6, %c0_7, %c0_8] : memref<1x256x16xbf16, #tpu.memory_space<vmem>>, vector<1x256x16xbf16>
    tpu.vector_store %arg5[%c0_6, %c0_7, %c0_8], %25 {strides = array<i32>} : memref<1x256x16xbf16, #tpu.memory_space<vmem>>, vector<1x256x16xbf16>,
    return
  }
  func.func @transform_0(%arg0: i32, %arg1: i32) -> (i32, i32, i32) {
    %c0_i32 = arith.constant 0 : i32
    %c0_i32_0 = arith.constant 0 : i32
    return %arg0, %c0_i32, %arg1 : i32, i32, i32
  }
  func.func @transform_1(%arg0: i32, %arg1: i32) -> (i32, i32) {
    %c0_i32 = arith.constant 0 : i32
    %c0_i32_0 = arith.constant 0 : i32
    %c0_i32_1 = arith.constant 0 : i32
    return %c0_i32, %c0_i32_0 : i32, i32
  }
  func.func @transform_2(%arg0: i32, %arg1: i32) -> (i32, i32) {
    %c0_i32 = arith.constant 0 : i32
    %c0_i32_0 = arith.constant 0 : i32
    %c0_i32_1 = arith.constant 0 : i32
    return %c0_i32, %c0_i32_0 : i32, i32
  }
  func.func @transform_3(%arg0: i32, %arg1: i32) -> (i32, i32, i32) {
    %c0_i32 = arith.constant 0 : i32
    %c0_i32_0 = arith.constant 0 : i32
    return %arg0, %c0_i32, %arg1 : i32, i32, i32
  }
}

module attributes {stable_mosaic.version = 11 : i64} {
  func.func @_conv1x1_cf_kernel(%arg0: i32, %arg1: i32, %arg2: memref<1x256x16xbf16, #tpu.memory_space<vmem>>, %arg3: memref<22x256xbf16, #tpu.memory_space<vmem>>, %arg4: memref<22x1xf32, #tpu.memory_space<vmem>>, %arg5: memref<1x22x16xbf16, #tpu.memory_space<vmem>>) attributes {dimension_semantics = [#tpu.dimension_semantics<parallel>, #tpu.dimension_semantics<parallel>], iteration_bounds = array<i64: 2, 1>, scalar_prefetch = 0 : i64, scratch_operands = 0 : i64, tpu.core_type = #tpu.core_type<tc>, window_params = [{transform_indices = @transform_0, window_bounds = array<i64: 1, 256, 16>}, {pipeline_mode = #tpu.pipeline_mode<synchronous>, transform_indices = @transform_1, window_bounds = array<i64: 22, 256>}, {pipeline_mode = #tpu.pipeline_mode<synchronous>, transform_indices = @transform_2, window_bounds = array<i64: 22, 1>}, {transform_indices = @transform_3, window_bounds = array<i64: 1, 22, 16>}]} {
    %c0 = arith.constant 0 : index
    %c0_0 = arith.constant 0 : index
    %c0_1 = arith.constant 0 : index
    %0 = vector.load %arg2[%c0, %c0_0, %c0_1] : memref<1x256x16xbf16, #tpu.memory_space<vmem>>, vector<1x256x16xbf16>
    %1 = vector.shape_cast %0 : vector<1x256x16xbf16> to vector<256x16xbf16>
    %c0_2 = arith.constant 0 : index
    %c0_3 = arith.constant 0 : index
    %2 = vector.load %arg3[%c0_2, %c0_3] : memref<22x256xbf16, #tpu.memory_space<vmem>>, vector<22x256xbf16>
    %c0_4 = arith.constant 0 : index
    %c0_5 = arith.constant 0 : index
    %3 = vector.load %arg4[%c0_4, %c0_5] : memref<22x1xf32, #tpu.memory_space<vmem>>, vector<22x1xf32>
    %cst = arith.constant dense<0.000000e+00> : vector<22x16xf32>
    %4 = tpu.matmul %2, %1, %cst {dimension_numbers = #tpu.dot_dimension_numbers<[1], [0], [0], [1], [0, 0, 1, 1], [], []>} : vector<22x256xbf16>, vector<256x16xbf16>, vector<22x16xf32> -> vector<22x16xf32>
    %5 = vector.broadcast %3 : vector<22x1xf32> to vector<22x16xf32>
    %6 = arith.addf %4, %5 : vector<22x16xf32>
    %7 = vector.shape_cast %6 : vector<22x16xf32> to vector<1x22x16xf32>
    %8 = arith.truncf %7 : vector<1x22x16xf32> to vector<1x22x16xbf16>
    %c0_6 = arith.constant 0 : index
    %c0_7 = arith.constant 0 : index
    %c0_8 = arith.constant 0 : index
    %9 = vector.load %arg5[%c0_6, %c0_7, %c0_8] : memref<1x22x16xbf16, #tpu.memory_space<vmem>>, vector<1x22x16xbf16>
    tpu.vector_store %arg5[%c0_6, %c0_7, %c0_8], %8 {strides = array<i32>} : memref<1x22x16xbf16, #tpu.memory_space<vmem>>, vector<1x22x16xbf16>,
    return
  }
  func.func @transform_0(%arg0: i32, %arg1: i32) -> (i32, i32, i32) {
    %c0_i32 = arith.constant 0 : i32
    %c0_i32_0 = arith.constant 0 : i32
    return %arg0, %c0_i32, %arg1 : i32, i32, i32
  }
  func.func @transform_1(%arg0: i32, %arg1: i32) -> (i32, i32) {
    %c0_i32 = arith.constant 0 : i32
    %c0_i32_0 = arith.constant 0 : i32
    %c0_i32_1 = arith.constant 0 : i32
    return %c0_i32, %c0_i32_0 : i32, i32
  }
  func.func @transform_2(%arg0: i32, %arg1: i32) -> (i32, i32) {
    %c0_i32 = arith.constant 0 : i32
    %c0_i32_0 = arith.constant 0 : i32
    %c0_i32_1 = arith.constant 0 : i32
    return %c0_i32, %c0_i32_0 : i32, i32
  }
  func.func @transform_3(%arg0: i32, %arg1: i32) -> (i32, i32, i32) {
    %c0_i32 = arith.constant 0 : i32
    %c0_i32_0 = arith.constant 0 : i32
    return %arg0, %c0_i32, %arg1 : i32, i32, i32
  }
}

module attributes {stable_mosaic.version = 11 : i64} {
  func.func @_conv1x1_cf_kernel(%arg0: i32, %arg1: i32, %arg2: memref<1x3x64xf32, #tpu.memory_space<vmem>>, %arg3: memref<88x3xf32, #tpu.memory_space<vmem>>, %arg4: memref<88x1xf32, #tpu.memory_space<vmem>>, %arg5: memref<1x88x64xbf16, #tpu.memory_space<vmem>>) attributes {dimension_semantics = [#tpu.dimension_semantics<parallel>, #tpu.dimension_semantics<parallel>], iteration_bounds = array<i64: 2, 1>, scalar_prefetch = 0 : i64, scratch_operands = 0 : i64, tpu.core_type = #tpu.core_type<tc>, window_params = [{transform_indices = @transform_0, window_bounds = array<i64: 1, 3, 64>}, {pipeline_mode = #tpu.pipeline_mode<synchronous>, transform_indices = @transform_1, window_bounds = array<i64: 88, 3>}, {pipeline_mode = #tpu.pipeline_mode<synchronous>, transform_indices = @transform_2, window_bounds = array<i64: 88, 1>}, {transform_indices = @transform_3, window_bounds = array<i64: 1, 88, 64>}]} {
    %c0 = arith.constant 0 : index
    %c0_0 = arith.constant 0 : index
    %c0_1 = arith.constant 0 : index
    %0 = vector.load %arg2[%c0, %c0_0, %c0_1] : memref<1x3x64xf32, #tpu.memory_space<vmem>>, vector<1x3x64xf32>
    %1 = vector.shape_cast %0 : vector<1x3x64xf32> to vector<3x64xf32>
    %c0_2 = arith.constant 0 : index
    %c0_3 = arith.constant 0 : index
    %2 = vector.load %arg3[%c0_2, %c0_3] : memref<88x3xf32, #tpu.memory_space<vmem>>, vector<88x3xf32>
    %c0_4 = arith.constant 0 : index
    %c0_5 = arith.constant 0 : index
    %3 = vector.load %arg4[%c0_4, %c0_5] : memref<88x1xf32, #tpu.memory_space<vmem>>, vector<88x1xf32>
    %4 = vector.shape_cast %3 : vector<88x1xf32> to vector<88x1xf32>
    %5 = vector.broadcast %4 : vector<88x1xf32> to vector<88x64xf32>
    %6 = vector.extract_strided_slice %2 {offsets = [0, 0], sizes = [88, 1], strides = [1, 1]} : vector<88x3xf32> to vector<88x1xf32>
    %7 = vector.extract_strided_slice %1 {offsets = [0, 0], sizes = [1, 64], strides = [1, 1]} : vector<3x64xf32> to vector<1x64xf32>
    %8 = vector.broadcast %6 : vector<88x1xf32> to vector<88x64xf32>
    %9 = vector.broadcast %7 : vector<1x64xf32> to vector<88x64xf32>
    %10 = arith.mulf %8, %9 : vector<88x64xf32>
    %11 = arith.addf %5, %10 : vector<88x64xf32>
    %12 = vector.extract_strided_slice %2 {offsets = [0, 1], sizes = [88, 1], strides = [1, 1]} : vector<88x3xf32> to vector<88x1xf32>
    %13 = vector.extract_strided_slice %1 {offsets = [1, 0], sizes = [1, 64], strides = [1, 1]} : vector<3x64xf32> to vector<1x64xf32>
    %14 = vector.broadcast %12 : vector<88x1xf32> to vector<88x64xf32>
    %15 = vector.broadcast %13 : vector<1x64xf32> to vector<88x64xf32>
    %16 = arith.mulf %14, %15 : vector<88x64xf32>
    %17 = arith.addf %11, %16 : vector<88x64xf32>
    %18 = vector.extract_strided_slice %2 {offsets = [0, 2], sizes = [88, 1], strides = [1, 1]} : vector<88x3xf32> to vector<88x1xf32>
    %19 = vector.extract_strided_slice %1 {offsets = [2, 0], sizes = [1, 64], strides = [1, 1]} : vector<3x64xf32> to vector<1x64xf32>
    %20 = vector.broadcast %18 : vector<88x1xf32> to vector<88x64xf32>
    %21 = vector.broadcast %19 : vector<1x64xf32> to vector<88x64xf32>
    %22 = arith.mulf %20, %21 : vector<88x64xf32>
    %23 = arith.addf %17, %22 : vector<88x64xf32>
    %24 = vector.shape_cast %23 : vector<88x64xf32> to vector<1x88x64xf32>
    %25 = arith.truncf %24 : vector<1x88x64xf32> to vector<1x88x64xbf16>
    %c0_6 = arith.constant 0 : index
    %c0_7 = arith.constant 0 : index
    %c0_8 = arith.constant 0 : index
    %26 = vector.load %arg5[%c0_6, %c0_7, %c0_8] : memref<1x88x64xbf16, #tpu.memory_space<vmem>>, vector<1x88x64xbf16>
    tpu.vector_store %arg5[%c0_6, %c0_7, %c0_8], %25 {strides = array<i32>} : memref<1x88x64xbf16, #tpu.memory_space<vmem>>, vector<1x88x64xbf16>,
    return
  }
  func.func @transform_0(%arg0: i32, %arg1: i32) -> (i32, i32, i32) {
    %c0_i32 = arith.constant 0 : i32
    %c0_i32_0 = arith.constant 0 : i32
    return %arg0, %c0_i32, %arg1 : i32, i32, i32
  }
  func.func @transform_1(%arg0: i32, %arg1: i32) -> (i32, i32) {
    %c0_i32 = arith.constant 0 : i32
    %c0_i32_0 = arith.constant 0 : i32
    %c0_i32_1 = arith.constant 0 : i32
    return %c0_i32, %c0_i32_0 : i32, i32
  }
  func.func @transform_2(%arg0: i32, %arg1: i32) -> (i32, i32) {
    %c0_i32 = arith.constant 0 : i32
    %c0_i32_0 = arith.constant 0 : i32
    %c0_i32_1 = arith.constant 0 : i32
    return %c0_i32, %c0_i32_0 : i32, i32
  }
  func.func @transform_3(%arg0: i32, %arg1: i32) -> (i32, i32, i32) {
    %c0_i32 = arith.constant 0 : i32
    %c0_i32_0 = arith.constant 0 : i32
    return %arg0, %c0_i32, %arg1 : i32, i32, i32
  }
}

module attributes {stable_mosaic.version = 11 : i64} {
  func.func @_conv1x1_cf_kernel(%arg0: i32, %arg1: i32, %arg2: memref<1x88x64xbf16, #tpu.memory_space<vmem>>, %arg3: memref<21x88xbf16, #tpu.memory_space<vmem>>, %arg4: memref<21x1xf32, #tpu.memory_space<vmem>>, %arg5: memref<1x21x64xbf16, #tpu.memory_space<vmem>>) attributes {dimension_semantics = [#tpu.dimension_semantics<parallel>, #tpu.dimension_semantics<parallel>], iteration_bounds = array<i64: 2, 1>, scalar_prefetch = 0 : i64, scratch_operands = 0 : i64, tpu.core_type = #tpu.core_type<tc>, window_params = [{transform_indices = @transform_0, window_bounds = array<i64: 1, 88, 64>}, {pipeline_mode = #tpu.pipeline_mode<synchronous>, transform_indices = @transform_1, window_bounds = array<i64: 21, 88>}, {pipeline_mode = #tpu.pipeline_mode<synchronous>, transform_indices = @transform_2, window_bounds = array<i64: 21, 1>}, {transform_indices = @transform_3, window_bounds = array<i64: 1, 21, 64>}]} {
    %c0 = arith.constant 0 : index
    %c0_0 = arith.constant 0 : index
    %c0_1 = arith.constant 0 : index
    %0 = vector.load %arg2[%c0, %c0_0, %c0_1] : memref<1x88x64xbf16, #tpu.memory_space<vmem>>, vector<1x88x64xbf16>
    %1 = vector.shape_cast %0 : vector<1x88x64xbf16> to vector<88x64xbf16>
    %c0_2 = arith.constant 0 : index
    %c0_3 = arith.constant 0 : index
    %2 = vector.load %arg3[%c0_2, %c0_3] : memref<21x88xbf16, #tpu.memory_space<vmem>>, vector<21x88xbf16>
    %c0_4 = arith.constant 0 : index
    %c0_5 = arith.constant 0 : index
    %3 = vector.load %arg4[%c0_4, %c0_5] : memref<21x1xf32, #tpu.memory_space<vmem>>, vector<21x1xf32>
    %cst = arith.constant dense<0.000000e+00> : vector<21x64xf32>
    %4 = tpu.matmul %2, %1, %cst {dimension_numbers = #tpu.dot_dimension_numbers<[1], [0], [0], [1], [0, 0, 1, 1], [], []>} : vector<21x88xbf16>, vector<88x64xbf16>, vector<21x64xf32> -> vector<21x64xf32>
    %5 = vector.broadcast %3 : vector<21x1xf32> to vector<21x64xf32>
    %6 = arith.addf %4, %5 : vector<21x64xf32>
    %7 = vector.shape_cast %6 : vector<21x64xf32> to vector<1x21x64xf32>
    %8 = arith.truncf %7 : vector<1x21x64xf32> to vector<1x21x64xbf16>
    %c0_6 = arith.constant 0 : index
    %c0_7 = arith.constant 0 : index
    %c0_8 = arith.constant 0 : index
    %9 = vector.load %arg5[%c0_6, %c0_7, %c0_8] : memref<1x21x64xbf16, #tpu.memory_space<vmem>>, vector<1x21x64xbf16>
    tpu.vector_store %arg5[%c0_6, %c0_7, %c0_8], %8 {strides = array<i32>} : memref<1x21x64xbf16, #tpu.memory_space<vmem>>, vector<1x21x64xbf16>,
    return
  }
  func.func @transform_0(%arg0: i32, %arg1: i32) -> (i32, i32, i32) {
    %c0_i32 = arith.constant 0 : i32
    %c0_i32_0 = arith.constant 0 : i32
    return %arg0, %c0_i32, %arg1 : i32, i32, i32
  }
  func.func @transform_1(%arg0: i32, %arg1: i32) -> (i32, i32) {
    %c0_i32 = arith.constant 0 : i32
    %c0_i32_0 = arith.constant 0 : i32
    %c0_i32_1 = arith.constant 0 : i32
    return %c0_i32, %c0_i32_0 : i32, i32
  }
  func.func @transform_2(%arg0: i32, %arg1: i32) -> (i32, i32) {
    %c0_i32 = arith.constant 0 : i32
    %c0_i32_0 = arith.constant 0 : i32
    %c0_i32_1 = arith.constant 0 : i32
    return %c0_i32, %c0_i32_0 : i32, i32
  }
  func.func @transform_3(%arg0: i32, %arg1: i32) -> (i32, i32, i32) {
    %c0_i32 = arith.constant 0 : i32
    %c0_i32_0 = arith.constant 0 : i32
    return %arg0, %c0_i32, %arg1 : i32, i32, i32
  }
}

module attributes {stable_mosaic.version = 11 : i64} {
  func.func @_resize_add_kernel(%arg0: i32, %arg1: i32, %arg2: memref<8x4xf32, #tpu.memory_space<vmem>>, %arg3: memref<4x8xf32, #tpu.memory_space<vmem>>, %arg4: memref<1x1x4x4xbf16, #tpu.memory_space<vmem>>, %arg5: memref<1x1x8x8xbf16, #tpu.memory_space<vmem>>, %arg6: memref<1x1x8x8xbf16, #tpu.memory_space<vmem>>) attributes {dimension_semantics = [#tpu.dimension_semantics<parallel>, #tpu.dimension_semantics<parallel>], iteration_bounds = array<i64: 2, 21>, scalar_prefetch = 0 : i64, scratch_operands = 0 : i64, tpu.core_type = #tpu.core_type<tc>, window_params = [{pipeline_mode = #tpu.pipeline_mode<synchronous>, transform_indices = @transform_0, window_bounds = array<i64: 8, 4>}, {pipeline_mode = #tpu.pipeline_mode<synchronous>, transform_indices = @transform_1, window_bounds = array<i64: 4, 8>}, {transform_indices = @transform_2, window_bounds = array<i64: 1, 1, 4, 4>}, {transform_indices = @transform_3, window_bounds = array<i64: 1, 1, 8, 8>}, {transform_indices = @transform_4, window_bounds = array<i64: 1, 1, 8, 8>}]} {
    %c0 = arith.constant 0 : index
    %c0_0 = arith.constant 0 : index
    %c0_1 = arith.constant 0 : index
    %c0_2 = arith.constant 0 : index
    %0 = vector.load %arg4[%c0, %c0_0, %c0_1, %c0_2] : memref<1x1x4x4xbf16, #tpu.memory_space<vmem>>, vector<1x1x4x4xbf16>
    %1 = vector.shape_cast %0 : vector<1x1x4x4xbf16> to vector<4x4xbf16>
    %2 = arith.extf %1 : vector<4x4xbf16> to vector<4x4xf32>
    %c0_3 = arith.constant 0 : index
    %c0_4 = arith.constant 0 : index
    %c0_5 = arith.constant 0 : index
    %c0_6 = arith.constant 0 : index
    %3 = vector.load %arg5[%c0_3, %c0_4, %c0_5, %c0_6] : memref<1x1x8x8xbf16, #tpu.memory_space<vmem>>, vector<1x1x8x8xbf16>
    %4 = vector.shape_cast %3 : vector<1x1x8x8xbf16> to vector<8x8xbf16>
    %5 = arith.extf %4 : vector<8x8xbf16> to vector<8x8xf32>
    %c0_7 = arith.constant 0 : index
    %c0_8 = arith.constant 0 : index
    %6 = vector.load %arg2[%c0_7, %c0_8] : memref<8x4xf32, #tpu.memory_space<vmem>>, vector<8x4xf32>
    %c0_9 = arith.constant 0 : index
    %c0_10 = arith.constant 0 : index
    %7 = vector.load %arg3[%c0_9, %c0_10] : memref<4x8xf32, #tpu.memory_space<vmem>>, vector<4x8xf32>
    %cst = arith.constant dense<0.000000e+00> : vector<8x4xf32>
    %8 = tpu.matmul %6, %2, %cst {dimension_numbers = #tpu.dot_dimension_numbers<[1], [0], [0], [1], [0, 0, 1, 1], [], []>} : vector<8x4xf32>, vector<4x4xf32>, vector<8x4xf32> -> vector<8x4xf32>
    %cst_11 = arith.constant dense<0.000000e+00> : vector<8x8xf32>
    %9 = tpu.matmul %8, %7, %cst_11 {dimension_numbers = #tpu.dot_dimension_numbers<[1], [0], [0], [1], [0, 0, 1, 1], [], []>} : vector<8x4xf32>, vector<4x8xf32>, vector<8x8xf32> -> vector<8x8xf32>
    %10 = arith.addf %9, %5 : vector<8x8xf32>
    %11 = vector.shape_cast %10 : vector<8x8xf32> to vector<1x1x8x8xf32>
    %12 = arith.truncf %11 : vector<1x1x8x8xf32> to vector<1x1x8x8xbf16>
    %c0_12 = arith.constant 0 : index
    %c0_13 = arith.constant 0 : index
    %c0_14 = arith.constant 0 : index
    %c0_15 = arith.constant 0 : index
    %13 = vector.load %arg6[%c0_12, %c0_13, %c0_14, %c0_15] : memref<1x1x8x8xbf16, #tpu.memory_space<vmem>>, vector<1x1x8x8xbf16>
    tpu.vector_store %arg6[%c0_12, %c0_13, %c0_14, %c0_15], %12 {strides = array<i32>} : memref<1x1x8x8xbf16, #tpu.memory_space<vmem>>, vector<1x1x8x8xbf16>,
    return
  }
  func.func @transform_0(%arg0: i32, %arg1: i32) -> (i32, i32) {
    %c0_i32 = arith.constant 0 : i32
    %c0_i32_0 = arith.constant 0 : i32
    %c0_i32_1 = arith.constant 0 : i32
    return %c0_i32, %c0_i32_0 : i32, i32
  }
  func.func @transform_1(%arg0: i32, %arg1: i32) -> (i32, i32) {
    %c0_i32 = arith.constant 0 : i32
    %c0_i32_0 = arith.constant 0 : i32
    %c0_i32_1 = arith.constant 0 : i32
    return %c0_i32, %c0_i32_0 : i32, i32
  }
  func.func @transform_2(%arg0: i32, %arg1: i32) -> (i32, i32, i32, i32) {
    %c0_i32 = arith.constant 0 : i32
    %c0_i32_0 = arith.constant 0 : i32
    %c0_i32_1 = arith.constant 0 : i32
    return %arg0, %arg1, %c0_i32, %c0_i32_0 : i32, i32, i32, i32
  }
  func.func @transform_3(%arg0: i32, %arg1: i32) -> (i32, i32, i32, i32) {
    %c0_i32 = arith.constant 0 : i32
    %c0_i32_0 = arith.constant 0 : i32
    %c0_i32_1 = arith.constant 0 : i32
    return %arg0, %arg1, %c0_i32, %c0_i32_0 : i32, i32, i32, i32
  }
  func.func @transform_4(%arg0: i32, %arg1: i32) -> (i32, i32, i32, i32) {
    %c0_i32 = arith.constant 0 : i32
    %c0_i32_0 = arith.constant 0 : i32
    %c0_i32_1 = arith.constant 0 : i32
    return %arg0, %arg1, %c0_i32, %c0_i32_0 : i32, i32, i32, i32
  }
}

module attributes {stable_mosaic.version = 11 : i64} {
  func.func @_resize_pool_edge_kernel(%arg0: i32, %arg1: i32, %arg2: memref<16x8xf32, #tpu.memory_space<vmem>>, %arg3: memref<8x16xf32, #tpu.memory_space<vmem>>, %arg4: memref<1x1x8x8xbf16, #tpu.memory_space<vmem>>, %arg5: memref<1x1x16x16xf32, #tpu.memory_space<vmem>>, %arg6: memref<1x1x16x16xf32, #tpu.memory_space<vmem>>) attributes {dimension_semantics = [#tpu.dimension_semantics<parallel>, #tpu.dimension_semantics<parallel>], iteration_bounds = array<i64: 2, 21>, scalar_prefetch = 0 : i64, scratch_operands = 0 : i64, tpu.core_type = #tpu.core_type<tc>, window_params = [{pipeline_mode = #tpu.pipeline_mode<synchronous>, transform_indices = @transform_0, window_bounds = array<i64: 16, 8>}, {pipeline_mode = #tpu.pipeline_mode<synchronous>, transform_indices = @transform_1, window_bounds = array<i64: 8, 16>}, {transform_indices = @transform_2, window_bounds = array<i64: 1, 1, 8, 8>}, {transform_indices = @transform_3, window_bounds = array<i64: 1, 1, 16, 16>}, {transform_indices = @transform_4, window_bounds = array<i64: 1, 1, 16, 16>}]} {
    %c0 = arith.constant 0 : index
    %c0_0 = arith.constant 0 : index
    %c0_1 = arith.constant 0 : index
    %c0_2 = arith.constant 0 : index
    %0 = vector.load %arg4[%c0, %c0_0, %c0_1, %c0_2] : memref<1x1x8x8xbf16, #tpu.memory_space<vmem>>, vector<1x1x8x8xbf16>
    %1 = vector.shape_cast %0 : vector<1x1x8x8xbf16> to vector<8x8xbf16>
    %2 = arith.extf %1 : vector<8x8xbf16> to vector<8x8xf32>
    %c0_3 = arith.constant 0 : index
    %c0_4 = arith.constant 0 : index
    %3 = vector.load %arg2[%c0_3, %c0_4] : memref<16x8xf32, #tpu.memory_space<vmem>>, vector<16x8xf32>
    %c0_5 = arith.constant 0 : index
    %c0_6 = arith.constant 0 : index
    %4 = vector.load %arg3[%c0_5, %c0_6] : memref<8x16xf32, #tpu.memory_space<vmem>>, vector<8x16xf32>
    %cst = arith.constant dense<0.000000e+00> : vector<16x8xf32>
    %5 = tpu.matmul %3, %2, %cst {dimension_numbers = #tpu.dot_dimension_numbers<[1], [0], [0], [1], [0, 0, 1, 1], [], []>} : vector<16x8xf32>, vector<8x8xf32>, vector<16x8xf32> -> vector<16x8xf32>
    %cst_7 = arith.constant dense<0.000000e+00> : vector<16x16xf32>
    %6 = tpu.matmul %5, %4, %cst_7 {dimension_numbers = #tpu.dot_dimension_numbers<[1], [0], [0], [1], [0, 0, 1, 1], [], []>} : vector<16x8xf32>, vector<8x16xf32>, vector<16x16xf32> -> vector<16x16xf32>
    %cst_8 = arith.constant 0xFF800000 : f32
    %7 = vector.broadcast %cst_8 : f32 to vector<1x16xf32>
    %8 = vector.extract_strided_slice %6 {offsets = [0, 0], sizes = [15, 16], strides = [1, 1]} : vector<16x16xf32> to vector<15x16xf32>
    %9 = tpu.concatenate %7, %8 in 0 : vector<1x16xf32>, vector<15x16xf32> -> vector<16x16xf32>
    %cst_9 = arith.constant 0xFF800000 : f32
    %10 = vector.broadcast %cst_9 : f32 to vector<16x1xf32>
    %11 = vector.extract_strided_slice %9 {offsets = [0, 0], sizes = [16, 15], strides = [1, 1]} : vector<16x16xf32> to vector<16x15xf32>
    %12 = tpu.concatenate %10, %11 in 1 : vector<16x1xf32>, vector<16x15xf32> -> vector<16x16xf32>
    %13 = arith.maximumf %6, %12 : vector<16x16xf32>
    %cst_10 = arith.constant 0xFF800000 : f32
    %14 = vector.broadcast %cst_10 : f32 to vector<1x16xf32>
    %15 = vector.extract_strided_slice %6 {offsets = [0, 0], sizes = [15, 16], strides = [1, 1]} : vector<16x16xf32> to vector<15x16xf32>
    %16 = tpu.concatenate %14, %15 in 0 : vector<1x16xf32>, vector<15x16xf32> -> vector<16x16xf32>
    %17 = arith.maximumf %13, %16 : vector<16x16xf32>
    %cst_11 = arith.constant 0xFF800000 : f32
    %18 = vector.broadcast %cst_11 : f32 to vector<1x16xf32>
    %19 = vector.extract_strided_slice %6 {offsets = [0, 0], sizes = [15, 16], strides = [1, 1]} : vector<16x16xf32> to vector<15x16xf32>
    %20 = tpu.concatenate %18, %19 in 0 : vector<1x16xf32>, vector<15x16xf32> -> vector<16x16xf32>
    %21 = vector.extract_strided_slice %20 {offsets = [0, 1], sizes = [16, 15], strides = [1, 1]} : vector<16x16xf32> to vector<16x15xf32>
    %cst_12 = arith.constant 0xFF800000 : f32
    %22 = vector.broadcast %cst_12 : f32 to vector<16x1xf32>
    %23 = tpu.concatenate %21, %22 in 1 : vector<16x15xf32>, vector<16x1xf32> -> vector<16x16xf32>
    %24 = arith.maximumf %17, %23 : vector<16x16xf32>
    %cst_13 = arith.constant 0xFF800000 : f32
    %25 = vector.broadcast %cst_13 : f32 to vector<16x1xf32>
    %26 = vector.extract_strided_slice %6 {offsets = [0, 0], sizes = [16, 15], strides = [1, 1]} : vector<16x16xf32> to vector<16x15xf32>
    %27 = tpu.concatenate %25, %26 in 1 : vector<16x1xf32>, vector<16x15xf32> -> vector<16x16xf32>
    %28 = arith.maximumf %24, %27 : vector<16x16xf32>
    %29 = vector.extract_strided_slice %6 {offsets = [0, 1], sizes = [16, 15], strides = [1, 1]} : vector<16x16xf32> to vector<16x15xf32>
    %cst_14 = arith.constant 0xFF800000 : f32
    %30 = vector.broadcast %cst_14 : f32 to vector<16x1xf32>
    %31 = tpu.concatenate %29, %30 in 1 : vector<16x15xf32>, vector<16x1xf32> -> vector<16x16xf32>
    %32 = arith.maximumf %28, %31 : vector<16x16xf32>
    %33 = vector.extract_strided_slice %6 {offsets = [1, 0], sizes = [15, 16], strides = [1, 1]} : vector<16x16xf32> to vector<15x16xf32>
    %cst_15 = arith.constant 0xFF800000 : f32
    %34 = vector.broadcast %cst_15 : f32 to vector<1x16xf32>
    %35 = tpu.concatenate %33, %34 in 0 : vector<15x16xf32>, vector<1x16xf32> -> vector<16x16xf32>
    %cst_16 = arith.constant 0xFF800000 : f32
    %36 = vector.broadcast %cst_16 : f32 to vector<16x1xf32>
    %37 = vector.extract_strided_slice %35 {offsets = [0, 0], sizes = [16, 15], strides = [1, 1]} : vector<16x16xf32> to vector<16x15xf32>
    %38 = tpu.concatenate %36, %37 in 1 : vector<16x1xf32>, vector<16x15xf32> -> vector<16x16xf32>
    %39 = arith.maximumf %32, %38 : vector<16x16xf32>
    %40 = vector.extract_strided_slice %6 {offsets = [1, 0], sizes = [15, 16], strides = [1, 1]} : vector<16x16xf32> to vector<15x16xf32>
    %cst_17 = arith.constant 0xFF800000 : f32
    %41 = vector.broadcast %cst_17 : f32 to vector<1x16xf32>
    %42 = tpu.concatenate %40, %41 in 0 : vector<15x16xf32>, vector<1x16xf32> -> vector<16x16xf32>
    %43 = arith.maximumf %39, %42 : vector<16x16xf32>
    %44 = vector.extract_strided_slice %6 {offsets = [1, 0], sizes = [15, 16], strides = [1, 1]} : vector<16x16xf32> to vector<15x16xf32>
    %cst_18 = arith.constant 0xFF800000 : f32
    %45 = vector.broadcast %cst_18 : f32 to vector<1x16xf32>
    %46 = tpu.concatenate %44, %45 in 0 : vector<15x16xf32>, vector<1x16xf32> -> vector<16x16xf32>
    %47 = vector.extract_strided_slice %46 {offsets = [0, 1], sizes = [16, 15], strides = [1, 1]} : vector<16x16xf32> to vector<16x15xf32>
    %cst_19 = arith.constant 0xFF800000 : f32
    %48 = vector.broadcast %cst_19 : f32 to vector<16x1xf32>
    %49 = tpu.concatenate %47, %48 in 1 : vector<16x15xf32>, vector<16x1xf32> -> vector<16x16xf32>
    %50 = arith.maximumf %43, %49 : vector<16x16xf32>
    %51 = arith.subf %6, %50 : vector<16x16xf32>
    %52 = math.absf %51 : vector<16x16xf32>
    %53 = vector.shape_cast %52 : vector<16x16xf32> to vector<1x1x16x16xf32>
    %c0_20 = arith.constant 0 : index
    %c0_21 = arith.constant 0 : index
    %c0_22 = arith.constant 0 : index
    %c0_23 = arith.constant 0 : index
    %54 = vector.load %arg6[%c0_20, %c0_21, %c0_22, %c0_23] : memref<1x1x16x16xf32, #tpu.memory_space<vmem>>, vector<1x1x16x16xf32>
    tpu.vector_store %arg6[%c0_20, %c0_21, %c0_22, %c0_23], %53 {strides = array<i32>} : memref<1x1x16x16xf32, #tpu.memory_space<vmem>>, vector<1x1x16x16xf32>,
    %55 = arith.addf %6, %52 : vector<16x16xf32>
    %56 = vector.shape_cast %55 : vector<16x16xf32> to vector<1x1x16x16xf32>
    %c0_24 = arith.constant 0 : index
    %c0_25 = arith.constant 0 : index
    %c0_26 = arith.constant 0 : index
    %c0_27 = arith.constant 0 : index
    %57 = vector.load %arg5[%c0_24, %c0_25, %c0_26, %c0_27] : memref<1x1x16x16xf32, #tpu.memory_space<vmem>>, vector<1x1x16x16xf32>
    tpu.vector_store %arg5[%c0_24, %c0_25, %c0_26, %c0_27], %56 {strides = array<i32>} : memref<1x1x16x16xf32, #tpu.memory_space<vmem>>, vector<1x1x16x16xf32>,
    return
  }
  func.func @transform_0(%arg0: i32, %arg1: i32) -> (i32, i32) {
    %c0_i32 = arith.constant 0 : i32
    %c0_i32_0 = arith.constant 0 : i32
    %c0_i32_1 = arith.constant 0 : i32
    return %c0_i32, %c0_i32_0 : i32, i32
  }
  func.func @transform_1(%arg0: i32, %arg1: i32) -> (i32, i32) {
    %c0_i32 = arith.constant 0 : i32
    %c0_i32_0 = arith.constant 0 : i32
    %c0_i32_1 = arith.constant 0 : i32
    return %c0_i32, %c0_i32_0 : i32, i32
  }
  func.func @transform_2(%arg0: i32, %arg1: i32) -> (i32, i32, i32, i32) {
    %c0_i32 = arith.constant 0 : i32
    %c0_i32_0 = arith.constant 0 : i32
    %c0_i32_1 = arith.constant 0 : i32
    return %arg0, %arg1, %c0_i32, %c0_i32_0 : i32, i32, i32, i32
  }
  func.func @transform_3(%arg0: i32, %arg1: i32) -> (i32, i32, i32, i32) {
    %c0_i32 = arith.constant 0 : i32
    %c0_i32_0 = arith.constant 0 : i32
    %c0_i32_1 = arith.constant 0 : i32
    return %arg0, %arg1, %c0_i32, %c0_i32_0 : i32, i32, i32, i32
  }
  func.func @transform_4(%arg0: i32, %arg1: i32) -> (i32, i32, i32, i32) {
    %c0_i32 = arith.constant 0 : i32
    %c0_i32_0 = arith.constant 0 : i32
    %c0_i32_1 = arith.constant 0 : i32
    return %arg0, %arg1, %c0_i32, %c0_i32_0 : i32, i32, i32, i32
  }
}

module attributes {stable_mosaic.version = 11 : i64} {
  func.func @_conv1x1_cf_kernel(%arg0: i32, %arg1: i32, %arg2: memref<1x3x256xf32, #tpu.memory_space<vmem>>, %arg3: memref<8x3xf32, #tpu.memory_space<vmem>>, %arg4: memref<8x1xf32, #tpu.memory_space<vmem>>, %arg5: memref<1x8x256xf32, #tpu.memory_space<vmem>>) attributes {dimension_semantics = [#tpu.dimension_semantics<parallel>, #tpu.dimension_semantics<parallel>], iteration_bounds = array<i64: 2, 1>, scalar_prefetch = 0 : i64, scratch_operands = 0 : i64, tpu.core_type = #tpu.core_type<tc>, window_params = [{transform_indices = @transform_0, window_bounds = array<i64: 1, 3, 256>}, {pipeline_mode = #tpu.pipeline_mode<synchronous>, transform_indices = @transform_1, window_bounds = array<i64: 8, 3>}, {pipeline_mode = #tpu.pipeline_mode<synchronous>, transform_indices = @transform_2, window_bounds = array<i64: 8, 1>}, {transform_indices = @transform_3, window_bounds = array<i64: 1, 8, 256>}]} {
    %c0 = arith.constant 0 : index
    %c0_0 = arith.constant 0 : index
    %c0_1 = arith.constant 0 : index
    %0 = vector.load %arg2[%c0, %c0_0, %c0_1] : memref<1x3x256xf32, #tpu.memory_space<vmem>>, vector<1x3x256xf32>
    %1 = vector.shape_cast %0 : vector<1x3x256xf32> to vector<3x256xf32>
    %c0_2 = arith.constant 0 : index
    %c0_3 = arith.constant 0 : index
    %2 = vector.load %arg3[%c0_2, %c0_3] : memref<8x3xf32, #tpu.memory_space<vmem>>, vector<8x3xf32>
    %c0_4 = arith.constant 0 : index
    %c0_5 = arith.constant 0 : index
    %3 = vector.load %arg4[%c0_4, %c0_5] : memref<8x1xf32, #tpu.memory_space<vmem>>, vector<8x1xf32>
    %4 = vector.shape_cast %3 : vector<8x1xf32> to vector<8x1xf32>
    %5 = vector.broadcast %4 : vector<8x1xf32> to vector<8x256xf32>
    %6 = vector.extract_strided_slice %2 {offsets = [0, 0], sizes = [8, 1], strides = [1, 1]} : vector<8x3xf32> to vector<8x1xf32>
    %7 = vector.extract_strided_slice %1 {offsets = [0, 0], sizes = [1, 256], strides = [1, 1]} : vector<3x256xf32> to vector<1x256xf32>
    %8 = vector.broadcast %6 : vector<8x1xf32> to vector<8x256xf32>
    %9 = vector.broadcast %7 : vector<1x256xf32> to vector<8x256xf32>
    %10 = arith.mulf %8, %9 : vector<8x256xf32>
    %11 = arith.addf %5, %10 : vector<8x256xf32>
    %12 = vector.extract_strided_slice %2 {offsets = [0, 1], sizes = [8, 1], strides = [1, 1]} : vector<8x3xf32> to vector<8x1xf32>
    %13 = vector.extract_strided_slice %1 {offsets = [1, 0], sizes = [1, 256], strides = [1, 1]} : vector<3x256xf32> to vector<1x256xf32>
    %14 = vector.broadcast %12 : vector<8x1xf32> to vector<8x256xf32>
    %15 = vector.broadcast %13 : vector<1x256xf32> to vector<8x256xf32>
    %16 = arith.mulf %14, %15 : vector<8x256xf32>
    %17 = arith.addf %11, %16 : vector<8x256xf32>
    %18 = vector.extract_strided_slice %2 {offsets = [0, 2], sizes = [8, 1], strides = [1, 1]} : vector<8x3xf32> to vector<8x1xf32>
    %19 = vector.extract_strided_slice %1 {offsets = [2, 0], sizes = [1, 256], strides = [1, 1]} : vector<3x256xf32> to vector<1x256xf32>
    %20 = vector.broadcast %18 : vector<8x1xf32> to vector<8x256xf32>
    %21 = vector.broadcast %19 : vector<1x256xf32> to vector<8x256xf32>
    %22 = arith.mulf %20, %21 : vector<8x256xf32>
    %23 = arith.addf %17, %22 : vector<8x256xf32>
    %24 = vector.shape_cast %23 : vector<8x256xf32> to vector<1x8x256xf32>
    %c0_6 = arith.constant 0 : index
    %c0_7 = arith.constant 0 : index
    %c0_8 = arith.constant 0 : index
    %25 = vector.load %arg5[%c0_6, %c0_7, %c0_8] : memref<1x8x256xf32, #tpu.memory_space<vmem>>, vector<1x8x256xf32>
    tpu.vector_store %arg5[%c0_6, %c0_7, %c0_8], %24 {strides = array<i32>} : memref<1x8x256xf32, #tpu.memory_space<vmem>>, vector<1x8x256xf32>,
    return
  }
  func.func @transform_0(%arg0: i32, %arg1: i32) -> (i32, i32, i32) {
    %c0_i32 = arith.constant 0 : i32
    %c0_i32_0 = arith.constant 0 : i32
    return %arg0, %c0_i32, %arg1 : i32, i32, i32
  }
  func.func @transform_1(%arg0: i32, %arg1: i32) -> (i32, i32) {
    %c0_i32 = arith.constant 0 : i32
    %c0_i32_0 = arith.constant 0 : i32
    %c0_i32_1 = arith.constant 0 : i32
    return %c0_i32, %c0_i32_0 : i32, i32
  }
  func.func @transform_2(%arg0: i32, %arg1: i32) -> (i32, i32) {
    %c0_i32 = arith.constant 0 : i32
    %c0_i32_0 = arith.constant 0 : i32
    %c0_i32_1 = arith.constant 0 : i32
    return %c0_i32, %c0_i32_0 : i32, i32
  }
  func.func @transform_3(%arg0: i32, %arg1: i32) -> (i32, i32, i32) {
    %c0_i32 = arith.constant 0 : i32
    %c0_i32_0 = arith.constant 0 : i32
    return %arg0, %c0_i32, %arg1 : i32, i32, i32
  }
}

module attributes {stable_mosaic.version = 11 : i64} {
  func.func @_resize_rows_kernel(%arg0: i32, %arg1: i32, %arg2: i32, %arg3: memref<16x4xf32, #tpu.memory_space<vmem>>, %arg4: memref<4x16xf32, #tpu.memory_space<vmem>>, %arg5: memref<1x1x4x4xbf16, #tpu.memory_space<vmem>>, %arg6: memref<1x1x16x16xf32, #tpu.memory_space<vmem>>) attributes {dimension_semantics = [#tpu.dimension_semantics<parallel>, #tpu.dimension_semantics<parallel>, #tpu.dimension_semantics<parallel>], iteration_bounds = array<i64: 2, 1, 1>, scalar_prefetch = 0 : i64, scratch_operands = 0 : i64, tpu.core_type = #tpu.core_type<tc>, window_params = [{transform_indices = @transform_0, window_bounds = array<i64: 16, 4>}, {pipeline_mode = #tpu.pipeline_mode<synchronous>, transform_indices = @transform_1, window_bounds = array<i64: 4, 16>}, {transform_indices = @transform_2, window_bounds = array<i64: 1, 1, 4, 4>}, {transform_indices = @transform_3, window_bounds = array<i64: 1, 1, 16, 16>}]} {
    %c0 = arith.constant 0 : index
    %c0_0 = arith.constant 0 : index
    %c0_1 = arith.constant 0 : index
    %c0_2 = arith.constant 0 : index
    %0 = vector.load %arg5[%c0, %c0_0, %c0_1, %c0_2] : memref<1x1x4x4xbf16, #tpu.memory_space<vmem>>, vector<1x1x4x4xbf16>
    %1 = vector.shape_cast %0 : vector<1x1x4x4xbf16> to vector<4x4xbf16>
    %2 = arith.extf %1 : vector<4x4xbf16> to vector<4x4xf32>
    %c0_3 = arith.constant 0 : index
    %c0_4 = arith.constant 0 : index
    %3 = vector.load %arg3[%c0_3, %c0_4] : memref<16x4xf32, #tpu.memory_space<vmem>>, vector<16x4xf32>
    %c0_5 = arith.constant 0 : index
    %c0_6 = arith.constant 0 : index
    %4 = vector.load %arg4[%c0_5, %c0_6] : memref<4x16xf32, #tpu.memory_space<vmem>>, vector<4x16xf32>
    %cst = arith.constant dense<0.000000e+00> : vector<16x4xf32>
    %5 = tpu.matmul %3, %2, %cst {dimension_numbers = #tpu.dot_dimension_numbers<[1], [0], [0], [1], [0, 0, 1, 1], [], []>} : vector<16x4xf32>, vector<4x4xf32>, vector<16x4xf32> -> vector<16x4xf32>
    %cst_7 = arith.constant dense<0.000000e+00> : vector<16x16xf32>
    %6 = tpu.matmul %5, %4, %cst_7 {dimension_numbers = #tpu.dot_dimension_numbers<[1], [0], [0], [1], [0, 0, 1, 1], [], []>} : vector<16x4xf32>, vector<4x16xf32>, vector<16x16xf32> -> vector<16x16xf32>
    %7 = vector.shape_cast %6 : vector<16x16xf32> to vector<1x1x16x16xf32>
    %c0_8 = arith.constant 0 : index
    %c0_9 = arith.constant 0 : index
    %c0_10 = arith.constant 0 : index
    %c0_11 = arith.constant 0 : index
    %8 = vector.load %arg6[%c0_8, %c0_9, %c0_10, %c0_11] : memref<1x1x16x16xf32, #tpu.memory_space<vmem>>, vector<1x1x16x16xf32>
    tpu.vector_store %arg6[%c0_8, %c0_9, %c0_10, %c0_11], %7 {strides = array<i32>} : memref<1x1x16x16xf32, #tpu.memory_space<vmem>>, vector<1x1x16x16xf32>,
    return
  }
  func.func @transform_0(%arg0: i32, %arg1: i32, %arg2: i32) -> (i32, i32) {
    %c0_i32 = arith.constant 0 : i32
    %c0_i32_0 = arith.constant 0 : i32
    return %arg2, %c0_i32 : i32, i32
  }
  func.func @transform_1(%arg0: i32, %arg1: i32, %arg2: i32) -> (i32, i32) {
    %c0_i32 = arith.constant 0 : i32
    %c0_i32_0 = arith.constant 0 : i32
    %c0_i32_1 = arith.constant 0 : i32
    return %c0_i32, %c0_i32_0 : i32, i32
  }
  func.func @transform_2(%arg0: i32, %arg1: i32, %arg2: i32) -> (i32, i32, i32, i32) {
    %c21_i32 = arith.constant 21 : i32
    %0 = arith.addi %arg1, %c21_i32 : i32
    %c0_i32 = arith.constant 0 : i32
    %c0_i32_0 = arith.constant 0 : i32
    %c0_i32_1 = arith.constant 0 : i32
    return %arg0, %0, %c0_i32, %c0_i32_0 : i32, i32, i32, i32
  }
  func.func @transform_3(%arg0: i32, %arg1: i32, %arg2: i32) -> (i32, i32, i32, i32) {
    %c0_i32 = arith.constant 0 : i32
    %c0_i32_0 = arith.constant 0 : i32
    return %arg0, %arg1, %arg2, %c0_i32 : i32, i32, i32, i32
  }
}

</mosaic_0001>

<bundles_post_ra>
// kernel: deeplab_forward.11
= control target key start
LH: loop header
LB: loop body
LE: loop exit
PB: predicated region body
PF: predicated region fallthrough
CT: control target
= control target key end

     0   :  { %s685_s12 = smov 0   ;;  %s687_s13 = smov 0   ;;  %s766_s0 = inlined_call_operand.vmem [shape: bf16[2,256,16], index: 0, kind: input, shape index: {}]   ;;  %s767_s1 = inlined_call_operand.vmem [shape: bf16[22,256], index: 1, kind: input, shape index: {}]   ;;  %s768_s2 = inlined_call_operand.vmem [shape: f32[22,1], index: 2, kind: input, shape index: {}]   ;;  %s769_s3 = inlined_call_operand.vmem [shape: bf16[2,22,16], index: 3, kind: output, shape index: {}]  }
   0x1   :  { %s689_s14 = smov 0  }
   0x2 LB: > { %s25_s15 = sadd.s32 1, %s658_s13  ;;  %p499_p0 = scmp.ge.s32.totalorder %s662_s14, 1  ;;  %s662_s14 = sphi %s689_s14, %s13_s14   ;;  %s658_s13 = sphi %s687_s13, %s771_s13   ;;  %s654_s12 = sphi %s685_s12, %s770_s12  }
   0x3   : > { %p27_p1 = scmp.ge.s32.totalorder %s25_s15, 2  ;;  %p156_p2 = scmp.lt.s32.totalorder %s662_s14, 3 }
   0x5   : > { %s773_s15 = smov (%p27_p1, %s25_s15), 0  ;;  %p157_p3 = pnand %p499_p0, %p156_p2 }
   0x6   : > { %p186_p4 = scmp.lt.s32.totalorder (!%p157_p3), %s654_s12, 1 }
   0x7   : > { %160 = sbr.rel (%p157_p3) target bundleno = 188 (0xbc), region = 32 }
   0xc   : > { %s775_s12 = smov (!%p186_p4, %s654_s12), 1  ;;  %v664_v4 = vmov 0   ;;  %v237_v5 = vld [vmem:[%s768_s2] sm:$0xff]  ;;  %v239_v7 = vld [vmem:[%s768_s2 + $0x10] sm:$0x3f]  ;;  %v238_v11 = vld [vmem:[%s768_s2 + $0x8] sm:$0xff] }
   0xd   : > { %s577_s16 = sshll.u32 %s775_s12, 7  ;;  %638 = vset.pattern.permute.xlu0 %v664_v4  ;;  %639 = vset.pattern.permute.xlu1 %v664_v4  ;;  %v236_v17 = vld [vmem:[%s767_s1 + $0x10] sm:$0x77]  ;;  %v505_v21 = vld [vmem:[%s767_s1] sm:$0xf]  ;;  %s612_s9 = smul.u32 12, %s775_s12 }
   0xe   : > { %s709_s19 = scalar_lea.vmem %s766_s0, %s577_s16  ;;  %242 = vperm.xlu0 %638, %v237_v5   ;;  %252 = vperm.xlu1 %639, %v239_v7   ;;  %v262_v19 = vunpack.c.l.b16 %v236_v17  ;;  %v595_v22 = vld [vmem:[%s767_s1 + $0x4] sm:$0xf0]  ;;  %v263_v23 = vunpack.c.h.b16 %v236_v17  ;;  %v594_v25 = vld [vmem:[%s767_s1 + $0x4] sm:$0xf]  ;;  %v507_v26 = vld [vmem:[%s767_s1 + $0x8] sm:$0xf0] }
   0xf   : > { %v585_v0 = vld [vmem:[%s709_s19 + $0x38] sm:$0xff]  ;;  %v584_v2 = vld [vmem:[%s709_s19 + $0x30] sm:$0xff]  ;;  %v583_v6 = vld [vmem:[%s709_s19 + $0x28] sm:$0xff]  ;;  %v506_v27 = vor.u32 %v595_v22, %v505_v21  ;;  %v510_v29 = vor.u32 %v594_v25, %v507_v26  ;;  %s201_s16 = scalar_lea.vmem %s769_s3, %s612_s9  ;;  %vm407_vm0 = vcmask 125952   ;;  %vm410_vm1 = vcmask 124928  }
  0x10   : > { %v593_v1 = vld [vmem:[%s709_s19 + $0x78] sm:$0xff]  ;;  %368 = vmatpush.bf16.msra.mxu0 %v585_v0  ;;  %596 = vmatpush.bf16.msra.mxu2 %v585_v0  ;;  %v592_v3 = vld [vmem:[%s709_s19 + $0x70] sm:$0xff]  ;;  %v591_v8 = vld [vmem:[%s709_s19 + $0x68] sm:$0xff]  ;;  %v266_v28 = vpack.c.b16 %v262_v19, %v262_v19  ;;  %v267_v30 = vpack.c.b16 %v263_v23, %v263_v23 }
  0x11   : > { %386 = vmatpush.bf16.msra.mxu1 %v593_v1  ;;  %604 = vmatpush.bf16.msra.mxu3 %v593_v1  ;;  %v582_v9 = vld [vmem:[%s709_s19 + $0x20] sm:$0xff]  ;;  %v581_v12 = vld [vmem:[%s709_s19 + $0x18] sm:$0xff]  ;;  %v580_v14 = vld [vmem:[%s709_s19 + $0x10] sm:$0xff] }
  0x12   : > { %v590_v10 = vld [vmem:[%s709_s19 + $0x60] sm:$0xff]  ;;  %v589_v13 = vld [vmem:[%s709_s19 + $0x58] sm:$0xff]  ;;  %v588_v15 = vld [vmem:[%s709_s19 + $0x50] sm:$0xff] }
  0x13   : > { %v579_v16 = vld [vmem:[%s709_s19 + $0x8] sm:$0xff]  ;;  %v578_v20 = vld [vmem:[%s709_s19] sm:$0xff] }
  0x14   : > { %369 = vmatpush.bf16.msra.mxu0 %v584_v2  ;;  %597 = vmatpush.bf16.msra.mxu2 %v584_v2  ;;  %v587_v18 = vld [vmem:[%s709_s19 + $0x48] sm:$0xff]  ;;  %v586_v24 = vld [vmem:[%s709_s19 + $0x40] sm:$0xff] }
  0x15   : > { %387 = vmatpush.bf16.msra.mxu1 %v592_v3  ;;  %605 = vmatpush.bf16.msra.mxu3 %v592_v3 }
  0x16   : > { %247 = vperm.xlu0 %638, %v238_v11  }
  0x18   : > { %370 = vmatpush.bf16.msra.mxu0 %v583_v6  ;;  %598 = vmatpush.bf16.msra.mxu2 %v583_v6 }
  0x19   : > { %388 = vmatpush.bf16.msra.mxu1 %v591_v8  ;;  %606 = vmatpush.bf16.msra.mxu3 %v591_v8 }
  0x1c   : > { %371 = vmatpush.bf16.msra.mxu0 %v582_v9  ;;  %599 = vmatpush.bf16.msra.mxu2 %v582_v9 }
  0x1d   : > { %389 = vmatpush.bf16.msra.mxu1 %v590_v10  ;;  %607 = vmatpush.bf16.msra.mxu3 %v590_v10 }
  0x20   : > { %372 = vmatpush.bf16.msra.mxu0 %v581_v12  ;;  %600 = vmatpush.bf16.msra.mxu2 %v581_v12 }
  0x21   : > { %390 = vmatpush.bf16.msra.mxu1 %v589_v13  ;;  %608 = vmatpush.bf16.msra.mxu3 %v589_v13 }
  0x24   : > { %373 = vmatpush.bf16.msra.mxu0 %v580_v14  ;;  %601 = vmatpush.bf16.msra.mxu2 %v580_v14 }
  0x25   : > { %391 = vmatpush.bf16.msra.mxu1 %v588_v15  ;;  %609 = vmatpush.bf16.msra.mxu3 %v588_v15 }
  0x28   : > { %374 = vmatpush.bf16.msra.mxu0 %v579_v16  ;;  %602 = vmatpush.bf16.msra.mxu2 %v579_v16 }
  0x29   : > { %392 = vmatpush.bf16.msra.mxu1 %v587_v18  ;;  %610 = vmatpush.bf16.msra.mxu3 %v587_v18 }
  0x2c   : > { %375 = vmatpush.bf16.msra.mxu0 %v578_v20  ;;  %603 = vmatpush.bf16.msra.mxu2 %v578_v20 }
  0x2d   : > { %393 = vmatpush.bf16.msra.mxu1 %v586_v24  ;;  %611 = vmatpush.bf16.msra.mxu3 %v586_v24 }
  0x2f   : > { %376 = vmatmul.bf16.vlgmr.msra.gmra.mxu0 %v506_v27  ;;  %381 = vmatmul.bf16.vlgmr.msra.gmra.mxu2 %v266_v28 }
  0x30   : > { %394 = vmatmul.bf16.vlgmr.msra.gmra.mxu1 %v510_v29  ;;  %399 = vmatmul.bf16.vlgmr.msra.gmra.mxu3 %v267_v30 }
  0x80   : > { %v243_v31 = vpop.permute.xlu0 %242  ;;  %v253_v36 = vpop.permute.xlu1 %252 }
  0x88   : > { %v248_v41 = vpop.permute.xlu0 %247 }
  0xac   : > { %v377_v32 = vpop.f32.mrf.mxu0 }
  0xad   : > { %v378_v33 = vadd.f32 %v377_v32, %v243_v31  ;;  %v395_v34 = vpop.f32.mrf.mxu1 }
  0xaf   : > { %v396_v35 = vadd.f32 %v395_v34, %v378_v33 }
  0xb1   : > { %v404_v37 = vpack.c.bf16 %v396_v35, %v396_v35 }
  0xb2   : > { %v382_v38 = vpop.f32.mrf.mxu2 }
  0xb3   : > { %408 = vst.msk [vmem:[%s201_s16] sm:$0xf] %vm407_vm0, %v404_v37  ;;  %v383_v39 = vadd.f32 %v382_v38, %v253_v36  ;;  %v400_v40 = vpop.f32.mrf.mxu3 }
  0xb4   : > { %v379_v42 = vpop.f32.mrf.mxu0 }
  0xb5   : > { %v401_v43 = vadd.f32 %v400_v40, %v383_v39  ;;  %v380_v44 = vadd.f32 %v379_v42, %v248_v41  ;;  %v397_v45 = vpop.f32.mrf.mxu1 }
  0xb7   : > { %v406_v46 = vpack.c.bf16 %v401_v43, %v401_v43  ;;  %v398_v47 = vadd.f32 %v397_v45, %v380_v44 }
  0xb9   : > { %411 = vst.msk [vmem:[%s201_s16 + $0x8] sm:$0x7] %vm410_vm1, %v406_v46  ;;  %v405_v48 = vpack.c.bf16 %v398_v47, %v398_v47 }
  0xba   : > { %v384_v49 = vpop.f32.mrf.mxu2 }
  0xbb   : > { %409 = vst.msk [vmem:[%s201_s16 + $0x4] sm:$0xf] %vm407_vm0, %v405_v48  ;;  %v402_v50 = vpop.f32.mrf.mxu3 }
  0xbc PF: > { %s13_s14 = sadd.s32 1, %s662_s14   ;;  %s770_s12 = smov %s658_s13 }
  0xbd   : > { %p10_p5 = scmp.ge.s32.totalorder %s13_s14, 4   ;;  %s771_s13 = smov %s773_s15 }
  0xbf   :  { %12 = sbr.rel (!%p10_p5) target bundleno = 2 (0x2), region = 62 }

// kernel: deeplab_forward.9
= control target key start
LH: loop header
LB: loop body
LE: loop exit
PB: predicated region body
PF: predicated region fallthrough
CT: control target
= control target key end

     0   :  { %s1274_s12 = smov 0   ;;  %s1276_s13 = smov 0   ;;  %s2110_s0 = inlined_call_operand.vmem [shape: f32[2,3,16], index: 0, kind: input, shape index: {}]   ;;  %s2111_s1 = inlined_call_operand.vmem [shape: f32[256,3], index: 1, kind: input, shape index: {}]   ;;  %s2112_s2 = inlined_call_operand.vmem [shape: f32[256,1], index: 2, kind: input, shape index: {}]   ;;  %s2113_s3 = inlined_call_operand.vmem [shape: bf16[2,256,16], index: 3, kind: output, shape index: {}]  }
   0x1   :  { %s1278_s14 = smov 0  }
   0x2 LB: > { %s25_s15 = sadd.s32 1, %s1245_s13  ;;  %p1184_p0 = scmp.ge.s32.totalorder %s1249_s14, 1  ;;  %s1249_s14 = sphi %s1278_s14, %s13_s14   ;;  %s1245_s13 = sphi %s1276_s13, %s2173_s13   ;;  %s1241_s12 = sphi %s1274_s12, %s2172_s12  }
   0x3   : > { %p27_p1 = scmp.ge.s32.totalorder %s25_s15, 2  ;;  %p155_p2 = scmp.lt.s32.totalorder %s1249_s14, 3 }
   0x5   : > { %s2175_s15 = smov (%p27_p1, %s25_s15), 0  ;;  %p156_p3 = pnand %p1184_p0, %p155_p2 }
   0x7   : > { %159 = sbr.rel (%p156_p3) target bundleno = 476 (0x1dc), region = 32 }
   0xc   : > { %v236_v0 = vld [vmem:[%s2112_s2 + $0x20] sm:$0xff]  ;;  %v234_v1 = vld [vmem:[%s2112_s2 + $0x10] sm:$0xff]  ;;  %v1251_v3 = vmov 0   ;;  %v237_v4 = vld [vmem:[%s2112_s2 + $0x28] sm:$0xff]  ;;  %p184_p4 = scmp.lt.s32.totalorder %s1241_s12, 1  ;;  %vm1067_vm0 = vcmask 125952  }
   0xd   : > { %v232_v2 = vld [vmem:[%s2112_s2] sm:$0xff]  ;;  %1220 = vset.pattern.permute.xlu2 %v1251_v3  ;;  %1219 = vset.pattern.permute.xlu1 %v1251_v3  ;;  %v235_v5 = vld [vmem:[%s2112_s2 + $0x18] sm:$0xff]  ;;  %v233_v6 = vld [vmem:[%s2112_s2 + $0x8] sm:$0xff] }
   0xe   : > { %1218 = vset.pattern.permute.xlu0 %v1251_v3  ;;  %286 = vperm.xlu2 %1220, %v236_v0   ;;  %v240_v7 = vld [vmem:[%s2112_s2 + $0x40] sm:$0xff]  ;;  %v239_v8 = vld [vmem:[%s2112_s2 + $0x38] sm:$0xff]  ;;  %v238_v9 = vld [vmem:[%s2112_s2 + $0x30] sm:$0xff]  ;;  %s2177_s12 = smov (!%p184_p4, %s1241_s12), 1 }
   0xf   : > { %276 = vperm.xlu1 %1219, %v234_v1   ;;  %266 = vperm.xlu0 %1218, %v232_v2   ;;  %v243_v10 = vld [vmem:[%s2112_s2 + $0x58] sm:$0xff]  ;;  %v242_v11 = vld [vmem:[%s2112_s2 + $0x50] sm:$0xff]  ;;  %v241_v12 = vld [vmem:[%s2112_s2 + $0x48] sm:$0xff]  ;;  %s1185_s27 = sshll.u32 %s2177_s12, 2  ;;  %s1190_s6 = sshll.u32 %s2177_s12, 7 }
  0x10   : > { %v246_v13 = vld [vmem:[%s2112_s2 + $0x70] sm:$0xff]  ;;  %v245_v14 = vld [vmem:[%s2112_s2 + $0x68] sm:$0xff]  ;;  %v244_v15 = vld [vmem:[%s2112_s2 + $0x60] sm:$0xff]  ;;  %s190_s30 = scalar_lea.vmem %s2110_s0, %s1185_s27  ;;  %s1953_s9 = scalar_lea.vmem %s2113_s3, %s1190_s6 }
  0x11   : > { %v249_v16 = vld [vmem:[%s2112_s2 + $0x88] sm:$0xff]  ;;  %v248_v17 = vld [vmem:[%s2112_s2 + $0x80] sm:$0xff]  ;;  %v247_v18 = vld [vmem:[%s2112_s2 + $0x78] sm:$0xff] }
  0x12   : > { %v252_v19 = vld [vmem:[%s2112_s2 + $0xa0] sm:$0xff]  ;;  %v251_v20 = vld [vmem:[%s2112_s2 + $0x98] sm:$0xff]  ;;  %v250_v21 = vld [vmem:[%s2112_s2 + $0x90] sm:$0xff] }
  0x13   : > { %v255_v22 = vld [vmem:[%s2112_s2 + $0xb8] sm:$0xff]  ;;  %v254_v23 = vld [vmem:[%s2112_s2 + $0xb0] sm:$0xff]  ;;  %v253_v24 = vld [vmem:[%s2112_s2 + $0xa8] sm:$0xff] }
  0x14   : > { %v258_v25 = vld [vmem:[%s2112_s2 + $0xd0] sm:$0xff]  ;;  %v257_v26 = vld [vmem:[%s2112_s2 + $0xc8] sm:$0xff]  ;;  %v256_v27 = vld [vmem:[%s2112_s2 + $0xc0] sm:$0xff] }
  0x15   : > { %v261_v28 = vld [vmem:[%s2112_s2 + $0xe8] sm:$0xff]  ;;  %v260_v29 = vld [vmem:[%s2112_s2 + $0xe0] sm:$0xff]  ;;  %v259_v30 = vld [vmem:[%s2112_s2 + $0xd8] sm:$0xff] }
  0x16   : > { %291 = vperm.xlu2 %1220, %v237_v4   ;;  %v1387_v31 = vld [vmem:[%s2111_s1] sm:$0xff]  ;;  %v263_v32 = vld [vmem:[%s2112_s2 + $0xf8] sm:$0xff]  ;;  %v262_v33 = vld [vmem:[%s2112_s2 + $0xf0] sm:$0xff] }
  0x17   : > { %281 = vperm.xlu1 %1219, %v235_v5   ;;  %271 = vperm.xlu0 %1218, %v233_v6   ;;  %v1399_v34 = vld [vmem:[%s2111_s1 + $0x18] sm:$0xff]  ;;  %v1404_v35 = vld [vmem:[%s2111_s1 + $0x10] sm:$0xff]  ;;  %v1409_v36 = vld [vmem:[%s2111_s1 + $0x8] sm:$0xff] }
  0x18   : > { %v1419_v38 = vld [vmem:[%s2111_s1 + $0x30] sm:$0xff]  ;;  %v1424_v39 = vld [vmem:[%s2111_s1 + $0x28] sm:$0xff]  ;;  %v1429_v40 = vld [vmem:[%s2111_s1 + $0x20] sm:$0xff] }
  0x19   : > { %v1439_v42 = vld [vmem:[%s2111_s1 + $0x48] sm:$0xff]  ;;  %v1444_v43 = vld [vmem:[%s2111_s1 + $0x40] sm:$0xff]  ;;  %v1449_v44 = vld [vmem:[%s2111_s1 + $0x38] sm:$0xff] }
  0x1a   : > { %v1459_v46 = vld [vmem:[%s2111_s1 + $0x60] sm:$0xff]  ;;  %v1464_v47 = vld [vmem:[%s2111_s1 + $0x58] sm:$0xff]  ;;  %v1469_v48 = vld [vmem:[%s2111_s1 + $0x50] sm:$0xff] }
  0x1b   : > { %v1483_v52 = vld [vmem:[%s2111_s1 + $0x78] sm:$0xff]  ;;  %v1488_v53 = vld [vmem:[%s2111_s1 + $0x70] sm:$0xff]  ;;  %v1493_v54 = vld [vmem:[%s2111_s1 + $0x68] sm:$0xff] }
  0x1c   : > { %v1507_v58 = vld [vmem:[%s2111_s1 + $0x90] sm:$0xff]  ;;  %v1512_v59 = vld [vmem:[%s2111_s1 + $0x88] sm:$0xff]  ;;  %v1517_v60 = vld [vmem:[%s2111_s1 + $0x80] sm:$0xff] }
  0x1d   : > { %v1531_v0 = vld [vmem:[%s2111_s1 + $0xa8] sm:$0xff]  ;;  %v1536_v1 = vld [vmem:[%s2111_s1 + $0xa0] sm:$0xff]  ;;  %v1541_v2 = vld [vmem:[%s2111_s1 + $0x98] sm:$0xff] }
  0x1e   : > { %306 = vperm.xlu2 %1220, %v240_v7   ;;  %2126 = vst [vmem:[#allocation6_spill] sm:$0xff] %v1531_v0  ;;  %v1555_v6 = vld [vmem:[%s2111_s1 + $0xc0] sm:$0xff]  ;;  %v1560_v7 = vld [vmem:[%s2111_s1 + $0xb8] sm:$0xff] }
  0x1f   : > { %301 = vperm.xlu1 %1219, %v239_v8   ;;  %296 = vperm.xlu0 %1218, %v238_v9   ;;  %2127 = vst [vmem:[#allocation7_spill] sm:$0xff] %v1536_v1  ;;  %v1565_v8 = vld [vmem:[%s2111_s1 + $0xb0] sm:$0xff] }
  0x20   : > { %2130 = vst [vmem:[#allocation10_spill] sm:$0xff] %v1555_v6 }
  0x21   : > { %2131 = vst [vmem:[#allocation11_spill] sm:$0xff] %v1560_v7 }
  0x26   : > { %321 = vperm.xlu2 %1220, %v243_v10  }
  0x27   : > { %316 = vperm.xlu1 %1219, %v242_v11   ;;  %311 = vperm.xlu0 %1218, %v241_v12   ;;  %v1579_v12 = vld [vmem:[%s2111_s1 + $0xd8] sm:$0xff] }
  0x28   : > { %2134 = vst [vmem:[#allocation14_spill] sm:$0xff] %v1579_v12 }
  0x2e   : > { %336 = vperm.xlu2 %1220, %v246_v13   ;;  %v1584_v13 = vld [vmem:[%s2111_s1 + $0xd0] sm:$0xff] }
  0x2f   : > { %331 = vperm.xlu1 %1219, %v245_v14   ;;  %326 = vperm.xlu0 %1218, %v244_v15   ;;  %2135 = vst [vmem:[#allocation15_spill] sm:$0xff] %v1584_v13  ;;  %v1589_v14 = vld [vmem:[%s2111_s1 + $0xc8] sm:$0xff] }
  0x36   : > { %351 = vperm.xlu2 %1220, %v249_v16  }
  0x37   : > { %346 = vperm.xlu1 %1219, %v248_v17   ;;  %341 = vperm.xlu0 %1218, %v247_v18   ;;  %v1607_v18 = vld [vmem:[%s2111_s1 + $0xf0] sm:$0xff] }
  0x38   : > { %2138 = vst [vmem:[#allocation18_spill] sm:$0xff] %v1607_v18 }
  0x3e   : > { %366 = vperm.xlu2 %1220, %v252_v19   ;;  %v1612_v19 = vld [vmem:[%s2111_s1 + $0xe8] sm:$0xff] }
  0x3f   : > { %361 = vperm.xlu1 %1219, %v251_v20   ;;  %356 = vperm.xlu0 %1218, %v250_v21   ;;  %v1617_v20 = vld [vmem:[%s2111_s1 + $0xe0] sm:$0xff] }
  0x46   : > { %381 = vperm.xlu2 %1220, %v255_v22  }
  0x47   : > { %376 = vperm.xlu1 %1219, %v254_v23   ;;  %371 = vperm.xlu0 %1218, %v253_v24   ;;  %v1632_v24 = vld [vmem:[%s190_s30] sm:$0x7] }
  0x48   : > { %2141 = vst [vmem:[#allocation21_spill] sm:$0xff] %v1632_v24 }
  0x4e   : > { %396 = vperm.xlu2 %1220, %v258_v25   ;;  %v1637_v25 = vld [vmem:[%s2111_s1 + $0xf8] sm:$0xff] }
  0x4f   : > { %391 = vperm.xlu1 %1219, %v257_v26   ;;  %386 = vperm.xlu0 %1218, %v256_v27   ;;  %v1640_v26 = vperm.slane %v1632_v24, 0  ;;  %v1252_v27 = vmov 1  }
  0x56   : > { %411 = vperm.xlu2 %1220, %v261_v28  }
  0x57   : > { %406 = vperm.xlu1 %1219, %v260_v29   ;;  %401 = vperm.xlu0 %1218, %v259_v30  }
  0x5e   : > { %426 = vperm.xlu2 %1220, %v1387_v31  }
  0x5f   : > { %421 = vperm.xlu1 %1219, %v263_v32   ;;  %416 = vperm.xlu0 %1218, %v262_v33  }
  0x66   : > { %441 = vperm.xlu2 %1220, %v1399_v34  }
  0x67   : > { %436 = vperm.xlu1 %1219, %v1404_v35   ;;  %431 = vperm.xlu0 %1218, %v1409_v36  }
  0x68   : > { %v1414_v37 = vpop.permute.xlu2 %286 }
  0x6e   : > { %456 = vperm.xlu2 %1220, %v1419_v38  }
  0x6f   : > { %451 = vperm.xlu1 %1219, %v1424_v39   ;;  %446 = vperm.xlu0 %1218, %v1429_v40  }
  0x70   : > { %v1434_v41 = vpop.permute.xlu2 %291 }
  0x76   : > { %471 = vperm.xlu2 %1220, %v1439_v42  }
  0x77   : > { %466 = vperm.xlu1 %1219, %v1444_v43   ;;  %461 = vperm.xlu0 %1218, %v1449_v44  }
  0x78   : > { %v1454_v45 = vpop.permute.xlu2 %306 }
  0x79   : > { %2122 = vst [vmem:[#allocation2_spill] sm:$0xff] %v1454_v45 }
  0x7e   : > { %486 = vperm.xlu2 %1220, %v1459_v46  }
  0x7f   : > { %481 = vperm.xlu1 %1219, %v1464_v47   ;;  %476 = vperm.xlu0 %1218, %v1469_v48  }
  0x80   : > { %v1474_v49 = vpop.permute.xlu2 %321 }
  0x81   : > { %2123 = vst [vmem:[#allocation3_spill] sm:$0xff] %v1474_v49  ;;  %v1476_v50 = vpop.permute.xlu1 %276  ;;  %v1478_v51 = vpop.permute.xlu0 %266 }
  0x86   : > { %501 = vperm.xlu2 %1220, %v1483_v52  }
  0x87   : > { %496 = vperm.xlu1 %1219, %v1488_v53   ;;  %491 = vperm.xlu0 %1218, %v1493_v54  }
  0x88   : > { %v1498_v55 = vpop.permute.xlu2 %336 }
  0x89   : > { %2124 = vst [vmem:[#allocation4_spill] sm:$0xff] %v1498_v55  ;;  %v1500_v56 = vpop.permute.xlu1 %281  ;;  %v1502_v57 = vpop.permute.xlu0 %271 }
  0x8e   : > { %516 = vperm.xlu2 %1220, %v1507_v58  }
  0x8f   : > { %511 = vperm.xlu1 %1219, %v1512_v59   ;;  %506 = vperm.xlu0 %1218, %v1517_v60  }
  0x90   : > { %v1522_v61 = vpop.permute.xlu2 %351 }
  0x91   : > { %2125 = vst [vmem:[#allocation5_spill] sm:$0xff] %v1522_v61  ;;  %v1524_v62 = vpop.permute.xlu1 %301  ;;  %v1526_v63 = vpop.permute.xlu0 %296 }
  0x96   : > { %531 = vperm.xlu2 %1220, %v1531_v0  }
  0x97   : > { %526 = vperm.xlu1 %1219, %v1536_v1   ;;  %521 = vperm.xlu0 %1218, %v1541_v2  }
  0x98   : > { %v1546_v3 = vpop.permute.xlu2 %366 }
  0x99   : > { %2128 = vst [vmem:[#allocation8_spill] sm:$0xff] %v1546_v3  ;;  %v1548_v4 = vpop.permute.xlu1 %316  ;;  %v1550_v5 = vpop.permute.xlu0 %311 }
  0x9a   : > { %2129 = vst [vmem:[#allocation9_spill] sm:$0xff] %v1548_v4 }
  0x9e   : > { %546 = vperm.xlu2 %1220, %v1555_v6  }
  0x9f   : > { %541 = vperm.xlu1 %1219, %v1560_v7   ;;  %536 = vperm.xlu0 %1218, %v1565_v8  }
  0xa0   : > { %v1570_v9 = vpop.permute.xlu2 %381 }
  0xa1   : > { %2132 = vst [vmem:[#allocation12_spill] sm:$0xff] %v1570_v9  ;;  %v1572_v10 = vpop.permute.xlu1 %331  ;;  %v1574_v11 = vpop.permute.xlu0 %326 }
  0xa2   : > { %2133 = vst [vmem:[#allocation13_spill] sm:$0xff] %v1572_v10 }
  0xa6   : > { %561 = vperm.xlu2 %1220, %v1579_v12  }
  0xa7   : > { %556 = vperm.xlu1 %1219, %v1584_v13   ;;  %551 = vperm.xlu0 %1218, %v1589_v14  }
  0xa8   : > { %v1595_v15 = vpop.permute.xlu2 %396 }
  0xa9   : > { %2136 = vst [vmem:[#allocation16_spill] sm:$0xff] %v1595_v15  ;;  %v1600_v16 = vpop.permute.xlu1 %346  ;;  %v1602_v17 = vpop.permute.xlu0 %341 }
  0xaa   : > { %2137 = vst [vmem:[#allocation17_spill] sm:$0xff] %v1600_v16 }
  0xae   : > { %576 = vperm.xlu2 %1220, %v1607_v18  }
  0xaf   : > { %571 = vperm.xlu1 %1219, %v1612_v19   ;;  %566 = vperm.xlu0 %1218, %v1617_v20  }
  0xb0   : > { %v1626_v21 = vpop.permute.xlu2 %411 }
  0xb1   : > { %2139 = vst [vmem:[#allocation19_spill] sm:$0xff] %v1626_v21  ;;  %v1628_v22 = vpop.permute.xlu1 %361  ;;  %v1630_v23 = vpop.permute.xlu0 %356 }
  0xb2   : > { %2140 = vst [vmem:[#allocation20_spill] sm:$0xff] %v1628_v22 }
  0xb6   : > { %1222 = vset.pattern.permute.xlu2 %v1252_v27 }
  0xb7   : > { %1221 = vset.pattern.permute.xlu1 %v1252_v27  ;;  %581 = vperm.xlu0 %1218, %v1637_v25  }
  0xb8   : > { %650 = vperm.xlu1 %1221, %v1387_v31   ;;  %654 = vperm.xlu2 %1222, %v1409_v36   ;;  %v427_v28 = vpop.permute.xlu2 %426 }
  0xb9   : > { %v1645_v29 = vpop.permute.xlu1 %376  ;;  %v372_v30 = vpop.permute.xlu0 %371  ;;  %v585_v32 = vmul.f32 %v1640_v26, %v427_v28 }
  0xba   : > { %2142 = vst [vmem:[#allocation22_spill] sm:$0xff] %v1645_v29 }
  0xbb   : > { %v1649_v33 = vadd.f32 %v585_v32, %v1478_v51 }
  0xbf   : > { %1223 = vset.pattern.permute.xlu0 %v1252_v27 }
  0xc0   : > { %658 = vperm.xlu0 %1223, %v1404_v35   ;;  %662 = vperm.xlu1 %1221, %v1399_v34   ;;  %v442_v21 = vpop.permute.xlu2 %441 }
  0xc1   : > { %666 = vperm.xlu2 %1222, %v1429_v40   ;;  %v1654_v15 = vpop.permute.xlu1 %391  ;;  %v387_v9 = vpop.permute.xlu0 %386  ;;  %v588_v3 = vmul.f32 %v1640_v26, %v442_v21 }
  0xc2   : > { %2143 = vst [vmem:[#allocation23_spill] sm:$0xff] %v1654_v15 }
  0xc3   : > { %v1658_v29 = vadd.f32 %v588_v3, %v1500_v56 }
  0xc8   : > { %678 = vperm.xlu0 %1223, %v1449_v44   ;;  %670 = vperm.xlu1 %1221, %v1424_v39   ;;  %v457_v51 = vpop.permute.xlu2 %456 }
  0xc9   : > { %674 = vperm.xlu2 %1222, %v1419_v38   ;;  %v1663_v27 = vpop.permute.xlu1 %406  ;;  %v402_v28 = vpop.permute.xlu0 %401  ;;  %v591_v32 = vmul.f32 %v1640_v26, %v457_v51 }
  0xca   : > { %2144 = vst [vmem:[#allocation24_spill] sm:$0xff] %v1663_v27 }
  0xcb   : > { %v1667_v15 = vadd.f32 %v591_v32, %v1526_v63 }
  0xd0   : > { %690 = vperm.xlu0 %1223, %v1469_v48   ;;  %682 = vperm.xlu1 %1221, %v1444_v43   ;;  %v472_v56 = vpop.permute.xlu2 %471 }
  0xd1   : > { %686 = vperm.xlu2 %1222, %v1439_v42   ;;  %v1672_v3 = vpop.permute.xlu1 %421  ;;  %v417_v21 = vpop.permute.xlu0 %416  ;;  %v594_v22 = vmul.f32 %v1640_v26, %v472_v56 }
  0xd2   : > { %2145 = vst [vmem:[#allocation25_spill] sm:$0xff] %v1672_v3 }
  0xd3   : > { %v1676_v27 = vadd.f32 %v594_v22, %v1550_v5 }
  0xd8   : > { %702 = vperm.xlu0 %1223, %v1493_v54   ;;  %694 = vperm.xlu1 %1221, %v1464_v47   ;;  %v487_v63 = vpop.permute.xlu2 %486 }
  0xd9   : > { %698 = vperm.xlu2 %1222, %v1459_v46   ;;  %v1681_v51 = vpop.permute.xlu1 %436  ;;  %v432_v32 = vpop.permute.xlu0 %431  ;;  %v597_v61 = vmul.f32 %v1640_v26, %v487_v63 }
  0xdb   : > { %v1685_v3 = vadd.f32 %v597_v61, %v1574_v11 }
  0xe0   : > { %714 = vperm.xlu0 %1223, %v1517_v60   ;;  %706 = vperm.xlu1 %1221, %v1488_v53   ;;  %v502_v5 = vpop.permute.xlu2 %501 }
  0xe1   : > { %710 = vperm.xlu2 %1222, %v1483_v52   ;;  %v1690_v22 = vpop.permute.xlu1 %451  ;;  %v447_v56 = vpop.permute.xlu0 %446  ;;  %v600_v16 = vmul.f32 %v1640_v26, %v502_v5 }
  0xe3   : > { %v1694_v55 = vadd.f32 %v600_v16, %v1602_v17 }
  0xe8   : > { %726 = vperm.xlu0 %1223, %v1541_v2   ;;  %718 = vperm.xlu1 %1221, %v1512_v59   ;;  %v517_v61 = vpop.permute.xlu2 %516 }
  0xe9   : > { %722 = vperm.xlu2 %1222, %v1507_v58   ;;  %v1699_v11 = vpop.permute.xlu1 %466  ;;  %v1701_v63 = vpop.permute.xlu0 %461  ;;  %v603_v10 = vmul.f32 %v1640_v26, %v517_v61 }
  0xeb   : > { %v1705_v49 = vadd.f32 %v603_v10, %v1630_v23 }
  0xf0   : > { %738 = vperm.xlu0 %1223, %v1565_v8   ;;  %730 = vperm.xlu1 %1221, %v1536_v1   ;;  %v532_v16 = vpop.permute.xlu2 %531 }
  0xf1   : > { %734 = vperm.xlu2 %1222, %v1531_v0   ;;  %v1710_v17 = vpop.permute.xlu1 %481  ;;  %v1712_v5 = vpop.permute.xlu0 %476  ;;  %v606_v4 = vmul.f32 %v1640_v26, %v532_v16 }
  0xf3   : > { %v1715_v45 = vadd.f32 %v606_v4, %v372_v30 }
  0xf8   : > { %750 = vperm.xlu0 %1223, %v1589_v14   ;;  %742 = vperm.xlu1 %1221, %v1560_v7   ;;  %v547_v10 = vpop.permute.xlu2 %546 }
  0xf9   : > { %746 = vperm.xlu2 %1222, %v1555_v6   ;;  %v1720_v23 = vpop.permute.xlu1 %496  ;;  %v1722_v61 = vpop.permute.xlu0 %491  ;;  %v609_v0 = vmul.f32 %v1640_v26, %v547_v10 }
  0xfb   : > { %v1725_v1 = vadd.f32 %v609_v0, %v387_v9 }
 0x100   : > { %762 = vperm.xlu0 %1223, %v1617_v20   ;;  %754 = vperm.xlu1 %1221, %v1584_v13   ;;  %v562_v4 = vpop.permute.xlu2 %561 }
 0x101   : > { %758 = vperm.xlu2 %1222, %v1579_v12   ;;  %v1730_v30 = vpop.permute.xlu1 %511  ;;  %v1732_v16 = vpop.permute.xlu0 %506  ;;  %v612_v6 = vmul.f32 %v1640_v26, %v562_v4 }
 0x102   : > { %2146 = vst [vmem:[#allocation26_spill] sm:$0xff] %v1730_v30  ;;  %v586_v30 = vmul.f32 %v1640_v26, %v432_v32 }
 0x103   : > { %v1735_v7 = vadd.f32 %v612_v6, %v402_v28  ;;  %v1749_v6 = vperm.slane %v1632_v24, 1  ;;  %v1253_v28 = vmov 2   ;;  %v589_v24 = vmul.f32 %v1640_v26, %v447_v56 }
 0x108   : > { %774 = vperm.xlu0 %1223, %v1637_v25   ;;  %766 = vperm.xlu1 %1221, %v1612_v19   ;;  %v577_v0 = vpop.permute.xlu2 %576 }
 0x109   : > { %770 = vperm.xlu2 %1222, %v1607_v18   ;;  %v1740_v9 = vpop.permute.xlu1 %526  ;;  %v1742_v10 = vpop.permute.xlu0 %521  ;;  %v615_v12 = vmul.f32 %v1640_v26, %v577_v0 }
 0x10b   : > { %v1745_v13 = vadd.f32 %v615_v12, %v417_v21  ;;  %v618_v21 = vadd.f32 %v586_v30, %v1502_v57 }
 0x110   : > { %1226 = vset.pattern.permute.xlu0 %v1253_v28  ;;  %1224 = vset.pattern.permute.xlu1 %v1253_v28 }
 0x111   : > { %1225 = vset.pattern.permute.xlu2 %v1253_v28  ;;  %v1751_v4 = vpop.permute.xlu1 %541  ;;  %851 = vperm.xlu0 %1226, %v1404_v35   ;;  %v1754_v18 = vpop.permute.xlu0 %536 }
 0x112   : > { %843 = vperm.xlu1 %1224, %v1387_v31   ;;  %847 = vperm.xlu2 %1225, %v1409_v36   ;;  %v655_v12 = vpop.permute.xlu2 %654  ;;  %v621_v36 = vadd.f32 %v589_v24, %v1414_v37 }
 0x113   : > { %v779_v32 = vmul.f32 %v1749_v6, %v655_v12 }
 0x115   : > { %v1760_v0 = vadd.f32 %v779_v32, %v618_v21 }
 0x119   : > { %v1763_v28 = vpop.permute.xlu1 %556  ;;  %871 = vperm.xlu0 %1226, %v1449_v44   ;;  %v1766_v35 = vpop.permute.xlu0 %551 }
 0x11a   : > { %855 = vperm.xlu1 %1224, %v1399_v34   ;;  %859 = vperm.xlu2 %1225, %v1429_v40  }
 0x11b   : > { %v667_v31 = vpop.permute.xlu2 %666 }
 0x11c   : > { %v782_v57 = vmul.f32 %v1749_v6, %v667_v31 }
 0x11e   : > { %v1772_v30 = vadd.f32 %v782_v57, %v621_v36 }
 0x121   : > { %v1774_v12 = vpop.permute.xlu1 %571  ;;  %883 = vperm.xlu0 %1226, %v1469_v48   ;;  %v1777_v56 = vpop.permute.xlu0 %566 }
 0x122   : > { %863 = vperm.xlu1 %1224, %v1424_v39   ;;  %867 = vperm.xlu2 %1225, %v1419_v38  }
 0x123   : > { %v675_v34 = vpop.permute.xlu2 %674 }
 0x124   : > { %v784_v40 = vmul.f32 %v1749_v6, %v675_v34 }
 0x126   : > { %v1783_v44 = vadd.f32 %v784_v40, %v1667_v15 }
 0x129   : > { %895 = vperm.xlu0 %1226, %v1493_v54   ;;  %v1786_v37 = vpop.permute.xlu0 %581  ;;  %v587_v54 = vmul.f32 %v1640_v26, %v1681_v51 }
 0x12a   : > { %875 = vperm.xlu1 %1224, %v1444_v43   ;;  %879 = vperm.xlu2 %1225, %v1439_v42   ;;  %v651_v48 = vpop.permute.xlu1 %650 }
 0x12b   : > { %v778_v24 = vmul.f32 %v1749_v6, %v651_v48  ;;  %v687_v39 = vpop.permute.xlu2 %686  ;;  %v619_v32 = vadd.f32 %v587_v54, %v1476_v50  ;;  %v592_v50 = vmul.f32 %v1640_v26, %v1701_v63 }
 0x12c   : > { %v787_v38 = vmul.f32 %v1749_v6, %v687_v39 }
 0x12d   : > { %v1793_v21 = vadd.f32 %v778_v24, %v1649_v33  ;;  %v624_v40 = vadd.f32 %v592_v50, %v1524_v62 }
 0x12e   : > { %v1796_v15 = vadd.f32 %v787_v38, %v1676_v27  ;;  %v2147_v38 = vld [vmem:[#allocation2_spill] sm:$0xff] }
 0x131   : > { %907 = vperm.xlu0 %1226, %v1517_v60  }
 0x132   : > { %887 = vperm.xlu1 %1224, %v1464_v47   ;;  %891 = vperm.xlu2 %1225, %v1459_v46   ;;  %v659_v42 = vpop.permute.xlu0 %658  ;;  %v663_v43 = vpop.permute.xlu1 %662  ;;  %v590_v46 = vmul.f32 %v1640_v26, %v1690_v22 }
 0x133   : > { %v780_v31 = vmul.f32 %v1749_v6, %v659_v42  ;;  %v781_v33 = vmul.f32 %v1749_v6, %v663_v43  ;;  %v699_v36 = vpop.permute.xlu2 %698  ;;  %v2148_v42 = vld [vmem:[#allocation9_spill] sm:$0xff] }
 0x134   : > { %v790_v27 = vmul.f32 %v1749_v6, %v699_v36  ;;  %v2149_v36 = vld [vmem:[#allocation7_spill] sm:$0xff] }
 0x135   : > { %v1807_v57 = vadd.f32 %v780_v31, %v619_v32  ;;  %v1810_v51 = vadd.f32 %v781_v33, %v1658_v29  ;;  %v622_v29 = vadd.f32 %v590_v46, %v1434_v41  ;;  %v595_v41 = vmul.f32 %v1640_v26, %v1712_v5 }
 0x136   : > { %v1813_v47 = vadd.f32 %v790_v27, %v1685_v3  ;;  %v598_v33 = vmul.f32 %v1640_v26, %v1722_v61  ;;  %v2150_v27 = vld [vmem:[#allocation6_spill] sm:$0xff] }
 0x137   : > { %v627_v43 = vadd.f32 %v595_v41, %v2148_v42  ;;  %v2153_v41 = vld [vmem:[#allocation11_spill] sm:$0xff] }
 0x139   : > { %919 = vperm.xlu0 %1226, %v1541_v2  }
 0x13a   : > { %899 = vperm.xlu1 %1224, %v1488_v53   ;;  %903 = vperm.xlu2 %1225, %v1483_v52   ;;  %v679_v60 = vpop.permute.xlu0 %678  ;;  %v671_v34 = vpop.permute.xlu1 %670  ;;  %v593_v52 = vmul.f32 %v1640_v26, %v1699_v11 }
 0x13b   : > { %v785_v3 = vmul.f32 %v1749_v6, %v679_v60  ;;  %v783_v48 = vmul.f32 %v1749_v6, %v671_v34  ;;  %v711_v22 = vpop.permute.xlu2 %710  ;;  %v2151_v60 = vld [vmem:[#allocation3_spill] sm:$0xff] }
 0x13c   : > { %v793_v24 = vmul.f32 %v1749_v6, %v711_v22  ;;  %v625_v54 = vadd.f32 %v593_v52, %v2147_v38  ;;  %v601_v52 = vmul.f32 %v1640_v26, %v1732_v16 }
 0x13d   : > { %v1827_v63 = vadd.f32 %v785_v3, %v624_v40  ;;  %v1829_v2 = vadd.f32 %v783_v48, %v622_v29  ;;  %v2152_v29 = vld [vmem:[#allocation13_spill] sm:$0xff] }
 0x13e   : > { %v1832_v53 = vadd.f32 %v793_v24, %v1694_v55  ;;  %v630_v40 = vadd.f32 %v598_v33, %v2152_v29  ;;  %v599_v24 = vmul.f32 %v1640_v26, %v1720_v23 }
 0x141   : > { %931 = vperm.xlu0 %1226, %v1565_v8  }
 0x142   : > { %911 = vperm.xlu1 %1224, %v1512_v59   ;;  %915 = vperm.xlu2 %1225, %v1507_v58   ;;  %v691_v62 = vpop.permute.xlu0 %690  ;;  %v683_v39 = vpop.permute.xlu1 %682  ;;  %v596_v58 = vmul.f32 %v1640_v26, %v1710_v17 }
 0x143   : > { %v788_v55 = vmul.f32 %v1749_v6, %v691_v62  ;;  %v786_v32 = vmul.f32 %v1749_v6, %v683_v39  ;;  %v723_v11 = vpop.permute.xlu2 %722  ;;  %v2154_v62 = vld [vmem:[#allocation10_spill] sm:$0xff] }
 0x144   : > { %v796_v31 = vmul.f32 %v1749_v6, %v723_v11  ;;  %v628_v34 = vadd.f32 %v596_v58, %v2151_v60  ;;  %v2157_v58 = vld [vmem:[#allocation26_spill] sm:$0xff] }
 0x145   : > { %v1846_v5 = vadd.f32 %v788_v55, %v627_v43  ;;  %v1848_v8 = vadd.f32 %v786_v32, %v625_v54  ;;  %v2155_v54 = vld [vmem:[#allocation4_spill] sm:$0xff]  ;;  %v2156_v43 = vld [vmem:[#allocation17_spill] sm:$0xff]  ;;  %v602_v33 = vmul.f32 %v1640_v26, %v2157_v58  ;;  %v610_v58 = vmul.f32 %v1640_v26, %v1766_v35 }
 0x146   : > { %v1851_v59 = vadd.f32 %v796_v31, %v1705_v49  ;;  %v631_v42 = vadd.f32 %v599_v24, %v2155_v54  ;;  %v633_v55 = vadd.f32 %v601_v52, %v2156_v43  ;;  %v605_v52 = vmul.f32 %v1640_v26, %v1740_v9  ;;  %v2163_v54 = vld [vmem:[#allocation8_spill] sm:$0xff]  ;;  %v2164_v43 = vld [vmem:[#allocation22_spill] sm:$0xff] }
 0x149   : > { %943 = vperm.xlu0 %1226, %v1589_v14  }
 0x14a   : > { %923 = vperm.xlu1 %1224, %v2149_v36   ;;  %927 = vperm.xlu2 %1225, %v2150_v27   ;;  %v703_v46 = vpop.permute.xlu0 %702  ;;  %v695_v50 = vpop.permute.xlu1 %694  ;;  %v604_v36 = vmul.f32 %v1640_v26, %v1742_v10  ;;  %v2158_v27 = vld [vmem:[#allocation15_spill] sm:$0xff] }
 0x14b   : > { %v791_v49 = vmul.f32 %v1749_v6, %v703_v46  ;;  %v789_v3 = vmul.f32 %v1749_v6, %v695_v50  ;;  %v735_v17 = vpop.permute.xlu2 %734  ;;  %v2159_v46 = vld [vmem:[#allocation14_spill] sm:$0xff] }
 0x14c   : > { %v799_v48 = vmul.f32 %v1749_v6, %v735_v17 }
 0x14d   : > { %v1865_v61 = vadd.f32 %v791_v49, %v630_v40  ;;  %v1867_v14 = vadd.f32 %v789_v3, %v628_v34  ;;  %v2160_v34 = vld [vmem:[#allocation5_spill] sm:$0xff]  ;;  %v2161_v40 = vld [vmem:[#allocation20_spill] sm:$0xff] }
 0x14e   : > { %v1870_v22 = vadd.f32 %v799_v48, %v1715_v45  ;;  %v634_v29 = vadd.f32 %v602_v33, %v2160_v34  ;;  %v636_v49 = vadd.f32 %v604_v36, %v2161_v40  ;;  %v2165_v33 = vld [vmem:[#allocation21_spill] sm:$0xff]  ;;  %v2167_v34 = vld [vmem:[#allocation23_spill] sm:$0xff] }
 0x14f   : > { %v1933_v36 = vperm.slane %v2165_v33, 2 }
 0x151   : > { %955 = vperm.xlu0 %1226, %v1617_v20  }
 0x152   : > { %935 = vperm.xlu1 %1224, %v2153_v41   ;;  %939 = vperm.xlu2 %1225, %v2154_v62   ;;  %v715_v39 = vpop.permute.xlu0 %714  ;;  %v707_v38 = vpop.permute.xlu1 %706  ;;  %v607_v41 = vmul.f32 %v1640_v26, %v1754_v18  ;;  %v2162_v62 = vld [vmem:[#allocation18_spill] sm:$0xff] }
 0x153   : > { %v794_v45 = vmul.f32 %v1749_v6, %v715_v39  ;;  %v792_v32 = vmul.f32 %v1749_v6, %v707_v38  ;;  %v747_v23 = vpop.permute.xlu2 %746 }
 0x154   : > { %v802_v11 = vmul.f32 %v1749_v6, %v747_v23 }
 0x155   : > { %v1884_v16 = vadd.f32 %v794_v45, %v633_v55  ;;  %v1886_v20 = vadd.f32 %v792_v32, %v631_v42  ;;  %v637_v42 = vadd.f32 %v605_v52, %v2163_v54  ;;  %v639_v55 = vadd.f32 %v607_v41, %v2164_v43  ;;  %v2169_v54 = vld [vmem:[#allocation24_spill] sm:$0xff] }
 0x156   : > { %v1889_v31 = vadd.f32 %v802_v11, %v1725_v1  ;;  %v608_v11 = vmul.f32 %v1640_v26, %v1751_v4 }
 0x159   : > { %967 = vperm.xlu0 %1226, %v1637_v25  }
 0x15a   : > { %947 = vperm.xlu1 %1224, %v2158_v27   ;;  %951 = vperm.xlu2 %1225, %v2159_v46   ;;  %v727_v50 = vpop.permute.xlu0 %726  ;;  %v719_v60 = vpop.permute.xlu1 %718 }
 0x15b   : > { %v797_v1 = vmul.f32 %v1749_v6, %v727_v50  ;;  %v795_v3 = vmul.f32 %v1749_v6, %v719_v60  ;;  %v759_v17 = vpop.permute.xlu2 %758  ;;  %v2166_v50 = vld [vmem:[#allocation12_spill] sm:$0xff] }
 0x15c   : > { %v805_v48 = vmul.f32 %v1749_v6, %v759_v17  ;;  %v640_v60 = vadd.f32 %v608_v11, %v2166_v50  ;;  %v613_v17 = vmul.f32 %v1640_v26, %v1777_v56  ;;  %v2171_v50 = vld [vmem:[#allocation25_spill] sm:$0xff] }
 0x15d   : > { %v1903_v10 = vadd.f32 %v797_v1, %v636_v49  ;;  %v1905_v25 = vadd.f32 %v795_v3, %v634_v29  ;;  %v642_v29 = vadd.f32 %v610_v58, %v2167_v34  ;;  %v611_v3 = vmul.f32 %v1640_v26, %v1763_v28 }
 0x15e   : > { %v1908_v24 = vadd.f32 %v805_v48, %v1735_v7 }
 0x162   : > { %959 = vperm.xlu1 %1224, %v1612_v19   ;;  %963 = vperm.xlu2 %1225, %v2162_v62   ;;  %v739_v39 = vpop.permute.xlu0 %738  ;;  %v731_v38 = vpop.permute.xlu1 %730 }
 0x163   : > { %v800_v45 = vmul.f32 %v1749_v6, %v739_v39  ;;  %v798_v7 = vmul.f32 %v1749_v6, %v731_v38  ;;  %v771_v32 = vpop.permute.xlu2 %770  ;;  %v2168_v39 = vld [vmem:[#allocation16_spill] sm:$0xff] }
 0x164   : > { %v808_v9 = vmul.f32 %v1749_v6, %v771_v32  ;;  %v643_v38 = vadd.f32 %v611_v3, %v2168_v39  ;;  %v616_v32 = vmul.f32 %v1640_v26, %v1786_v37 }
 0x165   : > { %v1921_v23 = vadd.f32 %v800_v45, %v639_v55  ;;  %v1923_v18 = vadd.f32 %v798_v7, %v637_v42  ;;  %v645_v42 = vadd.f32 %v613_v17, %v2169_v54  ;;  %v614_v7 = vmul.f32 %v1640_v26, %v1774_v12 }
 0x166   : > { %v1926_v19 = vadd.f32 %v808_v9, %v1745_v13 }
 0x16a   : > { %v751_v27 = vpop.permute.xlu0 %750  ;;  %v743_v46 = vpop.permute.xlu1 %742 }
 0x16b   : > { %v803_v40 = vmul.f32 %v1749_v6, %v751_v27  ;;  %v801_v13 = vmul.f32 %v1749_v6, %v743_v46  ;;  %v2170_v27 = vld [vmem:[#allocation19_spill] sm:$0xff] }
 0x16c   : > { %v848_v49 = vpop.permute.xlu2 %847  ;;  %v646_v46 = vadd.f32 %v614_v7, %v2170_v27 }
 0x16d   : > { %v1939_v1 = vadd.f32 %v803_v40, %v642_v29  ;;  %v1941_v4 = vadd.f32 %v801_v13, %v640_v60  ;;  %v972_v35 = vmul.f32 %v1933_v36, %v848_v49  ;;  %v648_v60 = vadd.f32 %v616_v32, %v2171_v50 }
 0x16f   : > { %v1004_v48 = vadd.f32 %v972_v35, %v1760_v0 }
 0x171   : > { %v1036_v52 = vpack.c.bf16 %v1004_v48, %v1004_v48 }
 0x172   : > { %v763_v41 = vpop.permute.xlu0 %762  ;;  %v755_v62 = vpop.permute.xlu1 %754 }
 0x173   : > { %1069 = vst.msk [vmem:[%s1953_s9 + $0x4] sm:$0xf] %vm1067_vm0, %v1036_v52  ;;  %v806_v28 = vmul.f32 %v1749_v6, %v763_v41  ;;  %v804_v0 = vmul.f32 %v1749_v6, %v755_v62 }
 0x174   : > { %v860_v56 = vpop.permute.xlu2 %859 }
 0x175   : > { %v1961_v43 = vadd.f32 %v806_v28, %v645_v42  ;;  %v1963_v55 = vadd.f32 %v804_v0, %v643_v38  ;;  %v975_v45 = vmul.f32 %v1933_v36, %v860_v56 }
 0x177   : > { %v1007_v9 = vadd.f32 %v975_v45, %v1772_v30 }
 0x179   : > { %v1039_v11 = vpack.c.bf16 %v1007_v9, %v1007_v9 }
 0x17a   : > { %v775_v58 = vpop.permute.xlu0 %774  ;;  %v767_v33 = vpop.permute.xlu1 %766 }
 0x17b   : > { %1072 = vst.msk [vmem:[%s1953_s9 + $0x10] sm:$0xf] %vm1067_vm0, %v1039_v11  ;;  %v809_v34 = vmul.f32 %v1749_v6, %v775_v58  ;;  %v807_v29 = vmul.f32 %v1749_v6, %v767_v33 }
 0x17c   : > { %v868_v12 = vpop.permute.xlu2 %867 }
 0x17d   : > { %v1977_v40 = vadd.f32 %v809_v34, %v648_v60  ;;  %v1979_v26 = vadd.f32 %v807_v29, %v646_v46  ;;  %v977_v30 = vmul.f32 %v1933_v36, %v868_v12 }
 0x17f   : > { %v1009_v37 = vadd.f32 %v977_v30, %v1783_v44 }
 0x181   : > { %v1041_v13 = vpack.c.bf16 %v1009_v37, %v1009_v37 }
 0x183   : > { %1074 = vst.msk [vmem:[%s1953_s9 + $0x18] sm:$0xf] %vm1067_vm0, %v1041_v13  ;;  %v852_v49 = vpop.permute.xlu0 %851 }
 0x184   : > { %v973_v35 = vmul.f32 %v1933_v36, %v852_v49  ;;  %v844_v3 = vpop.permute.xlu1 %843  ;;  %v880_v6 = vpop.permute.xlu2 %879 }
 0x185   : > { %v971_v17 = vmul.f32 %v1933_v36, %v844_v3  ;;  %v980_v48 = vmul.f32 %v1933_v36, %v880_v6 }
 0x186   : > { %v1005_v52 = vadd.f32 %v973_v35, %v1807_v57 }
 0x187   : > { %v1003_v41 = vadd.f32 %v971_v17, %v1793_v21  ;;  %v1012_v44 = vadd.f32 %v980_v48, %v1796_v15 }
 0x188   : > { %v1037_v62 = vpack.c.bf16 %v1005_v52, %v1005_v52 }
 0x189   : > { %v1035_v39 = vpack.c.bf16 %v1003_v41, %v1003_v41  ;;  %v1044_v38 = vpack.c.bf16 %v1012_v44, %v1012_v44 }
 0x18a   : > { %1070 = vst.msk [vmem:[%s1953_s9 + $0x8] sm:$0xf] %vm1067_vm0, %v1037_v62 }
 0x18b   : > { %1068 = vst.msk [vmem:[%s1953_s9] sm:$0xf] %vm1067_vm0, %v1035_v39  ;;  %v872_v54 = vpop.permute.xlu0 %871 }
 0x18c   : > { %1077 = vst.msk [vmem:[%s1953_s9 + $0x24] sm:$0xf] %vm1067_vm0, %v1044_v38  ;;  %v978_v42 = vmul.f32 %v1933_v36, %v872_v54  ;;  %v856_v57 = vpop.permute.xlu1 %855  ;;  %v892_v28 = vpop.permute.xlu2 %891 }
 0x18d   : > { %v974_v21 = vmul.f32 %v1933_v36, %v856_v57  ;;  %v983_v15 = vmul.f32 %v1933_v36, %v892_v28 }
 0x18e   : > { %v1010_v0 = vadd.f32 %v978_v42, %v1827_v63 }
 0x18f   : > { %v1006_v56 = vadd.f32 %v974_v21, %v1810_v51  ;;  %v1015_v45 = vadd.f32 %v983_v15, %v1813_v47 }
 0x190   : > { %v1042_v7 = vpack.c.bf16 %v1010_v0, %v1010_v0 }
 0x191   : > { %v1038_v32 = vpack.c.bf16 %v1006_v56, %v1006_v56  ;;  %v1047_v9 = vpack.c.bf16 %v1015_v45, %v1015_v45 }
 0x192   : > { %1075 = vst.msk [vmem:[%s1953_s9 + $0x1c] sm:$0xf] %vm1067_vm0, %v1042_v7 }
 0x193   : > { %1071 = vst.msk [vmem:[%s1953_s9 + $0xc] sm:$0xf] %vm1067_vm0, %v1038_v32  ;;  %v884_v11 = vpop.permute.xlu0 %883 }
 0x194   : > { %1080 = vst.msk [vmem:[%s1953_s9 + $0x30] sm:$0xf] %vm1067_vm0, %v1047_v9  ;;  %v981_v58 = vmul.f32 %v1933_v36, %v884_v11  ;;  %v864_v63 = vpop.permute.xlu1 %863  ;;  %v904_v33 = vpop.permute.xlu2 %903 }
 0x195   : > { %v976_v51 = vmul.f32 %v1933_v36, %v864_v63  ;;  %v986_v47 = vmul.f32 %v1933_v36, %v904_v33 }
 0x196   : > { %v1013_v27 = vadd.f32 %v981_v58, %v1846_v5 }
 0x197   : > { %v1008_v46 = vadd.f32 %v976_v51, %v1829_v2  ;;  %v1018_v50 = vadd.f32 %v986_v47, %v1832_v53 }
 0x198   : > { %v1045_v60 = vpack.c.bf16 %v1013_v27, %v1013_v27 }
 0x199   : > { %v1040_v34 = vpack.c.bf16 %v1008_v46, %v1008_v46  ;;  %v1050_v29 = vpack.c.bf16 %v1018_v50, %v1018_v50 }
 0x19a   : > { %1078 = vst.msk [vmem:[%s1953_s9 + $0x28] sm:$0xf] %vm1067_vm0, %v1045_v60 }
 0x19b   : > { %1073 = vst.msk [vmem:[%s1953_s9 + $0x14] sm:$0xf] %vm1067_vm0, %v1040_v34  ;;  %v896_v12 = vpop.permute.xlu0 %895 }
 0x19c   : > { %1083 = vst.msk [vmem:[%s1953_s9 + $0x3c] sm:$0xf] %vm1067_vm0, %v1050_v29  ;;  %v984_v30 = vmul.f32 %v1933_v36, %v896_v12  ;;  %v876_v5 = vpop.permute.xlu1 %875  ;;  %v916_v37 = vpop.permute.xlu2 %915 }
 0x19d   : > { %v979_v2 = vmul.f32 %v1933_v36, %v876_v5  ;;  %v989_v53 = vmul.f32 %v1933_v36, %v916_v37 }
 0x19e   : > { %v1016_v13 = vadd.f32 %v984_v30, %v1865_v61 }
 0x19f   : > { %v1011_v49 = vadd.f32 %v979_v2, %v1848_v8  ;;  %v1021_v35 = vadd.f32 %v989_v53, %v1851_v59 }
 0x1a0   : > { %v1048_v3 = vpack.c.bf16 %v1016_v13, %v1016_v13 }
 0x1a1   : > { %v1043_v6 = vpack.c.bf16 %v1011_v49, %v1011_v49  ;;  %v1053_v17 = vpack.c.bf16 %v1021_v35, %v1021_v35 }
 0x1a2   : > { %1081 = vst.msk [vmem:[%s1953_s9 + $0x34] sm:$0xf] %vm1067_vm0, %v1048_v3 }
 0x1a3   : > { %1076 = vst.msk [vmem:[%s1953_s9 + $0x20] sm:$0xf] %vm1067_vm0, %v1043_v6  ;;  %v908_v48 = vpop.permute.xlu0 %907 }
 0x1a4   : > { %1086 = vst.msk [vmem:[%s1953_s9 + $0x48] sm:$0xf] %vm1067_vm0, %v1053_v17  ;;  %v987_v52 = vmul.f32 %v1933_v36, %v908_v48  ;;  %v888_v61 = vpop.permute.xlu1 %887  ;;  %v928_v41 = vpop.permute.xlu2 %927 }
 0x1a5   : > { %v982_v8 = vmul.f32 %v1933_v36, %v888_v61  ;;  %v992_v59 = vmul.f32 %v1933_v36, %v928_v41 }
 0x1a6   : > { %v1019_v44 = vadd.f32 %v987_v52, %v1884_v16 }
 0x1a7   : > { %v1014_v62 = vadd.f32 %v982_v8, %v1867_v14  ;;  %v1024_v39 = vadd.f32 %v992_v59, %v1870_v22 }
 0x1a8   : > { %v1051_v38 = vpack.c.bf16 %v1019_v44, %v1019_v44 }
 0x1a9   : > { %v1046_v54 = vpack.c.bf16 %v1014_v62, %v1014_v62  ;;  %v1056_v42 = vpack.c.bf16 %v1024_v39, %v1024_v39 }
 0x1aa   : > { %1084 = vst.msk [vmem:[%s1953_s9 + $0x40] sm:$0xf] %vm1067_vm0, %v1051_v38 }
 0x1ab   : > { %1079 = vst.msk [vmem:[%s1953_s9 + $0x2c] sm:$0xf] %vm1067_vm0, %v1046_v54  ;;  %v920_v57 = vpop.permute.xlu0 %919 }
 0x1ac   : > { %1089 = vst.msk [vmem:[%s1953_s9 + $0x54] sm:$0xf] %vm1067_vm0, %v1056_v42  ;;  %v990_v28 = vmul.f32 %v1933_v36, %v920_v57  ;;  %v900_v16 = vpop.permute.xlu1 %899  ;;  %v940_v21 = vpop.permute.xlu2 %939 }
 0x1ad   : > { %v985_v14 = vmul.f32 %v1933_v36, %v900_v16  ;;  %v995_v22 = vmul.f32 %v1933_v36, %v940_v21 }
 0x1ae   : > { %v1022_v15 = vadd.f32 %v990_v28, %v1903_v10 }
 0x1af   : > { %v1017_v0 = vadd.f32 %v985_v14, %v1886_v20  ;;  %v1027_v56 = vadd.f32 %v995_v22, %v1889_v31 }
 0x1b0   : > { %v1054_v45 = vpack.c.bf16 %v1022_v15, %v1022_v15 }
 0x1b1   : > { %v1049_v7 = vpack.c.bf16 %v1017_v0, %v1017_v0  ;;  %v1059_v32 = vpack.c.bf16 %v1027_v56, %v1027_v56 }
 0x1b2   : > { %1087 = vst.msk [vmem:[%s1953_s9 + $0x4c] sm:$0xf] %vm1067_vm0, %v1054_v45 }
 0x1b3   : > { %1082 = vst.msk [vmem:[%s1953_s9 + $0x38] sm:$0xf] %vm1067_vm0, %v1049_v7  ;;  %v932_v9 = vpop.permute.xlu0 %931 }
 0x1b4   : > { %1092 = vst.msk [vmem:[%s1953_s9 + $0x60] sm:$0xf] %vm1067_vm0, %v1059_v32  ;;  %v993_v11 = vmul.f32 %v1933_v36, %v932_v9  ;;  %v912_v10 = vpop.permute.xlu1 %911  ;;  %v952_v58 = vpop.permute.xlu2 %951 }
 0x1b5   : > { %v988_v20 = vmul.f32 %v1933_v36, %v912_v10  ;;  %v998_v31 = vmul.f32 %v1933_v36, %v952_v58 }
 0x1b6   : > { %v1025_v63 = vadd.f32 %v993_v11, %v1921_v23 }
 0x1b7   : > { %v1020_v33 = vadd.f32 %v988_v20, %v1905_v25  ;;  %v1030_v51 = vadd.f32 %v998_v31, %v1908_v24 }
 0x1b8   : > { %v1057_v47 = vpack.c.bf16 %v1025_v63, %v1025_v63 }
 0x1b9   : > { %v1052_v27 = vpack.c.bf16 %v1020_v33, %v1020_v33  ;;  %v1062_v46 = vpack.c.bf16 %v1030_v51, %v1030_v51 }
 0x1ba   : > { %1090 = vst.msk [vmem:[%s1953_s9 + $0x58] sm:$0xf] %vm1067_vm0, %v1057_v47 }
 0x1bb   : > { %1085 = vst.msk [vmem:[%s1953_s9 + $0x44] sm:$0xf] %vm1067_vm0, %v1052_v27  ;;  %v944_v50 = vpop.permute.xlu0 %943 }
 0x1bc   : > { %1095 = vst.msk [vmem:[%s1953_s9 + $0x6c] sm:$0xf] %vm1067_vm0, %v1062_v46  ;;  %v996_v60 = vmul.f32 %v1933_v36, %v944_v50  ;;  %v924_v23 = vpop.permute.xlu1 %923  ;;  %v964_v34 = vpop.permute.xlu2 %963 }
 0x1bd   : > { %v991_v25 = vmul.f32 %v1933_v36, %v924_v23  ;;  %v1001_v24 = vmul.f32 %v1933_v36, %v964_v34 }
 0x1be   : > { %v1028_v29 = vadd.f32 %v996_v60, %v1939_v1 }
 0x1bf   : > { %v1023_v12 = vadd.f32 %v991_v25, %v1923_v18  ;;  %v1033_v30 = vadd.f32 %v1001_v24, %v1926_v19 }
 0x1c0   : > { %v1060_v5 = vpack.c.bf16 %v1028_v29, %v1028_v29 }
 0x1c1   : > { %v1055_v37 = vpack.c.bf16 %v1023_v12, %v1023_v12  ;;  %v1065_v2 = vpack.c.bf16 %v1033_v30, %v1033_v30 }
 0x1c2   : > { %1093 = vst.msk [vmem:[%s1953_s9 + $0x64] sm:$0xf] %vm1067_vm0, %v1060_v5 }
 0x1c3   : > { %1088 = vst.msk [vmem:[%s1953_s9 + $0x50] sm:$0xf] %vm1067_vm0, %v1055_v37  ;;  %v956_v53 = vpop.permute.xlu0 %955 }
 0x1c4   : > { %1098 = vst.msk [vmem:[%s1953_s9 + $0x78] sm:$0xf] %vm1067_vm0, %v1065_v2  ;;  %v999_v13 = vmul.f32 %v1933_v36, %v956_v53  ;;  %v936_v49 = vpop.permute.xlu1 %935 }
 0x1c5   : > { %v994_v18 = vmul.f32 %v1933_v36, %v936_v49 }
 0x1c6   : > { %v1031_v19 = vadd.f32 %v999_v13, %v1961_v43 }
 0x1c7   : > { %v1026_v1 = vadd.f32 %v994_v18, %v1941_v4 }
 0x1c8   : > { %v1063_v35 = vpack.c.bf16 %v1031_v19, %v1031_v19 }
 0x1c9   : > { %v1058_v3 = vpack.c.bf16 %v1026_v1, %v1026_v1 }
 0x1ca   : > { %1096 = vst.msk [vmem:[%s1953_s9 + $0x70] sm:$0xf] %vm1067_vm0, %v1063_v35 }
 0x1cb   : > { %1091 = vst.msk [vmem:[%s1953_s9 + $0x5c] sm:$0xf] %vm1067_vm0, %v1058_v3  ;;  %v968_v6 = vpop.permute.xlu0 %967 }
 0x1cc   : > { %v1002_v17 = vmul.f32 %v1933_v36, %v968_v6  ;;  %v948_v48 = vpop.permute.xlu1 %947 }
 0x1cd   : > { %v997_v52 = vmul.f32 %v1933_v36, %v948_v48 }
 0x1ce   : > { %v1034_v61 = vadd.f32 %v1002_v17, %v1977_v40 }
 0x1cf   : > { %v1029_v41 = vadd.f32 %v997_v52, %v1963_v55 }
 0x1d0   : > { %v1066_v43 = vpack.c.bf16 %v1034_v61, %v1034_v61 }
 0x1d1   : > { %v1061_v8 = vpack.c.bf16 %v1029_v41, %v1029_v41 }
 0x1d2   : > { %1099 = vst.msk [vmem:[%s1953_s9 + $0x7c] sm:$0xf] %vm1067_vm0, %v1066_v43 }
 0x1d3   : > { %1094 = vst.msk [vmem:[%s1953_s9 + $0x68] sm:$0xf] %vm1067_vm0, %v1061_v8 }
 0x1d4   : > { %v960_v4 = vpop.permute.xlu1 %959 }
 0x1d5   : > { %v1000_v59 = vmul.f32 %v1933_v36, %v960_v4 }
 0x1d7   : > { %v1032_v44 = vadd.f32 %v1000_v59, %v1979_v26 }
 0x1d9   : > { %v1064_v62 = vpack.c.bf16 %v1032_v44, %v1032_v44 }
 0x1db   : > { %1097 = vst.msk [vmem:[%s1953_s9 + $0x74] sm:$0xf] %vm1067_vm0, %v1064_v62 }
 0x1dc PF: > { %s13_s14 = sadd.s32 1, %s1249_s14   ;;  %s2172_s12 = smov %s1245_s13 }
 0x1dd   : > { %p10_p5 = scmp.ge.s32.totalorder %s13_s14, 4   ;;  %s2173_s13 = smov %s2175_s15 }
 0x1df   :  { %12 = sbr.rel (!%p10_p5) target bundleno = 2 (0x2), region = 62 }

// kernel: deeplab_forward.10
= control target key start
LH: loop header
LB: loop body
LE: loop exit
PB: predicated region body
PF: predicated region fallthrough
CT: control target
= control target key end

     0   :  { %s685_s12 = smov 0   ;;  %s687_s13 = smov 0   ;;  %s891_s0 = inlined_call_operand.vmem [shape: f32[2,3,64], index: 0, kind: input, shape index: {}]   ;;  %s892_s1 = inlined_call_operand.vmem [shape: f32[88,3], index: 1, kind: input, shape index: {}]   ;;  %s893_s2 = inlined_call_operand.vmem [shape: f32[88,1], index: 2, kind: input, shape index: {}]   ;;  %s894_s3 = inlined_call_operand.vmem [shape: bf16[2,88,64], index: 3, kind: output, shape index: {}]  }
   0x1   :  { %s689_s14 = smov 0  }
   0x2 LB: > { %s25_s15 = sadd.s32 1, %s656_s13  ;;  %p596_p0 = scmp.ge.s32.totalorder %s660_s14, 1  ;;  %s660_s14 = sphi %s689_s14, %s13_s14   ;;  %s656_s13 = sphi %s687_s13, %s896_s13   ;;  %s652_s12 = sphi %s685_s12, %s895_s12  }
   0x3   : > { %p27_p1 = scmp.ge.s32.totalorder %s25_s15, 2  ;;  %p155_p2 = scmp.lt.s32.totalorder %s660_s14, 3 }
   0x5   : > { %s898_s15 = smov (%p27_p1, %s25_s15), 0  ;;  %p156_p3 = pnand %p596_p0, %p155_p2 }
   0x6   : > { %p184_p4 = scmp.lt.s32.totalorder (!%p156_p3), %s652_s12, 1 }
   0x7   : > { %159 = sbr.rel (%p156_p3) target bundleno = 252 (0xfc), region = 32 }
   0xc   : > { %v215_v0 = vld [vmem:[%s893_s2 + $0x20] sm:$0xff]  ;;  %v213_v1 = vld [vmem:[%s893_s2 + $0x10] sm:$0xff]  ;;  %v662_v3 = vmov 0   ;;  %v216_v4 = vld [vmem:[%s893_s2 + $0x28] sm:$0xff]  ;;  %v663_v23 = vmov 1   ;;  %v664_v24 = vmov 2  }
   0xd   : > { %v211_v2 = vld [vmem:[%s893_s2] sm:$0xff]  ;;  %631 = vset.pattern.permute.xlu2 %v662_v3  ;;  %630 = vset.pattern.permute.xlu1 %v662_v3  ;;  %v214_v5 = vld [vmem:[%s893_s2 + $0x18] sm:$0xff]  ;;  %v212_v6 = vld [vmem:[%s893_s2 + $0x8] sm:$0xff]  ;;  %s900_s12 = smov (!%p184_p4, %s652_s12), 1  ;;  %vm500_vm0 = vcmask 519168  }
   0xe   : > { %629 = vset.pattern.permute.xlu0 %v662_v3  ;;  %244 = vperm.xlu2 %631, %v215_v0   ;;  %v219_v7 = vld [vmem:[%s893_s2 + $0x40] sm:$0xff]  ;;  %v218_v8 = vld [vmem:[%s893_s2 + $0x38] sm:$0xff]  ;;  %v217_v9 = vld [vmem:[%s893_s2 + $0x30] sm:$0xff]  ;;  %s597_s10 = sshll.u32 %s900_s12, 2  ;;  %s601_s18 = smul.u32 44, %s900_s12 }
   0xf   : > { %234 = vperm.xlu1 %630, %v213_v1   ;;  %224 = vperm.xlu0 %629, %v211_v2   ;;  %v200_v10 = vld [vmem:[%s892_s1] sm:$0xff]  ;;  %v221_v11 = vld [vmem:[%s893_s2 + $0x50] sm:$0xff]  ;;  %v220_v12 = vld [vmem:[%s893_s2 + $0x48] sm:$0xff]  ;;  %s190_s17 = scalar_lea.vmem %s891_s0, %s597_s10 }
  0x10   : > { %v203_v13 = vld [vmem:[%s892_s1 + $0x18] sm:$0xff]  ;;  %v202_v14 = vld [vmem:[%s892_s1 + $0x10] sm:$0xff]  ;;  %v201_v15 = vld [vmem:[%s892_s1 + $0x8] sm:$0xff]  ;;  %s817_s21 = scalar_lea.vmem %s894_s3, %s601_s18 }
  0x11   : > { %v206_v16 = vld [vmem:[%s892_s1 + $0x30] sm:$0xff]  ;;  %v205_v17 = vld [vmem:[%s892_s1 + $0x28] sm:$0xff]  ;;  %v204_v18 = vld [vmem:[%s892_s1 + $0x20] sm:$0xff] }
  0x12   : > { %v209_v19 = vld [vmem:[%s892_s1 + $0x48] sm:$0xff]  ;;  %v208_v20 = vld [vmem:[%s892_s1 + $0x40] sm:$0xff]  ;;  %v207_v21 = vld [vmem:[%s892_s1 + $0x38] sm:$0xff] }
  0x13   : > { %v210_v22 = vld [vmem:[%s892_s1 + $0x50] sm:$0xff]  ;;  %v199_v28 = vld [vmem:[%s190_s17] sm:$0x7] }
  0x14   : > { %v785_v29 = vperm.slane %v199_v28, 0  ;;  %v806_v59 = vperm.slane %v199_v28, 1  ;;  %v809_v62 = vperm.slane %v199_v28, 2 }
  0x16   : > { %249 = vperm.xlu2 %631, %v216_v4  }
  0x17   : > { %239 = vperm.xlu1 %630, %v214_v5   ;;  %229 = vperm.xlu0 %629, %v212_v6  }
  0x1e   : > { %264 = vperm.xlu2 %631, %v219_v7  }
  0x1f   : > { %259 = vperm.xlu1 %630, %v218_v8   ;;  %254 = vperm.xlu0 %629, %v217_v9  }
  0x26   : > { %279 = vperm.xlu2 %631, %v200_v10  }
  0x27   : > { %274 = vperm.xlu1 %630, %v221_v11   ;;  %269 = vperm.xlu0 %629, %v220_v12  }
  0x2e   : > { %294 = vperm.xlu2 %631, %v203_v13  }
  0x2f   : > { %289 = vperm.xlu1 %630, %v202_v14   ;;  %284 = vperm.xlu0 %629, %v201_v15  }
  0x36   : > { %309 = vperm.xlu2 %631, %v206_v16  }
  0x37   : > { %304 = vperm.xlu1 %630, %v205_v17   ;;  %299 = vperm.xlu0 %629, %v204_v18  }
  0x3e   : > { %324 = vperm.xlu2 %631, %v209_v19  }
  0x3f   : > { %319 = vperm.xlu1 %630, %v208_v20   ;;  %314 = vperm.xlu0 %629, %v207_v21  }
  0x46   : > { %633 = vset.pattern.permute.xlu2 %v663_v23 }
  0x47   : > { %632 = vset.pattern.permute.xlu1 %v663_v23  ;;  %329 = vperm.xlu0 %629, %v210_v22  }
  0x48   : > { %356 = vperm.xlu1 %632, %v200_v10   ;;  %360 = vperm.xlu2 %633, %v201_v15  }
  0x4f   : > { %634 = vset.pattern.permute.xlu0 %v663_v23 }
  0x50   : > { %364 = vperm.xlu0 %634, %v202_v14   ;;  %368 = vperm.xlu1 %632, %v203_v13  }
  0x51   : > { %372 = vperm.xlu2 %633, %v204_v18  }
  0x58   : > { %384 = vperm.xlu0 %634, %v207_v21   ;;  %376 = vperm.xlu1 %632, %v205_v17  }
  0x59   : > { %380 = vperm.xlu2 %633, %v206_v16  }
  0x60   : > { %396 = vperm.xlu0 %634, %v210_v22   ;;  %388 = vperm.xlu1 %632, %v208_v20  }
  0x61   : > { %392 = vperm.xlu2 %633, %v209_v19  }
  0x68   : > { %637 = vset.pattern.permute.xlu0 %v664_v24  ;;  %635 = vset.pattern.permute.xlu1 %v664_v24  ;;  %v771_v25 = vpop.permute.xlu2 %244 }
  0x69   : > { %636 = vset.pattern.permute.xlu2 %v664_v24  ;;  %431 = vperm.xlu0 %637, %v202_v14  }
  0x6a   : > { %423 = vperm.xlu1 %635, %v200_v10   ;;  %427 = vperm.xlu2 %636, %v201_v15  }
  0x70   : > { %v774_v26 = vpop.permute.xlu2 %249 }
  0x71   : > { %451 = vperm.xlu0 %637, %v207_v21  }
  0x72   : > { %435 = vperm.xlu1 %635, %v203_v13   ;;  %439 = vperm.xlu2 %636, %v204_v18  }
  0x78   : > { %v783_v27 = vpop.permute.xlu2 %264 }
  0x79   : > { %463 = vperm.xlu0 %637, %v210_v22  }
  0x7a   : > { %443 = vperm.xlu1 %635, %v205_v17   ;;  %447 = vperm.xlu2 %636, %v206_v16  }
  0x80   : > { %v280_v30 = vpop.permute.xlu2 %279 }
  0x81   : > { %v787_v31 = vpop.permute.xlu1 %234  ;;  %v225_v32 = vpop.permute.xlu0 %224  ;;  %v333_v33 = vmul.f32 %v785_v29, %v280_v30 }
  0x82   : > { %455 = vperm.xlu1 %635, %v208_v20   ;;  %459 = vperm.xlu2 %636, %v209_v19  }
  0x83   : > { %v790_v34 = vadd.f32 %v333_v33, %v225_v32 }
  0x88   : > { %v295_v35 = vpop.permute.xlu2 %294 }
  0x89   : > { %v240_v36 = vpop.permute.xlu1 %239  ;;  %v230_v37 = vpop.permute.xlu0 %229  ;;  %v336_v38 = vmul.f32 %v785_v29, %v295_v35 }
  0x8b   : > { %v793_v39 = vadd.f32 %v336_v38, %v240_v36 }
  0x90   : > { %v310_v40 = vpop.permute.xlu2 %309 }
  0x91   : > { %v795_v41 = vpop.permute.xlu1 %259  ;;  %v255_v42 = vpop.permute.xlu0 %254  ;;  %v339_v14 = vmul.f32 %v785_v29, %v310_v40 }
  0x93   : > { %v350_v20 = vadd.f32 %v339_v14, %v255_v42 }
  0x98   : > { %v325_v43 = vpop.permute.xlu2 %324 }
  0x99   : > { %v797_v44 = vpop.permute.xlu1 %274  ;;  %v270_v45 = vpop.permute.xlu0 %269 }
  0xa1   : > { %v290_v46 = vpop.permute.xlu1 %289  ;;  %v285_v47 = vpop.permute.xlu0 %284 }
  0xa2   : > { %v361_v48 = vpop.permute.xlu2 %360  ;;  %v334_v58 = vmul.f32 %v785_v29, %v285_v47  ;;  %v335_v24 = vmul.f32 %v785_v29, %v290_v46 }
  0xa3   : > { %v401_v61 = vmul.f32 %v806_v59, %v361_v48 }
  0xa4   : > { %v345_v60 = vadd.f32 %v334_v58, %v230_v37  ;;  %v346_v36 = vadd.f32 %v335_v24, %v787_v31 }
  0xa6   : > { %v412_v2 = vadd.f32 %v401_v61, %v345_v60 }
  0xa9   : > { %v799_v49 = vpop.permute.xlu1 %304  ;;  %v300_v50 = vpop.permute.xlu0 %299 }
  0xaa   : > { %v337_v3 = vmul.f32 %v785_v29, %v300_v50 }
  0xab   : > { %v373_v51 = vpop.permute.xlu2 %372 }
  0xac   : > { %v348_v6 = vadd.f32 %v337_v3, %v771_v25  ;;  %v404_v7 = vmul.f32 %v806_v59, %v373_v51  ;;  %v342_v25 = vmul.f32 %v785_v29, %v325_v43 }
  0xae   : > { %v415_v12 = vadd.f32 %v404_v7, %v348_v6  ;;  %v353_v37 = vadd.f32 %v342_v25, %v270_v45  ;;  %v338_v6 = vmul.f32 %v785_v29, %v799_v49 }
  0xb1   : > { %v801_v52 = vpop.permute.xlu1 %319  ;;  %v315_v53 = vpop.permute.xlu0 %314 }
  0xb2   : > { %v340_v31 = vmul.f32 %v785_v29, %v315_v53 }
  0xb3   : > { %v381_v54 = vpop.permute.xlu2 %380 }
  0xb4   : > { %v406_v16 = vmul.f32 %v806_v59, %v381_v54 }
  0xb6   : > { %v417_v22 = vadd.f32 %v406_v16, %v350_v20 }
  0xb9   : > { %v803_v55 = vpop.permute.xlu0 %329 }
  0xba   : > { %v357_v56 = vpop.permute.xlu1 %356 }
  0xbb   : > { %v393_v57 = vpop.permute.xlu2 %392  ;;  %v400_v32 = vmul.f32 %v806_v59, %v357_v56 }
  0xbc   : > { %v409_v33 = vmul.f32 %v806_v59, %v393_v57 }
  0xbd   : > { %v411_v47 = vadd.f32 %v400_v32, %v790_v34  ;;  %v351_v34 = vadd.f32 %v340_v31, %v795_v41  ;;  %v343_v41 = vmul.f32 %v785_v29, %v803_v55 }
  0xbe   : > { %v420_v48 = vadd.f32 %v409_v33, %v353_v37 }
  0xc2   : > { %v365_v63 = vpop.permute.xlu0 %364  ;;  %v369_v0 = vpop.permute.xlu1 %368 }
  0xc3   : > { %v402_v30 = vmul.f32 %v806_v59, %v365_v63  ;;  %v403_v60 = vmul.f32 %v806_v59, %v369_v0 }
  0xc4   : > { %v428_v1 = vpop.permute.xlu2 %427 }
  0xc5   : > { %v468_v4 = vmul.f32 %v809_v62, %v428_v1  ;;  %v413_v40 = vadd.f32 %v402_v30, %v346_v36 }
  0xc7   : > { %v479_v5 = vadd.f32 %v468_v4, %v412_v2  ;;  %v414_v4 = vadd.f32 %v403_v60, %v793_v39  ;;  %v349_v39 = vadd.f32 %v338_v6, %v774_v26 }
  0xc9   : > { %v490_v8 = vpack.c.bf16 %v479_v5, %v479_v5 }
  0xca   : > { %v385_v9 = vpop.permute.xlu0 %384  ;;  %v377_v10 = vpop.permute.xlu1 %376 }
  0xcb   : > { %502 = vst.msk [vmem:[%s817_s21 + $0x4] sm:$0xf] %vm500_vm0, %v490_v8  ;;  %v407_v57 = vmul.f32 %v806_v59, %v385_v9 }
  0xcc   : > { %v440_v11 = vpop.permute.xlu2 %439 }
  0xcd   : > { %v471_v13 = vmul.f32 %v809_v62, %v440_v11  ;;  %v418_v2 = vadd.f32 %v407_v57, %v351_v34  ;;  %v405_v11 = vmul.f32 %v806_v59, %v377_v10 }
  0xcf   : > { %v482_v15 = vadd.f32 %v471_v13, %v415_v12  ;;  %v354_v13 = vadd.f32 %v343_v41, %v797_v44  ;;  %v416_v16 = vadd.f32 %v405_v11, %v349_v39  ;;  %v341_v44 = vmul.f32 %v785_v29, %v801_v52 }
  0xd1   : > { %v493_v17 = vpack.c.bf16 %v482_v15, %v482_v15 }
  0xd2   : > { %v397_v18 = vpop.permute.xlu0 %396  ;;  %v826_v19 = vpop.permute.xlu1 %388 }
  0xd3   : > { %505 = vst.msk [vmem:[%s817_s21 + $0x10] sm:$0xf] %vm500_vm0, %v493_v17  ;;  %v410_v8 = vmul.f32 %v806_v59, %v397_v18  ;;  %v408_v26 = vmul.f32 %v806_v59, %v826_v19 }
  0xd4   : > { %v448_v21 = vpop.permute.xlu2 %447 }
  0xd5   : > { %v473_v23 = vmul.f32 %v809_v62, %v448_v21  ;;  %v421_v14 = vadd.f32 %v410_v8, %v354_v13 }
  0xd7   : > { %v484_v28 = vadd.f32 %v473_v23, %v417_v22  ;;  %v352_v22 = vadd.f32 %v341_v44, %v783_v27 }
  0xd9   : > { %v495_v35 = vpack.c.bf16 %v484_v28, %v484_v28  ;;  %v419_v24 = vadd.f32 %v408_v26, %v352_v22 }
  0xdb   : > { %507 = vst.msk [vmem:[%s817_s21 + $0x18] sm:$0xf] %vm500_vm0, %v495_v35  ;;  %v432_v38 = vpop.permute.xlu0 %431 }
  0xdc   : > { %v469_v42 = vmul.f32 %v809_v62, %v432_v38  ;;  %v424_v46 = vpop.permute.xlu1 %423  ;;  %v460_v43 = vpop.permute.xlu2 %459 }
  0xdd   : > { %v467_v50 = vmul.f32 %v809_v62, %v424_v46  ;;  %v476_v51 = vmul.f32 %v809_v62, %v460_v43 }
  0xde   : > { %v480_v45 = vadd.f32 %v469_v42, %v413_v40 }
  0xdf   : > { %v478_v54 = vadd.f32 %v467_v50, %v411_v47  ;;  %v487_v56 = vadd.f32 %v476_v51, %v420_v48 }
  0xe0   : > { %v491_v58 = vpack.c.bf16 %v480_v45, %v480_v45 }
  0xe1   : > { %v489_v61 = vpack.c.bf16 %v478_v54, %v478_v54  ;;  %v498_v63 = vpack.c.bf16 %v487_v56, %v487_v56 }
  0xe2   : > { %503 = vst.msk [vmem:[%s817_s21 + $0x8] sm:$0xf] %vm500_vm0, %v491_v58 }
  0xe3   : > { %501 = vst.msk [vmem:[%s817_s21] sm:$0xf] %vm500_vm0, %v489_v61  ;;  %v452_v1 = vpop.permute.xlu0 %451 }
  0xe4   : > { %510 = vst.msk [vmem:[%s817_s21 + $0x24] sm:$0xf] %vm500_vm0, %v498_v63  ;;  %v474_v53 = vmul.f32 %v809_v62, %v452_v1  ;;  %v436_v3 = vpop.permute.xlu1 %435 }
  0xe5   : > { %v470_v0 = vmul.f32 %v809_v62, %v436_v3 }
  0xe6   : > { %v485_v5 = vadd.f32 %v474_v53, %v418_v2 }
  0xe7   : > { %v481_v7 = vadd.f32 %v470_v0, %v414_v4 }
  0xe8   : > { %v496_v9 = vpack.c.bf16 %v485_v5, %v485_v5 }
  0xe9   : > { %v492_v12 = vpack.c.bf16 %v481_v7, %v481_v7 }
  0xea   : > { %508 = vst.msk [vmem:[%s817_s21 + $0x1c] sm:$0xf] %vm500_vm0, %v496_v9 }
  0xeb   : > { %504 = vst.msk [vmem:[%s817_s21 + $0xc] sm:$0xf] %vm500_vm0, %v492_v12  ;;  %v464_v55 = vpop.permute.xlu0 %463 }
  0xec   : > { %v477_v49 = vmul.f32 %v809_v62, %v464_v55  ;;  %v444_v15 = vpop.permute.xlu1 %443 }
  0xed   : > { %v472_v10 = vmul.f32 %v809_v62, %v444_v15 }
  0xee   : > { %v488_v17 = vadd.f32 %v477_v49, %v421_v14 }
  0xef   : > { %v483_v18 = vadd.f32 %v472_v10, %v416_v16 }
  0xf0   : > { %v499_v20 = vpack.c.bf16 %v488_v17, %v488_v17 }
  0xf1   : > { %v494_v21 = vpack.c.bf16 %v483_v18, %v483_v18 }
  0xf2   : > { %511 = vst.msk [vmem:[%s817_s21 + $0x28] sm:$0xf] %vm500_vm0, %v499_v20 }
  0xf3   : > { %506 = vst.msk [vmem:[%s817_s21 + $0x14] sm:$0xf] %vm500_vm0, %v494_v21 }
  0xf4   : > { %v456_v23 = vpop.permute.xlu1 %455 }
  0xf5   : > { %v475_v25 = vmul.f32 %v809_v62, %v456_v23 }
  0xf7   : > { %v486_v28 = vadd.f32 %v475_v25, %v419_v24 }
  0xf9   : > { %v497_v30 = vpack.c.bf16 %v486_v28, %v486_v28 }
  0xfb   : > { %509 = vst.msk [vmem:[%s817_s21 + $0x20] sm:$0xf] %vm500_vm0, %v497_v30 }
  0xfc PF: > { %s13_s14 = sadd.s32 1, %s660_s14   ;;  %s895_s12 = smov %s656_s13 }
  0xfd   : > { %p10_p5 = scmp.ge.s32.totalorder %s13_s14, 4   ;;  %s896_s13 = smov %s898_s15 }
  0xff   :  { %12 = sbr.rel (!%p10_p5) target bundleno = 2 (0x2), region = 62 }

// kernel: deeplab_forward.12
= control target key start
LH: loop header
LB: loop body
LE: loop exit
PB: predicated region body
PF: predicated region fallthrough
CT: control target
= control target key end

     0   :  { %s521_s12 = smov 0   ;;  %s523_s13 = smov 0   ;;  %s573_s0 = inlined_call_operand.vmem [shape: bf16[2,88,64], index: 0, kind: input, shape index: {}]   ;;  %s574_s1 = inlined_call_operand.vmem [shape: bf16[21,88], index: 1, kind: input, shape index: {}]   ;;  %s575_s2 = inlined_call_operand.vmem [shape: f32[21,1], index: 2, kind: input, shape index: {}]   ;;  %s576_s3 = inlined_call_operand.vmem [shape: bf16[2,21,64], index: 3, kind: output, shape index: {}]  }
   0x1   :  { %s525_s14 = smov 0  }
   0x2 LB: > { %s25_s15 = sadd.s32 1, %s494_s13  ;;  %p404_p0 = scmp.ge.s32.totalorder %s498_s14, 1  ;;  %s498_s14 = sphi %s525_s14, %s13_s14   ;;  %s494_s13 = sphi %s523_s13, %s578_s13   ;;  %s490_s12 = sphi %s521_s12, %s577_s12  }
   0x3   : > { %p27_p1 = scmp.ge.s32.totalorder %s25_s15, 2  ;;  %p156_p2 = scmp.lt.s32.totalorder %s498_s14, 3 }
   0x5   : > { %s580_s15 = smov (%p27_p1, %s25_s15), 0  ;;  %p157_p3 = pnand %p404_p0, %p156_p2 }
   0x6   : > { %p186_p4 = scmp.lt.s32.totalorder (!%p157_p3), %s490_s12, 1 }
   0x7   : > { %160 = sbr.rel (%p157_p3) target bundleno = 184 (0xb8), region = 32 }
   0xc   : > { %s582_s12 = smov (!%p186_p4, %s490_s12), 1  ;;  %v219_v0 = vld [vmem:[%s575_s2 + $0x10] sm:$0x1f]  ;;  %v218_v1 = vld [vmem:[%s575_s2 + $0x8] sm:$0xff]  ;;  %v500_v2 = vmov 0   ;;  %vm283_vm0 = vcmask 1043456  }
   0xd   : > { %s447_s16 = smul.u32 44, %s582_s12  ;;  %474 = vset.pattern.permute.xlu0 %v500_v2  ;;  %475 = vset.pattern.permute.xlu1 %v500_v2  ;;  %v217_v6 = vld [vmem:[%s575_s2] sm:$0xff]  ;;  %v216_v12 = vld [vmem:[%s574_s1 + $0x8] sm:$0x7]  ;;  %vm276_vm1 = vcmask 719872   ;;  %vm311_vm2 = vcmask 518144  }
   0xe   : > { %232 = vperm.xlu0 %474, %v219_v0   ;;  %227 = vperm.xlu1 %475, %v218_v1   ;;  %v240_v13 = vunpack.c.l.b16 %v216_v12  ;;  %v440_v15 = vld [vmem:[%s574_s1] sm:$0xff]  ;;  %s448_s30 = smul.u32 12, %s582_s12  ;;  %vm312_vm3 = vsmask.f32 2304  ;;  %vm308_vm4 = vcmask 519168  }
   0xf   : > { %s193_s23 = scalar_lea.vmem %s573_s0, %s447_s16  ;;  %vm313_vm5 = vmand %vm311_vm2, %vm312_vm3 }
  0x10   : > { %v213_v3 = vld [vmem:[%s193_s23 + $0x28] sm:$0xf]  ;;  %v439_v8 = vld [vmem:[%s193_s23 + $0x20] sm:$0xff]  ;;  %v438_v9 = vld [vmem:[%s193_s23 + $0x18] sm:$0xff]  ;;  %v242_v16 = vpack.c.b16 %v240_v13, %v240_v13  ;;  %s201_s6 = scalar_lea.vmem %s576_s3, %s448_s30 }
  0x11   : > { %v264_v4 = vunpack.c.l.b16 %v213_v3  ;;  %v437_v10 = vld [vmem:[%s193_s23 + $0x10] sm:$0xff]  ;;  %v436_v11 = vld [vmem:[%s193_s23 + $0x8] sm:$0xff]  ;;  %v435_v14 = vld [vmem:[%s193_s23] sm:$0xff] }
  0x12   : > { %v314_v23 = vld [vmem:[%s201_s6 + $0x8] sm:$0x7] }
  0x13   : > { %v270_v5 = vpack.c.b16 %v264_v4, %v264_v4 }
  0x15   : > { %v285_v7 = vsel %vm283_vm0, %v270_v5, 0 }
  0x16   : > { %289 = vmatpush.bf16.msra.mxu0 %v285_v7  ;;  %441 = vmatpush.bf16.msra.mxu1 %v285_v7 }
  0x17   : > { %222 = vperm.xlu0 %474, %v217_v6  }
  0x1a   : > { %290 = vmatpush.bf16.msra.mxu0 %v439_v8  ;;  %442 = vmatpush.bf16.msra.mxu1 %v439_v8 }
  0x1e   : > { %291 = vmatpush.bf16.msra.mxu0 %v438_v9  ;;  %443 = vmatpush.bf16.msra.mxu1 %v438_v9 }
  0x22   : > { %292 = vmatpush.bf16.msra.mxu0 %v437_v10  ;;  %444 = vmatpush.bf16.msra.mxu1 %v437_v10 }
  0x26   : > { %293 = vmatpush.bf16.msra.mxu0 %v436_v11  ;;  %445 = vmatpush.bf16.msra.mxu1 %v436_v11 }
  0x2a   : > { %294 = vmatpush.bf16.msra.mxu0 %v435_v14  ;;  %446 = vmatpush.bf16.msra.mxu1 %v435_v14 }
  0x2d   : > { %431 = vmatmul.msk.bf16.vlgmr.msra.gmra.mxu0 %vm276_vm1, %v440_v15  ;;  %432 = vmatmul.msk.bf16.vlgmr.msra.gmra.mxu1 %vm276_vm1, %v242_v16 }
  0x80   : > { %v233_v17 = vpop.permute.xlu0 %232  ;;  %v228_v27 = vpop.permute.xlu1 %227 }
  0x89   : > { %v223_v18 = vpop.permute.xlu0 %222 }
  0xaa   : > { %v296_v19 = vpop.f32.mrf.mxu0  ;;  %v301_v20 = vpop.f32.mrf.mxu1 }
  0xab   : > { %v297_v21 = vadd.f32 %v296_v19, %v223_v18  ;;  %v302_v22 = vadd.f32 %v301_v20, %v233_v17 }
  0xad   : > { %v305_v24 = vpack.c.bf16 %v297_v21, %v297_v21  ;;  %v307_v25 = vpack.c.bf16 %v302_v22, %v302_v22 }
  0xaf   : > { %309 = vst.msk [vmem:[%s201_s6] sm:$0xf] %vm308_vm4, %v305_v24  ;;  %v315_v26 = vsel %vm313_vm5, %v307_v25, %v314_v23 }
  0xb0   : > { %316 = vst [vmem:[%s201_s6 + $0x8] sm:$0x7] %v315_v26 }
  0xb2   : > { %v298_v28 = vpop.f32.mrf.mxu0  ;;  %v303_v29 = vpop.f32.mrf.mxu1 }
  0xb3   : > { %v299_v30 = vadd.f32 %v298_v28, %v228_v27 }
  0xb5   : > { %v306_v31 = vpack.c.bf16 %v299_v30, %v299_v30 }
  0xb7   : > { %310 = vst.msk [vmem:[%s201_s6 + $0x4] sm:$0xf] %vm308_vm4, %v306_v31 }
  0xb8 PF: > { %s13_s14 = sadd.s32 1, %s498_s14   ;;  %s577_s12 = smov %s494_s13 }
  0xb9   : > { %p10_p5 = scmp.ge.s32.totalorder %s13_s14, 4   ;;  %s578_s13 = smov %s580_s15 }
  0xbb   :  { %12 = sbr.rel (!%p10_p5) target bundleno = 2 (0x2), region = 62 }

// kernel: deeplab_forward.14
= control target key start
LH: loop header
LB: loop body
LE: loop exit
PB: predicated region body
PF: predicated region fallthrough
CT: control target
= control target key end

     0   :  { %s548_s15 = smov 0   ;;  %s550_s16 = smov 0   ;;  %s614_s0 = inlined_call_operand.vmem [shape: f32[8,4], index: 0, kind: input, shape index: {}]   ;;  %s615_s1 = inlined_call_operand.vmem [shape: f32[4,8], index: 1, kind: input, shape index: {}]   ;;  %s616_s2 = inlined_call_operand.vmem [shape: bf16[2,22,4,4], index: 2, kind: input, shape index: {}]   ;;  %s617_s3 = inlined_call_operand.vmem [shape: bf16[2,21,8,8], index: 3, kind: input, shape index: {}]   ;;  %s618_s4 = inlined_call_operand.vmem [shape: bf16[2,21,8,8], index: 4, kind: output, shape index: {}]  }
   0x1   :  { %s552_s17 = smov 0   ;;  %s554_s18 = smov 0  }
   0x2   :  { %s556_s19 = smov 0  }
   0x3 LB: > { %s23_s20 = sadd.s32 1, %s513_s17  ;;  %s26_s21 = sadd.s32 1, %s517_s18  ;;  %s521_s19 = sphi %s556_s19, %s14_s19   ;;  %s517_s18 = sphi %s554_s18, %s622_s18   ;;  %s513_s17 = sphi %s552_s17, %s621_s17   ;;  %s509_s16 = sphi %s550_s16, %s620_s16   ;;  %s505_s15 = sphi %s548_s15, %s619_s15  }
   0x4   : > { %p24_p0 = scmp.ge.s32.totalorder %s23_s20, 21  ;;  %p431_p1 = scmp.ge.s32.totalorder %s521_s19, 1 }
   0x5   : > { %p196_p2 = scmp.lt.s32.totalorder %s521_s19, 43 }
   0x6   : > { %s624_s20 = smov (%p24_p0, %s23_s20), 0  ;;  %s626_s21 = smov (!%p24_p0, %s26_s21), %s517_s18 }
   0x7   : > { %p197_p3 = pnand %p431_p1, %p196_p2  ;;  %p28_p4 = scmp.ge.s32.totalorder %s626_s21, 2 }
   0x8   : > { %p236_p5 = scmp.lt.s32.totalorder (!%p197_p3), %s509_s16, 1  ;;  %p238_p6 = scmp.lt.s32.totalorder (!%p197_p3), %s505_s15, 21 }
   0x9   : > { %s628_s21 = smov (%p28_p4, %s626_s21), 0  ;;  %200 = sbr.rel (%p197_p3) target bundleno = 282 (0x11a), region = 36 }
   0xa   : > { %p246_p7 = scmp.lt.s32.totalorder (!%p197_p3), %s505_s15, 20 }
   0xe   : > { %s630_s16 = smov (!%p236_p5, %s509_s16), 1  ;;  %vm270_vm0 = vcmask 1043456   ;;  %v264_v2 = vld [vmem:[%s614_s0] sm:$0xff]  ;;  %vm266_vm1 = vcmask 31744   ;;  %vm321_vm2 = vcmask 60416  }
   0xf   : > { %s239_s22 = scalar_select %p238_p6, %s505_s15, 21  ;;  %v265_v3 = vld [vmem:[%s615_s1] sm:$0xf] }
  0x10   : > { %s441_s23 = smul.u32 22, %s630_s16  ;;  %437 = vmatpush.msk.msra.mxu1 %vm270_vm0, %v265_v3  ;;  %s632_s15 = smov (!%p246_p7, %s505_s15), 20 }
  0x11   : > { %s442_s7 = smul.u32 21, %s630_s16 }
  0x12   : > { %s241_s24 = sadd.s32 %s441_s23, %s239_s22 }
  0x13   : > { %s432_s25 = sshll.u32 %s241_s24, 1  ;;  %s249_s8 = sadd.s32 %s442_s7, %s632_s15 }
  0x14   : > { %s243_s28 = scalar_lea.vmem %s616_s2, %s432_s25  ;;  %s433_s9 = sshll.u32 %s249_s8, 2 }
  0x15   : > { %v260_v0 = vld [vmem:[%s243_s28] sm:$0x3]  ;;  %s251_s12 = scalar_lea.vmem %s617_s3, %s433_s9  ;;  %s259_s22 = scalar_lea.vmem %s618_s4, %s433_s9 }
  0x16   : > { %v261_v1 = vunpack.c.l.bf16 %v260_v0  ;;  %v262_v5 = vld [vmem:[%s251_s12] sm:$0xf] }
  0x17   : > { %v263_v6 = vunpack.c.l.bf16 %v262_v5 }
  0x18   : > { %435 = vmatpush.msk.msra.mxu0 %vm270_vm0, %v261_v1 }
  0x19   : > { %436 = vmatmul.msk.f32.vlgmr.msra.gmra.mxu0 %vm266_vm1, %v264_v2 }
  0x96   : > { %v291_v4 = vpop.f32.mrf.mxu0 }
  0x97   : > { %438 = vmatmul.msk.f32.vlgmr.msra.gmra.mxu1 %vm266_vm1, %v291_v4 }
 0x114   : > { %v317_v7 = vpop.f32.mrf.mxu1 }
 0x115   : > { %v318_v8 = vadd.f32 %v317_v7, %v263_v6 }
 0x117   : > { %v320_v9 = vpack.c.bf16 %v318_v8, %v318_v8 }
 0x119   : > { %322 = vst.msk [vmem:[%s259_s22] sm:$0xf] %vm321_vm2, %v320_v9 }
 0x11a PF: > { %s14_s19 = sadd.s32 1, %s521_s19   ;;  %s619_s15 = smov %s513_s17 }
 0x11b   : > { %p11_p8 = scmp.ge.s32.totalorder %s14_s19, 44   ;;  %s620_s16 = smov %s517_s18 }
 0x11c   : > { %s621_s17 = smov %s624_s20  ;;  %s622_s18 = smov %s628_s21 }
 0x11d   :  { %13 = sbr.rel (!%p11_p8) target bundleno = 3 (0x3), region = 69 }

// kernel: deeplab_forward.15
= control target key start
LH: loop header
LB: loop body
LE: loop exit
PB: predicated region body
PF: predicated region fallthrough
CT: control target
= control target key end

     0   :  { %s687_s15 = smov 0   ;;  %s689_s16 = smov 0   ;;  %s783_s0 = inlined_call_operand.vmem [shape: f32[16,8], index: 0, kind: input, shape index: {}]   ;;  %s784_s1 = inlined_call_operand.vmem [shape: f32[8,16], index: 1, kind: input, shape index: {}]   ;;  %s785_s2 = inlined_call_operand.vmem [shape: bf16[2,21,8,8], index: 2, kind: input, shape index: {}]   ;;  %s786_s3 = inlined_call_operand.vmem [shape: f32[2,21,16,16], index: 3, kind: output, shape index: {0}]   ;;  %s787_s4 = inlined_call_operand.vmem [shape: f32[2,21,16,16], index: 4, kind: output, shape index: {1}]  }
   0x1   :  { %s691_s17 = smov 0   ;;  %s693_s18 = smov 0  }
   0x2   :  { %s695_s19 = smov 0  }
   0x3 LB: > { %s24_s20 = sadd.s32 1, %s650_s17  ;;  %s27_s21 = sadd.s32 1, %s654_s18  ;;  %s658_s19 = sphi %s695_s19, %s15_s19   ;;  %s654_s18 = sphi %s693_s18, %s791_s18   ;;  %s650_s17 = sphi %s691_s17, %s790_s17   ;;  %s646_s16 = sphi %s689_s16, %s789_s16   ;;  %s642_s15 = sphi %s687_s15, %s788_s15  }
   0x4   : > { %p25_p0 = scmp.ge.s32.totalorder %s24_s20, 21  ;;  %p562_p1 = scmp.ge.s32.totalorder %s658_s19, 1 }
   0x5   : > { %p186_p2 = scmp.lt.s32.totalorder %s658_s19, 43 }
   0x6   : > { %s793_s20 = smov (%p25_p0, %s24_s20), 0  ;;  %s795_s21 = smov (!%p25_p0, %s27_s21), %s654_s18 }
   0x7   : > { %p187_p3 = pnand %p562_p1, %p186_p2  ;;  %p29_p4 = scmp.ge.s32.totalorder %s795_s21, 2 }
   0x8   : > { %p228_p5 = scmp.lt.s32.totalorder (!%p187_p3), %s646_s16, 1  ;;  %p230_p6 = scmp.lt.s32.totalorder (!%p187_p3), %s642_s15, 20 }
   0x9   : > { %s797_s21 = smov (%p29_p4, %s795_s21), 0  ;;  %190 = sbr.rel (%p187_p3) target bundleno = 436 (0x1b4), region = 32 }
   0xa   : > { %s660_s11 = smov (!%p187_p3), 1   ;;  %s661_s12 = smov (!%p187_p3), 127  }
   0xe   : > { %s799_s16 = smov (!%p228_p5, %s646_s16), 1  ;;  %s801_s15 = smov (!%p230_p6, %s642_s15), 20  ;;  %v256_v2 = vld [vmem:[%s783_s0] sm:$0xff]  ;;  %vm259_vm0 = vcmask 64512   ;;  %v257_v3 = vld [vmem:[%s783_s0 + $0x8] sm:$0xff]  ;;  %vm320_vm1 = vcmask 1040384  }
   0xf   : > { %s576_s22 = smul.u32 21, %s799_s16  ;;  %s564_s23 = sshll.u32 %s801_s15, 1  ;;  %v258_v4 = vld [vmem:[%s784_s1] sm:$0xff]  ;;  %vm372_vm2 = vcmask 1046528   ;;  %vm334_vm3 = vcmask 7168   ;;  %vm347_vm4 = vcmask 121856  }
  0x10   : > { %s577_s24 = smul.u32 42, %s799_s16  ;;  %310 = vmatpush.msra.mxu1 %v258_v4  ;;  %575 = vmatpush.msra.mxu3 %v258_v4  ;;  %vm406_vm5 = vcmask 130048  }
  0x11   : > { %s233_s25 = sadd.s32 %s576_s22, %s801_s15 }
  0x12   : > { %s563_s26 = sshll.u32 %s233_s25, 2  ;;  %s717_s27 = sadd.s32 %s577_s24, %s564_s23 }
  0x13   : > { %s235_s30 = scalar_lea.vmem %s785_s2, %s563_s26  ;;  %s565_s13 = sshll.u32 %s717_s27, 3 }
  0x14   : > { %v254_v0 = vld [vmem:[%s235_s30] sm:$0xf]  ;;  %s253_s16 = scalar_lea.vmem %s787_s4, %s565_s13  ;;  %s244_s24 = scalar_lea.vmem %s786_s3, %s565_s13 }
  0x15   : > { %v255_v1 = vunpack.c.l.bf16 %v254_v0 }
  0x17   : > { %281 = vmatpush.msra.mxu0 %v255_v1  ;;  %574 = vmatpush.msra.mxu2 %v255_v1 }
  0x18   : > { %568 = vmatmul.msk.f32.vlgmr.msra.gmra.mxu0 %vm259_vm0, %v256_v2  ;;  %569 = vmatmul.msk.f32.vlgmr.msra.gmra.mxu2 %vm259_vm0, %v257_v3 }
  0x95   : > { %v283_v5 = vpop.f32.mrf.mxu0 }
  0x96   : > { %570 = vmatmul.msk.f32.vlgmr.msra.gmra.mxu1 %vm259_vm0, %v283_v5 }
  0x9b   : > { %v286_v6 = vpop.f32.mrf.mxu2 }
  0x9c   : > { %571 = vmatmul.msk.f32.vlgmr.msra.gmra.mxu3 %vm259_vm0, %v286_v6 }
 0x113   : > { %v731_v7 = vpop.f32.mrf.mxu1 }
 0x114   : > { %v321_v8 = vrot.slane %v731_v7, 7  ;;  %352 = vrot.lane.b32.xlu2 %v731_v7, %s660_s11  ;;  %v373_v14 = vrot.slane %v731_v7, 1 }
 0x116   : > { %v326_v9 = vsel %vm320_vm1, -inf, %v321_v8 }
 0x117   : > { %328 = vrot.lane.b32.xlu0 %v326_v9, %s660_s11  ;;  %341 = vrot.lane.b32.xlu1 %v326_v9, %s661_s12 }
 0x11f   : > { %v735_v10 = vpop.f32.mrf.mxu3 }
 0x120   : > { %354 = vrot.lane.b32.xlu2 %v735_v10, %s660_s11  ;;  %v322_v11 = vrot.slane %v735_v10, 7  ;;  %v374_v13 = vrot.slane %v735_v10, 1 }
 0x122   : > { %v323_v12 = vsel %vm320_vm1, %v321_v8, %v322_v11  ;;  %v375_v15 = vsel %vm372_vm2, %v373_v14, %v374_v13  ;;  %v378_v16 = vsel %vm372_vm2, %v374_v13, -inf }
 0x123   : > { %343 = vrot.lane.b32.xlu1 %v323_v12, %s661_s12  ;;  %330 = vrot.lane.b32.xlu0 %v323_v12, %s660_s11 }
 0x128   : > { %380 = vrot.lane.b32.xlu2 %v375_v15, %s660_s11 }
 0x12b   : > { %364 = vrot.lane.b32.xlu1 %v735_v10, %s661_s12  ;;  %362 = vrot.lane.b32.xlu0 %v731_v7, %s661_s12 }
 0x130   : > { %394 = vrot.lane.b32.xlu2 %v378_v16, %s661_s12 }
 0x133   : > { %392 = vrot.lane.b32.xlu1 %v375_v15, %s661_s12  ;;  %382 = vrot.lane.b32.xlu0 %v378_v16, %s660_s11 }
 0x16e   : > { %v353_v17 = vpop.permute.xlu2 %352 }
 0x16f   : > { %v358_v31 = vsel %vm334_vm3, -inf, %v353_v17 }
 0x17a   : > { %v355_v22 = vpop.permute.xlu2 %354 }
 0x17b   : > { %v359_v40 = vsel %vm334_vm3, -inf, %v355_v22 }
 0x182   : > { %v381_v32 = vpop.permute.xlu2 %380 }
 0x183   : > { %v386_v41 = vsel %vm334_vm3, -inf, %v381_v32 }
 0x189   : > { %v329_v18 = vpop.permute.xlu0 %328  ;;  %v342_v19 = vpop.permute.xlu1 %341 }
 0x18a   : > { %v335_v20 = vsel %vm334_vm3, -inf, %v329_v18  ;;  %v348_v26 = vsel %vm347_vm4, %v342_v19, -inf  ;;  %v395_v51 = vpop.permute.xlu2 %394 }
 0x18b   : > { %v337_v21 = vmax.f32 %v731_v7, %v335_v20  ;;  %v399_v56 = vsel %vm347_vm4, %v395_v51, -inf }
 0x18d   : > { %v339_v23 = vmax.f32 %v337_v21, %v326_v9 }
 0x18f   : > { %v350_v29 = vmax.f32 %v339_v23, %v348_v26 }
 0x191   : > { %v360_v36 = vmax.f32 %v350_v29, %v358_v31 }
 0x195   : > { %v344_v24 = vpop.permute.xlu1 %343  ;;  %v331_v25 = vpop.permute.xlu0 %330 }
 0x196   : > { %v336_v27 = vsel %vm334_vm3, -inf, %v331_v25  ;;  %v349_v33 = vsel %vm347_vm4, %v344_v24, -inf }
 0x197   : > { %v338_v28 = vmax.f32 %v735_v10, %v336_v27 }
 0x199   : > { %v340_v30 = vmax.f32 %v338_v28, %v323_v12 }
 0x19b   : > { %v351_v35 = vmax.f32 %v340_v30, %v349_v33 }
 0x19d   : > { %v365_v34 = vpop.permute.xlu1 %364  ;;  %v363_v37 = vpop.permute.xlu0 %362  ;;  %v361_v42 = vmax.f32 %v351_v35, %v359_v40 }
 0x19e   : > { %v368_v38 = vsel %vm347_vm4, %v363_v37, -inf  ;;  %v369_v44 = vsel %vm347_vm4, %v365_v34, -inf }
 0x19f   : > { %v370_v39 = vmax.f32 %v360_v36, %v368_v38  ;;  %v371_v45 = vmax.f32 %v361_v42, %v369_v44 }
 0x1a1   : > { %v388_v43 = vmax.f32 %v370_v39, %v386_v41 }
 0x1a3   : > { %v390_v47 = vmax.f32 %v388_v43, %v375_v15 }
 0x1a5   : > { %v393_v46 = vpop.permute.xlu1 %392  ;;  %v383_v48 = vpop.permute.xlu0 %382 }
 0x1a6   : > { %v398_v49 = vsel %vm347_vm4, %v393_v46, -inf  ;;  %v387_v50 = vsel %vm334_vm3, -inf, %v383_v48 }
 0x1a7   : > { %v400_v52 = vmax.f32 %v390_v47, %v398_v49  ;;  %v389_v53 = vmax.f32 %v371_v45, %v387_v50 }
 0x1a9   : > { %v402_v54 = vsub.f32 %v731_v7, %v400_v52  ;;  %v391_v55 = vmax.f32 %v389_v53, %v378_v16 }
 0x1ab   : > { %v404_v57 = vand.u32 2147483647, %v402_v54  ;;  %v401_v58 = vmax.f32 %v391_v55, %v399_v56 }
 0x1ad   : > { %407 = vst.msk [vmem:[%s253_s16] sm:$0xff] %vm406_vm5, %v404_v57  ;;  %v409_v59 = vadd.f32 %v404_v57, %v731_v7  ;;  %v403_v60 = vsub.f32 %v735_v10, %v401_v58 }
 0x1af   : > { %411 = vst.msk [vmem:[%s244_s24] sm:$0xff] %vm406_vm5, %v409_v59  ;;  %v405_v61 = vand.u32 2147483647, %v403_v60 }
 0x1b1   : > { %408 = vst.msk [vmem:[%s253_s16 + $0x8] sm:$0xff] %vm406_vm5, %v405_v61  ;;  %v410_v62 = vadd.f32 %v405_v61, %v735_v10 }
 0x1b3   : > { %412 = vst.msk [vmem:[%s244_s24 + $0x8] sm:$0xff] %vm406_vm5, %v410_v62 }
 0x1b4 PF: > { %s15_s19 = sadd.s32 1, %s658_s19   ;;  %s788_s15 = smov %s650_s17 }
 0x1b5   : > { %p12_p7 = scmp.ge.s32.totalorder %s15_s19, 44   ;;  %s789_s16 = smov %s654_s18 }
 0x1b6   : > { %s790_s17 = smov %s793_s20  ;;  %s791_s18 = smov %s797_s21 }
 0x1b7   :  { %14 = sbr.rel (!%p12_p7) target bundleno = 3 (0x3), region = 74 }

// kernel: deeplab_forward.8
= control target key start
LH: loop header
LB: loop body
LE: loop exit
PB: predicated region body
PF: predicated region fallthrough
CT: control target
= control target key end

     0   :  { %s442_s12 = smov 0   ;;  %s444_s13 = smov 0   ;;  %s485_s0 = inlined_call_operand.vmem [shape: f32[2,3,256], index: 0, kind: input, shape index: {}]   ;;  %s486_s1 = inlined_call_operand.vmem [shape: f32[8,3], index: 1, kind: input, shape index: {}]   ;;  %s487_s2 = inlined_call_operand.vmem [shape: f32[8,1], index: 2, kind: input, shape index: {}]   ;;  %s488_s3 = inlined_call_operand.vmem [shape: f32[2,8,256], index: 3, kind: output, shape index: {}]  }
   0x1   :  { %s446_s14 = smov 0  }
   0x2 LB: > { %s25_s15 = sadd.s32 1, %s413_s13  ;;  %p355_p0 = scmp.ge.s32.totalorder %s417_s14, 1  ;;  %s417_s14 = sphi %s446_s14, %s13_s14   ;;  %s413_s13 = sphi %s444_s13, %s490_s13   ;;  %s409_s12 = sphi %s442_s12, %s489_s12  }
   0x3   : > { %p27_p1 = scmp.ge.s32.totalorder %s25_s15, 2  ;;  %p158_p2 = scmp.lt.s32.totalorder %s417_s14, 3 }
   0x5   : > { %s492_s15 = smov (%p27_p1, %s25_s15), 0  ;;  %p159_p3 = pnand %p355_p0, %p158_p2 }
   0x6   : > { %p191_p4 = scmp.lt.s32.totalorder (!%p159_p3), %s409_s12, 1 }
   0x7   : > { %162 = sbr.rel (%p159_p3) target bundleno = 145 (0x91), region = 32 }
   0xc   : > { %v211_v0 = vld [vmem:[%s486_s1] sm:$0xff]  ;;  %v419_v1 = vmov 0   ;;  %v420_v2 = vmov 1   ;;  %v421_v4 = vmov 2   ;;  %s494_s12 = smov (!%p191_p4, %s409_s12), 1 }
   0xd   : > { %391 = vset.pattern.permute.xlu0 %v419_v1  ;;  %392 = vset.pattern.permute.xlu1 %v420_v2  ;;  %v212_v3 = vld [vmem:[%s487_s2] sm:$0xff]  ;;  %s362_s20 = sshll.u32 %s494_s12, 3  ;;  %s363_s24 = sshll.u32 %s494_s12, 4 }
   0xe   : > { %220 = vperm.xlu0 %391, %v211_v0   ;;  %235 = vperm.xlu1 %392, %v211_v0   ;;  %s198_s23 = scalar_lea.vmem %s485_s0, %s362_s20  ;;  %s208_s27 = scalar_lea.vmem %s488_s3, %s363_s24 }
   0xf   : > { %v210_v5 = vld [vmem:[%s198_s23] sm:$0x77] }
  0x10   : > { %v224_v6 = vperm.slane %v210_v5, 0  ;;  %v225_v7 = vperm.slane %v210_v5, 4  ;;  %v238_v10 = vperm.slane %v210_v5, 1  ;;  %v239_v11 = vperm.slane %v210_v5, 5 }
  0x11   : > { %v252_v12 = vperm.slane %v210_v5, 2  ;;  %v253_v13 = vperm.slane %v210_v5, 6 }
  0x12   : > { %v228_v14 = vperm.slane %v224_v6, 0  ;;  %v229_v15 = vperm.slane %v225_v7, 0  ;;  %v242_v16 = vperm.slane %v238_v10, 1  ;;  %v243_v17 = vperm.slane %v239_v11, 1 }
  0x13   : > { %v256_v18 = vperm.slane %v252_v12, 2  ;;  %v257_v19 = vperm.slane %v253_v13, 2 }
  0x16   : > { %215 = vperm.xlu0 %391, %v212_v3   ;;  %393 = vset.pattern.permute.xlu1 %v421_v4 }
  0x17   : > { %249 = vperm.xlu1 %393, %v211_v0  }
  0x1e   : > { %394 = vset.pattern.permute.xlu0 %v421_v4 }
  0x80   : > { %v221_v8 = vpop.permute.xlu0 %220  ;;  %v236_v9 = vpop.permute.xlu1 %235 }
  0x81   : > { %v230_v20 = vmul.f32 %v228_v14, %v221_v8  ;;  %v231_v21 = vmul.f32 %v229_v15, %v221_v8  ;;  %v244_v23 = vmul.f32 %v242_v16, %v236_v9  ;;  %v245_v24 = vmul.f32 %v243_v17, %v236_v9 }
  0x88   : > { %v216_v22 = vpop.permute.xlu0 %215 }
  0x89   : > { %v232_v25 = vadd.f32 %v230_v20, %v216_v22  ;;  %v233_v26 = vadd.f32 %v231_v21, %v216_v22  ;;  %v250_v27 = vpop.permute.xlu1 %249 }
  0x8a   : > { %v258_v28 = vmul.f32 %v256_v18, %v250_v27  ;;  %v259_v29 = vmul.f32 %v257_v19, %v250_v27 }
  0x8b   : > { %v246_v30 = vadd.f32 %v244_v23, %v232_v25  ;;  %v247_v31 = vadd.f32 %v245_v24, %v233_v26 }
  0x8d   : > { %v260_v32 = vadd.f32 %v258_v28, %v246_v30  ;;  %v261_v33 = vadd.f32 %v259_v29, %v247_v31 }
  0x8f   : > { %262 = vst [vmem:[%s208_s27] sm:$0xff] %v260_v32 }
  0x90   : > { %263 = vst [vmem:[%s208_s27 + $0x8] sm:$0xff] %v261_v33 }
  0x91 PF: > { %s13_s14 = sadd.s32 1, %s417_s14   ;;  %s489_s12 = smov %s413_s13 }
  0x92   : > { %p10_p5 = scmp.ge.s32.totalorder %s13_s14, 4   ;;  %s490_s13 = smov %s492_s15 }
  0x94   :  { %12 = sbr.rel (!%p10_p5) target bundleno = 2 (0x2), region = 62 }

// kernel: deeplab_forward.13
= control target key start
LH: loop header
LB: loop body
LE: loop exit
PB: predicated region body
PF: predicated region fallthrough
CT: control target
= control target key end

     0   :  { %8 = vsyncpa [#allocation3], 0  ;;  %s717_s0 = inlined_call_operand.vmem [shape: f32[16,4], index: 0, kind: input, shape index: {}]   ;;  %s718_s1 = inlined_call_operand.vmem [shape: f32[4,16], index: 1, kind: input, shape index: {}]   ;;  %s719_s2 = inlined_call_operand.vmem [shape: bf16[2,22,4,4], index: 2, kind: input, shape index: {}]   ;;  %s720_s3 = inlined_call_operand.hbm [shape: f32[2,1,16,16], index: 3, kind: output, shape index: {}]  }
   0x1   :  { %10 = vsyncpa [#allocation3 + $0x1], 0  ;;  %s611_s12 = smov 0   ;;  %s613_s13 = smov 0  }
   0x2   :  { %s615_s14 = smov 0   ;;  %s617_s15 = smov 0  }
   0x3   :  { %s619_s16 = smov 0   ;;  %s621_s17 = smov 0  }
   0x4 LB: > { %s426_s18 = sadd.s32 4294967295, %s587_s17   ;;  %s427_s19 = sadd.s32 4294967294, %s587_s17   ;;  %s587_s17 = sphi %s621_s17, %s16_s17   ;;  %s583_s16 = sphi %s619_s16, %s727_s16   ;;  %s579_s15 = sphi %s617_s15, %s726_s15   ;;  %s575_s14 = sphi %s615_s14, %s725_s14   ;;  %s571_s13 = sphi %s613_s13, %s724_s13   ;;  %s567_s12 = sphi %s611_s12, %s723_s12  }
   0x5   : > { %s35_s20 = sadd.s32 1, %s583_s16  ;;  %s123_s21 = sadd.s32 1, %s575_s14 }
   0x6   : > { %p37_p0 = scmp.ge.s32.totalorder %s35_s20, 2  ;;  %p133_p1 = scmp.ne.s32.totalorder %s575_s14, %s571_s13 }
   0x7   : > { %p134_p2 = scmp.eq.s32.totalorder %s426_s18, 1  ;;  %p139_p3 = scmp.ne.s32.totalorder %s571_s13, %s567_s12 }
   0x8   : > { %s729_s20 = smov (%p37_p0, %s35_s20), 0  ;;  %p140_p5 = scmp.eq.s32.totalorder %s427_s19, 1 }
   0x9   : > { %p651_p4 = por %p134_p2, %p133_p1  ;;  %s116_s23 = ssub.s32 %s583_s16, %s729_s20 }
   0xa   : > { %p431_p6 = scmp.ge.s32.totalorder %s587_s17, 1  ;;  %p121_p7 = scmp.eq.s32.totalorder %s116_s23, 0 }
   0xb   : > { %p658_p8 = por %p140_p5, %p139_p3  ;;  %p183_p9 = scmp.lt.s32.totalorder %s587_s17, 3 }
   0xc   : > { %s664_s25 = scalar_select %p121_p7, %s575_s14, %s123_s21  }
   0xd   : > { %p184_p10 = pnand %p431_p6, %p183_p9 }
   0xe   : > { %p223_p11 = scmp.lt.s32.totalorder (!%p184_p10), %s579_s15, 1  ;;  %s213_s11 = sand.u32 (!%p184_p10), 1, %s571_s13  }
   0xf   : > { %187 = sbr.rel (%p184_p10) target bundleno = 298 (0x12a), region = 32  ;;  %s432_s18 = sshll.u32 (!%p184_p10), %s213_s11, 4 }
  0x10   : > { %s215_s19 = scalar_lea.vmem (!%p184_p10), [#allocation2], %s432_s18  ;;  %s447_s21 = sshll.u32 (!%p184_p10), %s579_s15, 4 }
  0x11   : > { %s308_s30 = scalar_lea.sflag (!%p184_p10), [#allocation3], %s213_s11  ;;  %s529_s7 = scalar_lea.hbm (!%p184_p10), %s720_s3, 32 }
  0x14   : > { %s224_s26 = scalar_select %p223_p11, %s579_s15, 1  ;;  %vm245_vm0 = vcmask 1043456   ;;  %v236_v2 = vld [vmem:[%s717_s0 + $0x8] sm:$0xff]  ;;  %vm238_vm1 = vcmask 31744   ;;  %v235_v3 = vld [vmem:[%s717_s0] sm:$0xff]  ;;  %vm304_vm2 = vcmask 130048  }
  0x15   : > { %v237_v4 = vld [vmem:[%s718_s1] sm:$0xf] }
  0x16   : > { %s457_s27 = smul.u32 44, %s224_s26  ;;  %449 = vmatpush.msk.msra.mxu3 %vm245_vm0, %v237_v4  ;;  %437 = vmatpush.msk.msra.mxu1 %vm245_vm0, %v237_v4 }
  0x18   : > { %s446_s28 = sadd.s32 42, %s457_s27  ;;  %s323_s27 = scalar_lea.hbm %s720_s3, %s447_s21 }
  0x19   : > { %s230_s4 = scalar_lea.vmem %s719_s2, %s446_s28  ;;  %s324_s28 = sshll.u32 %s215_s19, 4  ;;  %s325_s28 = int_to_ptr.vmem [resolvable:$true] %s324_s28 }
  0x1a   : > { %v233_v0 = vld [vmem:[%s230_s4] sm:$0x3]  ;;  %s326_s29 = sshll.u32 %s323_s27, 4  ;;  %s327_s29 = int_to_ptr.hbm [resolvable:$true] %s326_s29 }
  0x1b   : > { %v234_v1 = vunpack.c.l.bf16 %v233_v0  ;;  %s523_s4 = sshra.s32 %s327_s29, 4  ;;  %s524_s4 = int_to_ptr.hbm [resolvable:$true] %s523_s4 }
  0x1c   : > { %s525_s5 = scalar_lea.hbm %s524_s4, 16  ;;  %p530_p1 = scmp.lt.s32.totalorder %s524_s4, %s720_s3 }
  0x1d   : > { %448 = vmatpush.msk.msra.mxu2 %vm245_vm0, %v234_v1  ;;  %434 = vmatpush.msk.msra.mxu0 %vm245_vm0, %v234_v1  ;;  %p526_p12 = scmp.ne.s32.totalorder %s524_s4, %s525_s5  ;;  %p531_p2 = scmp.lt.s32.totalorder %s529_s7, %s525_s5 }
  0x1e   : > { %436 = vmatmul.msk.f32.vlgmr.msra.gmra.mxu2 %vm238_vm1, %v236_v2  ;;  %435 = vmatmul.msk.f32.vlgmr.msra.gmra.mxu0 %vm238_vm1, %v235_v3 }
  0x1f   : > { %p527_p13 = pnand %p526_p12, %p651_p4  ;;  %p532_p3 = por %p531_p2, %p530_p1 }
  0x21   : > { %p528_p0 = pneg %p527_p13 }
  0x23   : > { %p533_p5 = pnand %p532_p3, %p528_p0 }
  0x9b   : > { %v266_v5 = vpop.f32.mrf.mxu0 }
  0x9c   : > { %438 = vmatmul.msk.f32.vlgmr.msra.gmra.mxu1 %vm238_vm1, %v266_v5 }
  0xa1   : > { %v269_v6 = vpop.f32.mrf.mxu2 }
  0xa2   : > { %439 = vmatmul.msk.f32.vlgmr.msra.gmra.mxu3 %vm238_vm1, %v269_v6 }
 0x119   : > { %v298_v7 = vpop.f32.mrf.mxu1 }
 0x11a   : > { %305 = vst.msk [vmem:[%s215_s19] sm:$0xff] %vm304_vm2, %v298_v7 }
 0x125   : > { %v301_v8 = vpop.f32.mrf.mxu3 }
 0x126   : > { %306 = vst.msk [vmem:[%s215_s19 + $0x8] sm:$0xff] %vm304_vm2, %v301_v8 }
 0x127   : > { %536 = shalt.err (!%p533_p5)
}
 0x128   : > { %s589_s10 = smov 128   ;;  %s590_s11 = smov 8  }
 0x129   : > { %451 = dma.vmem_to_hbm [thread:$0]  (%p651_p4), %s325_s28, 256, %s327_s29, %s308_s30, %s589_s10, %s589_s10, %s590_s11  }
 0x12a PF: > { %p458_p6 = scmp.ge.s32.totalorder %s587_s17, 2  ;;  %s341_s18 = sand.u32 1, %s567_s12  }
 0x12b   : > { %s342_s19 = scalar_lea.sflag [#allocation3], %s341_s18 }
 0x12c   : > { %p454_p7 = pnand %p458_p6, %p658_p8 }
 0x12e   : > { %p455_p9 = pneg %p454_p7 }
 0x130   : > { %562 = dma.done.wait (%p455_p9), %s342_s19, 256  }
 0x131   : > { %564 = vsyncadd (%p455_p9), %s342_s19, 4294967040  ;;  %s16_s17 = sadd.s32 1, %s587_s17   ;;  %s723_s12 = smov %s571_s13 }
 0x132   : > { %p13_p10 = scmp.ge.s32.totalorder %s16_s17, 4   ;;  %s724_s13 = smov %s575_s14 }
 0x133   : > { %s725_s14 = smov %s664_s25  ;;  %s726_s15 = smov %s583_s16 }
 0x134   : > { %s727_s16 = smov %s729_s20  ;;  %15 = sbr.rel (!%p13_p10) target bundleno = 4 (0x4), region = 70 }
 0x139   :  { %348 = vsyncpa [#allocation3], 1 }
 0x13a   :  { %350 = vsyncpa [#allocation3 + $0x1], 1 }

</bundles_post_ra>
